<compile_context>
chip_gen: v7x
topology: tpu7x:2x2x1
jax: 0.10.0
libtpu: 0.0.40
codegen_flags: <defaults>
</compile_context>

<pallas_src>
import functools
import math

import jax
import jax.numpy as jnp
from jax.experimental import pallas as pl
from jax.experimental.pallas import tpu as pltpu

EPS = 1e-5                       # PyTorch BatchNorm2d default eps
_VMEM_LIMIT = 48 * 1024 * 1024   # <= 64 MiB physical on v7x; ample headroom on v5e/v6e


def _conv1x3(x, w_stk, nb, c, width):
    """(1,3) conv along the lane axis of an (nb*c, T) tile (nb images on sublanes).

    x:     (nb*c, T) activations; T is a multiple of `width`, W-run aligned.
    w_stk: (c, 3c) stacked taps; w_stk[co, k*c + ci] = torch_w[co, ci, 0, k].
    """
    R, T = x.shape
    lane = jax.lax.broadcasted_iota(jnp.int32, (R, T), 1)
    wpos = lane % width
    zcol = jnp.zeros((R, 1), x.dtype)
    # TODO(synk): pltpu.roll(+mask) would move these shifts to the idle XLU slot.
    prev = jnp.where(wpos == 0, 0.0,
                     jnp.concatenate([zcol, x[:, :-1]], axis=1))
    nxt = jnp.where(wpos == width - 1, 0.0,
                    jnp.concatenate([x[:, 1:], zcol], axis=1))
    taps = (prev, x, nxt)
    # Per-image channel mix: 3*c*nb sublane-broadcast FMAs (VPU has slack at small c,
    # and the kernel is HBM-bound).
    # TODO(synk): for c >= ~16 switch to a single MXU matmul of w_stk (c,3c) against
    # the stacked taps (bf16 dot operands on v6e/v7x); w_stk is already laid out for it.
    outs = []
    for n in range(nb):
        y_n = None
        for k in range(3):
            xk = taps[k]
            for ci in range(c):
                row = jnp.broadcast_to(xk[n * c + ci:n * c + ci + 1, :], (c, T))
                term = w_stk[:, k * c + ci:k * c + ci + 1] * row
                y_n = term if y_n is None else y_n + term
        outs.append(y_n)
    return jnp.concatenate(outs, axis=0) if nb > 1 else outs[0]


def _accumulate_stats(y, s_ref, q_ref):
    # Per-batch-block partials -> batch grid axis stays 'parallel' (megacore-safe);
    # only the HW-tile axis (last grid axis) accumulates sequentially.
    @pl.when(pl.program_id(1) == 0)
    def _():
        s_ref[...] = jnp.zeros_like(s_ref)
        q_ref[...] = jnp.zeros_like(q_ref)

    s_ref[...] += jnp.sum(y, axis=1, keepdims=True)
    q_ref[...] += jnp.sum(y * y, axis=1, keepdims=True)


def _stats1_kernel(x_ref, w1_ref, s_ref, q_ref, *, nb, c, width):
    y1 = _conv1x3(x_ref[...], w1_ref[...], nb, c, width)
    _accumulate_stats(y1, s_ref, q_ref)


def _stats2_kernel(x_ref, w1_ref, sc1_ref, sh1_ref, w2_ref, s_ref, q_ref, *, nb, c, width):
    y1 = _conv1x3(x_ref[...], w1_ref[...], nb, c, width)
    h = jnp.maximum(y1 * sc1_ref[...] + sh1_ref[...], 0.0)
    y2 = _conv1x3(h, w2_ref[...], nb, c, width)
    _accumulate_stats(y2, s_ref, q_ref)


def _output_kernel(x_ref, w1_ref, sc1_ref, sh1_ref, w2_ref, sc2_ref, sh2_ref, o_ref,
                   *, nb, c, width):
    x = x_ref[...]
    y1 = _conv1x3(x, w1_ref[...], nb, c, width)
    h = jnp.maximum(y1 * sc1_ref[...] + sh1_ref[...], 0.0)
    y2 = _conv1x3(h, w2_ref[...], nb, c, width)
    o_ref[...] = jnp.maximum(y2 * sc2_ref[...] + sh2_ref[...] + x, 0.0)


def _fold_bn(s_rows, q_rows, gamma, beta, n, c, count):
    """Fold per-row (N*C,1) partial sums into per-row BN scale/shift columns."""
    s = jnp.sum(s_rows.reshape(n, c), axis=0)
    q = jnp.sum(q_rows.reshape(n, c), axis=0)
    mean = s / count
    var = jnp.maximum(q / count - mean * mean, 0.0)   # single-pass stats, clamped
    scale = gamma * jax.lax.rsqrt(var + EPS)
    shift = beta - mean * scale
    return (jnp.tile(scale, n).reshape(n * c, 1),
            jnp.tile(shift, n).reshape(n * c, 1))


def _choose_tile_lanes(hw, w, preferred=8192):
    """Largest tile dividing hw, multiple of w (no halo), preferring 128-lane alignment."""
    divs = [d * w for d in range(1, hw // w + 1) if hw % (d * w) == 0]
    lane_aligned = [t for t in divs if t % 128 == 0]
    for cands in (lane_aligned, divs):
        if not cands:
            continue
        under = [t for t in cands if t <= preferred]
        return max(under) if under else min(cands)
    return hw


def _choose_batch_block(n, c, max_rows=64):
    """Largest batch block dividing N with nb*C rows, preferring 8-sublane multiples."""
    divs = [d for d in range(1, n + 1) if n % d == 0]
    fit = [d for d in divs if d * c <= max_rows] or [1]
    aligned = [d for d in fit if (d * c) % 8 == 0]
    return max(aligned) if aligned else max(fit)


def residual_block_pallas(x_nchw, params, *, tile_lanes=8192, batch_block=None):
    """Forward pass of ResidualBlock (train-mode BatchNorm) on TPU via Pallas."""
    w1_stk, g1, b1, w2_stk, g2, b2 = params     # w*_stk: (C, 3C); g/b: (C,)
    N, C, H, W = x_nchw.shape
    HW = H * W
    # Pure reshape (N outermost), no HBM transpose; rows fill the 8 f32 sublanes.
    x2d = x_nchw.reshape(N * C, HW).astype(jnp.float32)

    nb = batch_block if batch_block is not None else _choose_batch_block(N, C)
    assert N % nb == 0, (N, nb)
    R = nb * C
    T = _choose_tile_lanes(HW, W, tile_lanes)
    grid = (N // nb, HW // T)

    act_spec = pl.BlockSpec((R, T), lambda b, t: (b, t))
    w_spec = pl.BlockSpec((C, 3 * C), lambda b, t: (0, 0))
    col_spec = pl.BlockSpec((R, 1), lambda b, t: (b, 0))

    act_shape = jax.ShapeDtypeStruct((N * C, HW), jnp.float32)
    col_shape = jax.ShapeDtypeStruct((N * C, 1), jnp.float32)

    stats_params = pltpu.CompilerParams(
        dimension_semantics=("parallel", "arbitrary"),
        vmem_limit_bytes=_VMEM_LIMIT)
    out_params = pltpu.CompilerParams(
        dimension_semantics=("parallel", "parallel"),
        vmem_limit_bytes=_VMEM_LIMIT)

    elems = N * C * HW
    conv_flops = 6 * C * C * N * HW
    stats_cost = pl.CostEstimate(flops=conv_flops + 4 * elems, transcendentals=0,
                                 bytes_accessed=4 * elems)
    out_cost = pl.CostEstimate(flops=2 * conv_flops + 8 * elems, transcendentals=0,
                               bytes_accessed=8 * elems)

    count = float(N * HW)
    kw = dict(nb=nb, c=C, width=W)

    # Pass 1: conv1 -> per-row stats only (no activation writeback).
    s1, q1 = pl.pallas_call(
        functools.partial(_stats1_kernel, **kw),
        grid=grid,
        in_specs=[act_spec, w_spec],
        out_specs=(col_spec, col_spec),
        out_shape=(col_shape, col_shape),
        compiler_params=stats_params,
        cost_estimate=stats_cost,
    )(x2d, w1_stk)
    sc1, sh1 = _fold_bn(s1, q1, g1, b1, N, C, count)

    # Pass 2: recompute conv1, BN1 + ReLU, conv2 -> per-row stats only.
    s2, q2 = pl.pallas_call(
        functools.partial(_stats2_kernel, **kw),
        grid=grid,
        in_specs=[act_spec, w_spec, col_spec, col_spec, w_spec],
        out_specs=(col_spec, col_spec),
        out_shape=(col_shape, col_shape),
        compiler_params=stats_params,
        cost_estimate=stats_cost,
    )(x2d, w1_stk, sc1, sh1, w2_stk)
    sc2, sh2 = _fold_bn(s2, q2, g2, b2, N, C, count)

    # Pass 3: full recompute + BN2 + residual + ReLU -> the only full-size write.
    out2d = pl.pallas_call(
        functools.partial(_output_kernel, **kw),
        grid=grid,
        in_specs=[act_spec, w_spec, col_spec, col_spec, w_spec, col_spec, col_spec],
        out_specs=act_spec,
        out_shape=act_shape,
        compiler_params=out_params,
        cost_estimate=out_cost,
    )(x2d, w1_stk, sc1, sh1, w2_stk, sc2, sh2)

    return out2d.reshape(N, C, H, W)


def init_params(key, C):
    """Deterministic synthetic init mirroring nn.Conv2d / nn.BatchNorm2d defaults."""
    k1, k2, k3, k4 = jax.random.split(key, 4)
    fan_in = C * 1 * 3
    bound = 1.0 / math.sqrt(fan_in)
    w1_t = jax.random.uniform(k1, (C, C, 1, 3), jnp.float32, -bound, bound)  # (Cout,Cin,1,3)
    b1 = jax.random.uniform(k2, (C,), jnp.float32, -bound, bound)
    w2_t = jax.random.uniform(k3, (C, C, 1, 3), jnp.float32, -bound, bound)
    b2 = jax.random.uniform(k4, (C,), jnp.float32, -bound, bound)
    g1 = jnp.ones((C,), jnp.float32); bt1 = jnp.zeros((C,), jnp.float32)
    g2 = jnp.ones((C,), jnp.float32); bt2 = jnp.zeros((C,), jnp.float32)

    torch_params = (w1_t, b1, g1, bt1, w2_t, b2, g2, bt2)

    def stack(wt):   # (Cout,Cin,1,3) -> (Cout, 3*Cin) with [co, k*C+ci] = wt[co,ci,0,k]
        return jnp.transpose(wt[:, :, 0, :], (0, 2, 1)).reshape(C, 3 * C)

    # Conv biases are intentionally dropped from the kernel params: a bias added
    # immediately before train-mode BatchNorm is exactly cancelled by mean subtraction.
    kernel_params = (stack(w1_t), g1, bt1, stack(w2_t), g2, bt2)
    return torch_params, kernel_params


def reference(x, torch_params):
    """Pure-JAX reference matching the PyTorch forward (train-mode BN, with biases)."""
    w1_t, b1, g1, bt1, w2_t, b2, g2, bt2 = torch_params

    def conv(h, w, b):
        y = jax.lax.conv_general_dilated(
            h, w, window_strides=(1, 1), padding=((0, 0), (1, 1)),
            dimension_numbers=("NCHW", "OIHW", "NCHW"))
        return y + b[None, :, None, None]

    def bn(h, g, bt):
        mean = jnp.mean(h, axis=(0, 2, 3), keepdims=True)
        var = jnp.mean((h - mean) ** 2, axis=(0, 2, 3), keepdims=True)
        return ((h - mean) * jax.lax.rsqrt(var + EPS)
                * g[None, :, None, None] + bt[None, :, None, None])

    h = jnp.maximum(bn(conv(x, w1_t, b1), g1, bt1), 0.0)
    h = bn(conv(h, w2_t, b2), g2, bt2)
    return jnp.maximum(h + x, 0.0)


if __name__ == "__main__":
    key = jax.random.PRNGKey(0)
    kx, kp = jax.random.split(key)

    N, C, H, W = 4, 4, 16, 16
    x = jax.random.normal(kx, (N, C, H, W), dtype=jnp.float32)
    torch_params, kernel_params = init_params(kp, C)

    # batch_block=2 -> (8, T) dense-sublane blocks and 2 batch blocks (exercises the
    # 'parallel' per-block partial stats); tile_lanes=128 -> 2 HW tiles (exercises the
    # sequential accumulator path).  Defaults (8192 lanes / auto batch block) are the
    # performance configuration.
    run = jax.jit(functools.partial(residual_block_pallas,
                                    tile_lanes=128, batch_block=2))
    out = jax.block_until_ready(run(x, kernel_params))

    ref = reference(x, torch_params)
    assert out.shape == (N, C, H, W), out.shape
    if not jnp.allclose(out, ref, atol=3e-4, rtol=3e-4):
        err = float(jnp.max(jnp.abs(out - ref)))
        raise AssertionError(f"Pallas kernel output mismatch vs JAX reference (max|err|={err})")

    print("KERNEL_OK")
</pallas_src>

<mosaic_0001>
module attributes {stable_mosaic.version = 11 : i64} {
  func.func @_stats1_kernel(%arg0: i32, %arg1: i32, %arg2: memref<8x128xf32, #tpu.memory_space<vmem>>, %arg3: memref<4x12xf32, #tpu.memory_space<vmem>>, %arg4: memref<8x1xf32, #tpu.memory_space<vmem>>, %arg5: memref<8x1xf32, #tpu.memory_space<vmem>>) attributes {dimension_semantics = [#tpu.dimension_semantics<parallel>, #tpu.dimension_semantics<arbitrary>], iteration_bounds = array<i64: 2, 2>, scalar_prefetch = 0 : i64, scratch_operands = 0 : i64, tpu.core_type = #tpu.core_type<tc>, window_params = [{transform_indices = @transform_0, window_bounds = array<i64: 8, 128>}, {pipeline_mode = #tpu.pipeline_mode<synchronous>, transform_indices = @transform_1, window_bounds = array<i64: 4, 12>}, {transform_indices = @transform_2, window_bounds = array<i64: 8, 1>}, {transform_indices = @transform_3, window_bounds = array<i64: 8, 1>}]} {
    %c0 = arith.constant 0 : index
    %c0_0 = arith.constant 0 : index
    %0 = vector.load %arg2[%c0, %c0_0] : memref<8x128xf32, #tpu.memory_space<vmem>>, vector<8x128xf32>
    %c0_1 = arith.constant 0 : index
    %c0_2 = arith.constant 0 : index
    %1 = vector.load %arg3[%c0_1, %c0_2] : memref<4x12xf32, #tpu.memory_space<vmem>>, vector<4x12xf32>
    %2 = tpu.iota {dimensions = array<i32: 1>} : vector<8x128xi32>
    %c16_i32 = arith.constant 16 : i32
    %c0_i32 = arith.constant 0 : i32
    %3 = arith.cmpi eq, %c16_i32, %c0_i32 : i32
    %c1_i32 = arith.constant 1 : i32
    %4 = arith.select %3, %c1_i32, %c16_i32 : i32
    %5 = vector.broadcast %4 : i32 to vector<8x128xi32>
    %6 = arith.remsi %2, %5 : vector<8x128xi32>
    %c0_i32_3 = arith.constant 0 : i32
    %7 = vector.broadcast %c0_i32_3 : i32 to vector<8x128xi32>
    %8 = arith.cmpi ne, %6, %7 : vector<8x128xi32>
    %c0_i32_4 = arith.constant 0 : i32
    %9 = vector.broadcast %c0_i32_4 : i32 to vector<8x128xi32>
    %10 = arith.cmpi slt, %6, %9 : vector<8x128xi32>
    %c0_i32_5 = arith.constant 0 : i32
    %11 = arith.cmpi slt, %4, %c0_i32_5 : i32
    %12 = vector.broadcast %11 : i1 to vector<8x128xi1>
    %13 = vector.broadcast %12 : vector<8x128xi1> to vector<8x128xi1>
    %14 = arith.xori %10, %13 : vector<8x128xi1>
    %15 = arith.andi %14, %8 : vector<8x128xi1>
    %16 = vector.broadcast %4 : i32 to vector<8x128xi32>
    %17 = arith.addi %6, %16 : vector<8x128xi32>
    %18 = arith.select %15, %17, %6 : vector<8x128xi1>, vector<8x128xi32>
    %cst = arith.constant 0.000000e+00 : f32
    %19 = vector.broadcast %cst : f32 to vector<8x1xf32>
    %c0_i32_6 = arith.constant 0 : i32
    %20 = vector.broadcast %c0_i32_6 : i32 to vector<8x128xi32>
    %21 = arith.cmpi eq, %18, %20 : vector<8x128xi32>
    %22 = vector.extract_strided_slice %0 {offsets = [0, 0], sizes = [8, 127], strides = [1, 1]} : vector<8x128xf32> to vector<8x127xf32>
    %23 = tpu.concatenate %19, %22 in 1 : vector<8x1xf32>, vector<8x127xf32> -> vector<8x128xf32>
    %cst_7 = arith.constant 0.000000e+00 : f32
    %24 = vector.broadcast %cst_7 : f32 to vector<8x128xf32>
    %25 = arith.select %21, %24, %23 : vector<8x128xi1>, vector<8x128xf32>
    %c15_i32 = arith.constant 15 : i32
    %26 = vector.broadcast %c15_i32 : i32 to vector<8x128xi32>
    %27 = arith.cmpi eq, %18, %26 : vector<8x128xi32>
    %28 = vector.extract_strided_slice %0 {offsets = [0, 1], sizes = [8, 127], strides = [1, 1]} : vector<8x128xf32> to vector<8x127xf32>
    %29 = tpu.concatenate %28, %19 in 1 : vector<8x127xf32>, vector<8x1xf32> -> vector<8x128xf32>
    %cst_8 = arith.constant 0.000000e+00 : f32
    %30 = vector.broadcast %cst_8 : f32 to vector<8x128xf32>
    %31 = arith.select %27, %30, %29 : vector<8x128xi1>, vector<8x128xf32>
    %32 = vector.extract_strided_slice %25 {offsets = [0, 0], sizes = [1, 128], strides = [1, 1]} : vector<8x128xf32> to vector<1x128xf32>
    %33 = vector.shape_cast %32 : vector<1x128xf32> to vector<1x128xf32>
    %34 = vector.broadcast %33 : vector<1x128xf32> to vector<4x128xf32>
    %35 = vector.extract_strided_slice %1 {offsets = [0, 0], sizes = [4, 1], strides = [1, 1]} : vector<4x12xf32> to vector<4x1xf32>
    %36 = vector.broadcast %35 : vector<4x1xf32> to vector<4x128xf32>
    %37 = arith.mulf %36, %34 : vector<4x128xf32>
    %38 = vector.extract_strided_slice %25 {offsets = [1, 0], sizes = [1, 128], strides = [1, 1]} : vector<8x128xf32> to vector<1x128xf32>
    %39 = vector.shape_cast %38 : vector<1x128xf32> to vector<1x128xf32>
    %40 = vector.broadcast %39 : vector<1x128xf32> to vector<4x128xf32>
    %41 = vector.extract_strided_slice %1 {offsets = [0, 1], sizes = [4, 1], strides = [1, 1]} : vector<4x12xf32> to vector<4x1xf32>
    %42 = vector.broadcast %41 : vector<4x1xf32> to vector<4x128xf32>
    %43 = arith.mulf %42, %40 : vector<4x128xf32>
    %44 = arith.addf %37, %43 : vector<4x128xf32>
    %45 = vector.extract_strided_slice %25 {offsets = [2, 0], sizes = [1, 128], strides = [1, 1]} : vector<8x128xf32> to vector<1x128xf32>
    %46 = vector.shape_cast %45 : vector<1x128xf32> to vector<1x128xf32>
    %47 = vector.broadcast %46 : vector<1x128xf32> to vector<4x128xf32>
    %48 = vector.extract_strided_slice %1 {offsets = [0, 2], sizes = [4, 1], strides = [1, 1]} : vector<4x12xf32> to vector<4x1xf32>
    %49 = vector.broadcast %48 : vector<4x1xf32> to vector<4x128xf32>
    %50 = arith.mulf %49, %47 : vector<4x128xf32>
    %51 = arith.addf %44, %50 : vector<4x128xf32>
    %52 = vector.extract_strided_slice %25 {offsets = [3, 0], sizes = [1, 128], strides = [1, 1]} : vector<8x128xf32> to vector<1x128xf32>
    %53 = vector.shape_cast %52 : vector<1x128xf32> to vector<1x128xf32>
    %54 = vector.broadcast %53 : vector<1x128xf32> to vector<4x128xf32>
    %55 = vector.extract_strided_slice %1 {offsets = [0, 3], sizes = [4, 1], strides = [1, 1]} : vector<4x12xf32> to vector<4x1xf32>
    %56 = vector.broadcast %55 : vector<4x1xf32> to vector<4x128xf32>
    %57 = arith.mulf %56, %54 : vector<4x128xf32>
    %58 = arith.addf %51, %57 : vector<4x128xf32>
    %59 = vector.extract_strided_slice %0 {offsets = [0, 0], sizes = [1, 128], strides = [1, 1]} : vector<8x128xf32> to vector<1x128xf32>
    %60 = vector.shape_cast %59 : vector<1x128xf32> to vector<1x128xf32>
    %61 = vector.broadcast %60 : vector<1x128xf32> to vector<4x128xf32>
    %62 = vector.extract_strided_slice %1 {offsets = [0, 4], sizes = [4, 1], strides = [1, 1]} : vector<4x12xf32> to vector<4x1xf32>
    %63 = vector.broadcast %62 : vector<4x1xf32> to vector<4x128xf32>
    %64 = arith.mulf %63, %61 : vector<4x128xf32>
    %65 = arith.addf %58, %64 : vector<4x128xf32>
    %66 = vector.extract_strided_slice %0 {offsets = [1, 0], sizes = [1, 128], strides = [1, 1]} : vector<8x128xf32> to vector<1x128xf32>
    %67 = vector.shape_cast %66 : vector<1x128xf32> to vector<1x128xf32>
    %68 = vector.broadcast %67 : vector<1x128xf32> to vector<4x128xf32>
    %69 = vector.extract_strided_slice %1 {offsets = [0, 5], sizes = [4, 1], strides = [1, 1]} : vector<4x12xf32> to vector<4x1xf32>
    %70 = vector.broadcast %69 : vector<4x1xf32> to vector<4x128xf32>
    %71 = arith.mulf %70, %68 : vector<4x128xf32>
    %72 = arith.addf %65, %71 : vector<4x128xf32>
    %73 = vector.extract_strided_slice %0 {offsets = [2, 0], sizes = [1, 128], strides = [1, 1]} : vector<8x128xf32> to vector<1x128xf32>
    %74 = vector.shape_cast %73 : vector<1x128xf32> to vector<1x128xf32>
    %75 = vector.broadcast %74 : vector<1x128xf32> to vector<4x128xf32>
    %76 = vector.extract_strided_slice %1 {offsets = [0, 6], sizes = [4, 1], strides = [1, 1]} : vector<4x12xf32> to vector<4x1xf32>
    %77 = vector.broadcast %76 : vector<4x1xf32> to vector<4x128xf32>
    %78 = arith.mulf %77, %75 : vector<4x128xf32>
    %79 = arith.addf %72, %78 : vector<4x128xf32>
    %80 = vector.extract_strided_slice %0 {offsets = [3, 0], sizes = [1, 128], strides = [1, 1]} : vector<8x128xf32> to vector<1x128xf32>
    %81 = vector.shape_cast %80 : vector<1x128xf32> to vector<1x128xf32>
    %82 = vector.broadcast %81 : vector<1x128xf32> to vector<4x128xf32>
    %83 = vector.extract_strided_slice %1 {offsets = [0, 7], sizes = [4, 1], strides = [1, 1]} : vector<4x12xf32> to vector<4x1xf32>
    %84 = vector.broadcast %83 : vector<4x1xf32> to vector<4x128xf32>
    %85 = arith.mulf %84, %82 : vector<4x128xf32>
    %86 = arith.addf %79, %85 : vector<4x128xf32>
    %87 = vector.extract_strided_slice %31 {offsets = [0, 0], sizes = [1, 128], strides = [1, 1]} : vector<8x128xf32> to vector<1x128xf32>
    %88 = vector.shape_cast %87 : vector<1x128xf32> to vector<1x128xf32>
    %89 = vector.broadcast %88 : vector<1x128xf32> to vector<4x128xf32>
    %90 = vector.extract_strided_slice %1 {offsets = [0, 8], sizes = [4, 1], strides = [1, 1]} : vector<4x12xf32> to vector<4x1xf32>
    %91 = vector.broadcast %90 : vector<4x1xf32> to vector<4x128xf32>
    %92 = arith.mulf %91, %89 : vector<4x128xf32>
    %93 = arith.addf %86, %92 : vector<4x128xf32>
    %94 = vector.extract_strided_slice %31 {offsets = [1, 0], sizes = [1, 128], strides = [1, 1]} : vector<8x128xf32> to vector<1x128xf32>
    %95 = vector.shape_cast %94 : vector<1x128xf32> to vector<1x128xf32>
    %96 = vector.broadcast %95 : vector<1x128xf32> to vector<4x128xf32>
    %97 = vector.extract_strided_slice %1 {offsets = [0, 9], sizes = [4, 1], strides = [1, 1]} : vector<4x12xf32> to vector<4x1xf32>
    %98 = vector.broadcast %97 : vector<4x1xf32> to vector<4x128xf32>
    %99 = arith.mulf %98, %96 : vector<4x128xf32>
    %100 = arith.addf %93, %99 : vector<4x128xf32>
    %101 = vector.extract_strided_slice %31 {offsets = [2, 0], sizes = [1, 128], strides = [1, 1]} : vector<8x128xf32> to vector<1x128xf32>
    %102 = vector.shape_cast %101 : vector<1x128xf32> to vector<1x128xf32>
    %103 = vector.broadcast %102 : vector<1x128xf32> to vector<4x128xf32>
    %104 = vector.extract_strided_slice %1 {offsets = [0, 10], sizes = [4, 1], strides = [1, 1]} : vector<4x12xf32> to vector<4x1xf32>
    %105 = vector.broadcast %104 : vector<4x1xf32> to vector<4x128xf32>
    %106 = arith.mulf %105, %103 : vector<4x128xf32>
    %107 = arith.addf %100, %106 : vector<4x128xf32>
    %108 = vector.extract_strided_slice %31 {offsets = [3, 0], sizes = [1, 128], strides = [1, 1]} : vector<8x128xf32> to vector<1x128xf32>
    %109 = vector.shape_cast %108 : vector<1x128xf32> to vector<1x128xf32>
    %110 = vector.broadcast %109 : vector<1x128xf32> to vector<4x128xf32>
    %111 = vector.extract_strided_slice %1 {offsets = [0, 11], sizes = [4, 1], strides = [1, 1]} : vector<4x12xf32> to vector<4x1xf32>
    %112 = vector.broadcast %111 : vector<4x1xf32> to vector<4x128xf32>
    %113 = arith.mulf %112, %110 : vector<4x128xf32>
    %114 = arith.addf %107, %113 : vector<4x128xf32>
    %115 = vector.extract_strided_slice %25 {offsets = [4, 0], sizes = [1, 128], strides = [1, 1]} : vector<8x128xf32> to vector<1x128xf32>
    %116 = vector.shape_cast %115 : vector<1x128xf32> to vector<1x128xf32>
    %117 = vector.broadcast %116 : vector<1x128xf32> to vector<4x128xf32>
    %118 = vector.extract_strided_slice %1 {offsets = [0, 0], sizes = [4, 1], strides = [1, 1]} : vector<4x12xf32> to vector<4x1xf32>
    %119 = vector.broadcast %118 : vector<4x1xf32> to vector<4x128xf32>
    %120 = arith.mulf %119, %117 : vector<4x128xf32>
    %121 = vector.extract_strided_slice %25 {offsets = [5, 0], sizes = [1, 128], strides = [1, 1]} : vector<8x128xf32> to vector<1x128xf32>
    %122 = vector.shape_cast %121 : vector<1x128xf32> to vector<1x128xf32>
    %123 = vector.broadcast %122 : vector<1x128xf32> to vector<4x128xf32>
    %124 = vector.extract_strided_slice %1 {offsets = [0, 1], sizes = [4, 1], strides = [1, 1]} : vector<4x12xf32> to vector<4x1xf32>
    %125 = vector.broadcast %124 : vector<4x1xf32> to vector<4x128xf32>
    %126 = arith.mulf %125, %123 : vector<4x128xf32>
    %127 = arith.addf %120, %126 : vector<4x128xf32>
    %128 = vector.extract_strided_slice %25 {offsets = [6, 0], sizes = [1, 128], strides = [1, 1]} : vector<8x128xf32> to vector<1x128xf32>
    %129 = vector.shape_cast %128 : vector<1x128xf32> to vector<1x128xf32>
    %130 = vector.broadcast %129 : vector<1x128xf32> to vector<4x128xf32>
    %131 = vector.extract_strided_slice %1 {offsets = [0, 2], sizes = [4, 1], strides = [1, 1]} : vector<4x12xf32> to vector<4x1xf32>
    %132 = vector.broadcast %131 : vector<4x1xf32> to vector<4x128xf32>
    %133 = arith.mulf %132, %130 : vector<4x128xf32>
    %134 = arith.addf %127, %133 : vector<4x128xf32>
    %135 = vector.extract_strided_slice %25 {offsets = [7, 0], sizes = [1, 128], strides = [1, 1]} : vector<8x128xf32> to vector<1x128xf32>
    %136 = vector.shape_cast %135 : vector<1x128xf32> to vector<1x128xf32>
    %137 = vector.broadcast %136 : vector<1x128xf32> to vector<4x128xf32>
    %138 = vector.extract_strided_slice %1 {offsets = [0, 3], sizes = [4, 1], strides = [1, 1]} : vector<4x12xf32> to vector<4x1xf32>
    %139 = vector.broadcast %138 : vector<4x1xf32> to vector<4x128xf32>
    %140 = arith.mulf %139, %137 : vector<4x128xf32>
    %141 = arith.addf %134, %140 : vector<4x128xf32>
    %142 = vector.extract_strided_slice %0 {offsets = [4, 0], sizes = [1, 128], strides = [1, 1]} : vector<8x128xf32> to vector<1x128xf32>
    %143 = vector.shape_cast %142 : vector<1x128xf32> to vector<1x128xf32>
    %144 = vector.broadcast %143 : vector<1x128xf32> to vector<4x128xf32>
    %145 = vector.extract_strided_slice %1 {offsets = [0, 4], sizes = [4, 1], strides = [1, 1]} : vector<4x12xf32> to vector<4x1xf32>
    %146 = vector.broadcast %145 : vector<4x1xf32> to vector<4x128xf32>
    %147 = arith.mulf %146, %144 : vector<4x128xf32>
    %148 = arith.addf %141, %147 : vector<4x128xf32>
    %149 = vector.extract_strided_slice %0 {offsets = [5, 0], sizes = [1, 128], strides = [1, 1]} : vector<8x128xf32> to vector<1x128xf32>
    %150 = vector.shape_cast %149 : vector<1x128xf32> to vector<1x128xf32>
    %151 = vector.broadcast %150 : vector<1x128xf32> to vector<4x128xf32>
    %152 = vector.extract_strided_slice %1 {offsets = [0, 5], sizes = [4, 1], strides = [1, 1]} : vector<4x12xf32> to vector<4x1xf32>
    %153 = vector.broadcast %152 : vector<4x1xf32> to vector<4x128xf32>
    %154 = arith.mulf %153, %151 : vector<4x128xf32>
    %155 = arith.addf %148, %154 : vector<4x128xf32>
    %156 = vector.extract_strided_slice %0 {offsets = [6, 0], sizes = [1, 128], strides = [1, 1]} : vector<8x128xf32> to vector<1x128xf32>
    %157 = vector.shape_cast %156 : vector<1x128xf32> to vector<1x128xf32>
    %158 = vector.broadcast %157 : vector<1x128xf32> to vector<4x128xf32>
    %159 = vector.extract_strided_slice %1 {offsets = [0, 6], sizes = [4, 1], strides = [1, 1]} : vector<4x12xf32> to vector<4x1xf32>
    %160 = vector.broadcast %159 : vector<4x1xf32> to vector<4x128xf32>
    %161 = arith.mulf %160, %158 : vector<4x128xf32>
    %162 = arith.addf %155, %161 : vector<4x128xf32>
    %163 = vector.extract_strided_slice %0 {offsets = [7, 0], sizes = [1, 128], strides = [1, 1]} : vector<8x128xf32> to vector<1x128xf32>
    %164 = vector.shape_cast %163 : vector<1x128xf32> to vector<1x128xf32>
    %165 = vector.broadcast %164 : vector<1x128xf32> to vector<4x128xf32>
    %166 = vector.extract_strided_slice %1 {offsets = [0, 7], sizes = [4, 1], strides = [1, 1]} : vector<4x12xf32> to vector<4x1xf32>
    %167 = vector.broadcast %166 : vector<4x1xf32> to vector<4x128xf32>
    %168 = arith.mulf %167, %165 : vector<4x128xf32>
    %169 = arith.addf %162, %168 : vector<4x128xf32>
    %170 = vector.extract_strided_slice %31 {offsets = [4, 0], sizes = [1, 128], strides = [1, 1]} : vector<8x128xf32> to vector<1x128xf32>
    %171 = vector.shape_cast %170 : vector<1x128xf32> to vector<1x128xf32>
    %172 = vector.broadcast %171 : vector<1x128xf32> to vector<4x128xf32>
    %173 = vector.extract_strided_slice %1 {offsets = [0, 8], sizes = [4, 1], strides = [1, 1]} : vector<4x12xf32> to vector<4x1xf32>
    %174 = vector.broadcast %173 : vector<4x1xf32> to vector<4x128xf32>
    %175 = arith.mulf %174, %172 : vector<4x128xf32>
    %176 = arith.addf %169, %175 : vector<4x128xf32>
    %177 = vector.extract_strided_slice %31 {offsets = [5, 0], sizes = [1, 128], strides = [1, 1]} : vector<8x128xf32> to vector<1x128xf32>
    %178 = vector.shape_cast %177 : vector<1x128xf32> to vector<1x128xf32>
    %179 = vector.broadcast %178 : vector<1x128xf32> to vector<4x128xf32>
    %180 = vector.extract_strided_slice %1 {offsets = [0, 9], sizes = [4, 1], strides = [1, 1]} : vector<4x12xf32> to vector<4x1xf32>
    %181 = vector.broadcast %180 : vector<4x1xf32> to vector<4x128xf32>
    %182 = arith.mulf %181, %179 : vector<4x128xf32>
    %183 = arith.addf %176, %182 : vector<4x128xf32>
    %184 = vector.extract_strided_slice %31 {offsets = [6, 0], sizes = [1, 128], strides = [1, 1]} : vector<8x128xf32> to vector<1x128xf32>
    %185 = vector.shape_cast %184 : vector<1x128xf32> to vector<1x128xf32>
    %186 = vector.broadcast %185 : vector<1x128xf32> to vector<4x128xf32>
    %187 = vector.extract_strided_slice %1 {offsets = [0, 10], sizes = [4, 1], strides = [1, 1]} : vector<4x12xf32> to vector<4x1xf32>
    %188 = vector.broadcast %187 : vector<4x1xf32> to vector<4x128xf32>
    %189 = arith.mulf %188, %186 : vector<4x128xf32>
    %190 = arith.addf %183, %189 : vector<4x128xf32>
    %191 = vector.extract_strided_slice %31 {offsets = [7, 0], sizes = [1, 128], strides = [1, 1]} : vector<8x128xf32> to vector<1x128xf32>
    %192 = vector.shape_cast %191 : vector<1x128xf32> to vector<1x128xf32>
    %193 = vector.broadcast %192 : vector<1x128xf32> to vector<4x128xf32>
    %194 = vector.extract_strided_slice %1 {offsets = [0, 11], sizes = [4, 1], strides = [1, 1]} : vector<4x12xf32> to vector<4x1xf32>
    %195 = vector.broadcast %194 : vector<4x1xf32> to vector<4x128xf32>
    %196 = arith.mulf %195, %193 : vector<4x128xf32>
    %197 = arith.addf %190, %196 : vector<4x128xf32>
    %198 = tpu.concatenate %114, %197 in 0 : vector<4x128xf32>, vector<4x128xf32> -> vector<8x128xf32>
    %c0_i32_9 = arith.constant 0 : i32
    %199 = arith.cmpi eq, %arg1, %c0_i32_9 : i32
    %200 = arith.extui %199 : i1 to i32
    %c0_i32_10 = arith.constant 0 : i32
    %201 = arith.cmpi ne, %200, %c0_i32_10 : i32
    scf.if %201 {
      %cst_21 = arith.constant 0.000000e+00 : f32
      %213 = vector.broadcast %cst_21 : f32 to vector<8x1xf32>
      %c0_22 = arith.constant 0 : index
      %c0_23 = arith.constant 0 : index
      %214 = vector.load %arg4[%c0_22, %c0_23] : memref<8x1xf32, #tpu.memory_space<vmem>>, vector<8x1xf32>
      tpu.vector_store %arg4[%c0_22, %c0_23], %213 {strides = array<i32>} : memref<8x1xf32, #tpu.memory_space<vmem>>, vector<8x1xf32>,
      %cst_24 = arith.constant 0.000000e+00 : f32
      %215 = vector.broadcast %cst_24 : f32 to vector<8x1xf32>
      %c0_25 = arith.constant 0 : index
      %c0_26 = arith.constant 0 : index
      %216 = vector.load %arg5[%c0_25, %c0_26] : memref<8x1xf32, #tpu.memory_space<vmem>>, vector<8x1xf32>
      tpu.vector_store %arg5[%c0_25, %c0_26], %215 {strides = array<i32>} : memref<8x1xf32, #tpu.memory_space<vmem>>, vector<8x1xf32>,
    } else {
    }
    %c0_11 = arith.constant 0 : index
    %c0_12 = arith.constant 0 : index
    %202 = vector.load %arg4[%c0_11, %c0_12] : memref<8x1xf32, #tpu.memory_space<vmem>>, vector<8x1xf32>
    %cst_13 = arith.constant dense<0.000000e+00> : vector<8xf32>
    %203 = vector.multi_reduction <add>, %198, %cst_13 [1] : vector<8x128xf32> to vector<8xf32>
    %204 = vector.shape_cast %203 : vector<8xf32> to vector<8x1xf32>
    %205 = arith.addf %202, %204 : vector<8x1xf32>
    %c0_14 = arith.constant 0 : index
    %c0_15 = arith.constant 0 : index
    %206 = vector.load %arg4[%c0_14, %c0_15] : memref<8x1xf32, #tpu.memory_space<vmem>>, vector<8x1xf32>
    tpu.vector_store %arg4[%c0_14, %c0_15], %205 {strides = array<i32>} : memref<8x1xf32, #tpu.memory_space<vmem>>, vector<8x1xf32>,
    %c0_16 = arith.constant 0 : index
    %c0_17 = arith.constant 0 : index
    %207 = vector.load %arg5[%c0_16, %c0_17] : memref<8x1xf32, #tpu.memory_space<vmem>>, vector<8x1xf32>
    %208 = arith.mulf %198, %198 : vector<8x128xf32>
    %cst_18 = arith.constant dense<0.000000e+00> : vector<8xf32>
    %209 = vector.multi_reduction <add>, %208, %cst_18 [1] : vector<8x128xf32> to vector<8xf32>
    %210 = vector.shape_cast %209 : vector<8xf32> to vector<8x1xf32>
    %211 = arith.addf %207, %210 : vector<8x1xf32>
    %c0_19 = arith.constant 0 : index
    %c0_20 = arith.constant 0 : index
    %212 = vector.load %arg5[%c0_19, %c0_20] : memref<8x1xf32, #tpu.memory_space<vmem>>, vector<8x1xf32>
    tpu.vector_store %arg5[%c0_19, %c0_20], %211 {strides = array<i32>} : memref<8x1xf32, #tpu.memory_space<vmem>>, vector<8x1xf32>,
    return
  }
  func.func @transform_0(%arg0: i32, %arg1: i32) -> (i32, i32) {
    %c0_i32 = arith.constant 0 : i32
    return %arg0, %arg1 : i32, i32
  }
  func.func @transform_1(%arg0: i32, %arg1: i32) -> (i32, i32) {
    %c0_i32 = arith.constant 0 : i32
    %c0_i32_0 = arith.constant 0 : i32
    %c0_i32_1 = arith.constant 0 : i32
    return %c0_i32, %c0_i32_0 : i32, i32
  }
  func.func @transform_2(%arg0: i32, %arg1: i32) -> (i32, i32) {
    %c0_i32 = arith.constant 0 : i32
    %c0_i32_0 = arith.constant 0 : i32
    return %arg0, %c0_i32 : i32, i32
  }
  func.func @transform_3(%arg0: i32, %arg1: i32) -> (i32, i32) {
    %c0_i32 = arith.constant 0 : i32
    %c0_i32_0 = arith.constant 0 : i32
    return %arg0, %c0_i32 : i32, i32
  }
}

module attributes {stable_mosaic.version = 11 : i64} {
  func.func @_stats2_kernel(%arg0: i32, %arg1: i32, %arg2: memref<8x128xf32, #tpu.memory_space<vmem>>, %arg3: memref<4x12xf32, #tpu.memory_space<vmem>>, %arg4: memref<8x1xf32, #tpu.memory_space<vmem>>, %arg5: memref<8x1xf32, #tpu.memory_space<vmem>>, %arg6: memref<4x12xf32, #tpu.memory_space<vmem>>, %arg7: memref<8x1xf32, #tpu.memory_space<vmem>>, %arg8: memref<8x1xf32, #tpu.memory_space<vmem>>) attributes {dimension_semantics = [#tpu.dimension_semantics<parallel>, #tpu.dimension_semantics<arbitrary>], iteration_bounds = array<i64: 2, 2>, scalar_prefetch = 0 : i64, scratch_operands = 0 : i64, tpu.core_type = #tpu.core_type<tc>, window_params = [{transform_indices = @transform_0, window_bounds = array<i64: 8, 128>}, {pipeline_mode = #tpu.pipeline_mode<synchronous>, transform_indices = @transform_1, window_bounds = array<i64: 4, 12>}, {transform_indices = @transform_2, window_bounds = array<i64: 8, 1>}, {transform_indices = @transform_3, window_bounds = array<i64: 8, 1>}, {pipeline_mode = #tpu.pipeline_mode<synchronous>, transform_indices = @transform_4, window_bounds = array<i64: 4, 12>}, {transform_indices = @transform_5, window_bounds = array<i64: 8, 1>}, {transform_indices = @transform_6, window_bounds = array<i64: 8, 1>}]} {
    %c0 = arith.constant 0 : index
    %c0_0 = arith.constant 0 : index
    %0 = vector.load %arg2[%c0, %c0_0] : memref<8x128xf32, #tpu.memory_space<vmem>>, vector<8x128xf32>
    %c0_1 = arith.constant 0 : index
    %c0_2 = arith.constant 0 : index
    %1 = vector.load %arg3[%c0_1, %c0_2] : memref<4x12xf32, #tpu.memory_space<vmem>>, vector<4x12xf32>
    %2 = tpu.iota {dimensions = array<i32: 1>} : vector<8x128xi32>
    %c16_i32 = arith.constant 16 : i32
    %c0_i32 = arith.constant 0 : i32
    %3 = arith.cmpi eq, %c16_i32, %c0_i32 : i32
    %c1_i32 = arith.constant 1 : i32
    %4 = arith.select %3, %c1_i32, %c16_i32 : i32
    %5 = vector.broadcast %4 : i32 to vector<8x128xi32>
    %6 = arith.remsi %2, %5 : vector<8x128xi32>
    %c0_i32_3 = arith.constant 0 : i32
    %7 = vector.broadcast %c0_i32_3 : i32 to vector<8x128xi32>
    %8 = arith.cmpi ne, %6, %7 : vector<8x128xi32>
    %c0_i32_4 = arith.constant 0 : i32
    %9 = vector.broadcast %c0_i32_4 : i32 to vector<8x128xi32>
    %10 = arith.cmpi slt, %6, %9 : vector<8x128xi32>
    %c0_i32_5 = arith.constant 0 : i32
    %11 = arith.cmpi slt, %4, %c0_i32_5 : i32
    %12 = vector.broadcast %11 : i1 to vector<8x128xi1>
    %13 = vector.broadcast %12 : vector<8x128xi1> to vector<8x128xi1>
    %14 = arith.xori %10, %13 : vector<8x128xi1>
    %15 = arith.andi %14, %8 : vector<8x128xi1>
    %16 = vector.broadcast %4 : i32 to vector<8x128xi32>
    %17 = arith.addi %6, %16 : vector<8x128xi32>
    %18 = arith.select %15, %17, %6 : vector<8x128xi1>, vector<8x128xi32>
    %cst = arith.constant 0.000000e+00 : f32
    %19 = vector.broadcast %cst : f32 to vector<8x1xf32>
    %c0_i32_6 = arith.constant 0 : i32
    %20 = vector.broadcast %c0_i32_6 : i32 to vector<8x128xi32>
    %21 = arith.cmpi eq, %18, %20 : vector<8x128xi32>
    %22 = vector.extract_strided_slice %0 {offsets = [0, 0], sizes = [8, 127], strides = [1, 1]} : vector<8x128xf32> to vector<8x127xf32>
    %23 = tpu.concatenate %19, %22 in 1 : vector<8x1xf32>, vector<8x127xf32> -> vector<8x128xf32>
    %cst_7 = arith.constant 0.000000e+00 : f32
    %24 = vector.broadcast %cst_7 : f32 to vector<8x128xf32>
    %25 = arith.select %21, %24, %23 : vector<8x128xi1>, vector<8x128xf32>
    %c15_i32 = arith.constant 15 : i32
    %26 = vector.broadcast %c15_i32 : i32 to vector<8x128xi32>
    %27 = arith.cmpi eq, %18, %26 : vector<8x128xi32>
    %28 = vector.extract_strided_slice %0 {offsets = [0, 1], sizes = [8, 127], strides = [1, 1]} : vector<8x128xf32> to vector<8x127xf32>
    %29 = tpu.concatenate %28, %19 in 1 : vector<8x127xf32>, vector<8x1xf32> -> vector<8x128xf32>
    %cst_8 = arith.constant 0.000000e+00 : f32
    %30 = vector.broadcast %cst_8 : f32 to vector<8x128xf32>
    %31 = arith.select %27, %30, %29 : vector<8x128xi1>, vector<8x128xf32>
    %32 = vector.extract_strided_slice %25 {offsets = [0, 0], sizes = [1, 128], strides = [1, 1]} : vector<8x128xf32> to vector<1x128xf32>
    %33 = vector.shape_cast %32 : vector<1x128xf32> to vector<1x128xf32>
    %34 = vector.broadcast %33 : vector<1x128xf32> to vector<4x128xf32>
    %35 = vector.extract_strided_slice %1 {offsets = [0, 0], sizes = [4, 1], strides = [1, 1]} : vector<4x12xf32> to vector<4x1xf32>
    %36 = vector.broadcast %35 : vector<4x1xf32> to vector<4x128xf32>
    %37 = arith.mulf %36, %34 : vector<4x128xf32>
    %38 = vector.extract_strided_slice %25 {offsets = [1, 0], sizes = [1, 128], strides = [1, 1]} : vector<8x128xf32> to vector<1x128xf32>
    %39 = vector.shape_cast %38 : vector<1x128xf32> to vector<1x128xf32>
    %40 = vector.broadcast %39 : vector<1x128xf32> to vector<4x128xf32>
    %41 = vector.extract_strided_slice %1 {offsets = [0, 1], sizes = [4, 1], strides = [1, 1]} : vector<4x12xf32> to vector<4x1xf32>
    %42 = vector.broadcast %41 : vector<4x1xf32> to vector<4x128xf32>
    %43 = arith.mulf %42, %40 : vector<4x128xf32>
    %44 = arith.addf %37, %43 : vector<4x128xf32>
    %45 = vector.extract_strided_slice %25 {offsets = [2, 0], sizes = [1, 128], strides = [1, 1]} : vector<8x128xf32> to vector<1x128xf32>
    %46 = vector.shape_cast %45 : vector<1x128xf32> to vector<1x128xf32>
    %47 = vector.broadcast %46 : vector<1x128xf32> to vector<4x128xf32>
    %48 = vector.extract_strided_slice %1 {offsets = [0, 2], sizes = [4, 1], strides = [1, 1]} : vector<4x12xf32> to vector<4x1xf32>
    %49 = vector.broadcast %48 : vector<4x1xf32> to vector<4x128xf32>
    %50 = arith.mulf %49, %47 : vector<4x128xf32>
    %51 = arith.addf %44, %50 : vector<4x128xf32>
    %52 = vector.extract_strided_slice %25 {offsets = [3, 0], sizes = [1, 128], strides = [1, 1]} : vector<8x128xf32> to vector<1x128xf32>
    %53 = vector.shape_cast %52 : vector<1x128xf32> to vector<1x128xf32>
    %54 = vector.broadcast %53 : vector<1x128xf32> to vector<4x128xf32>
    %55 = vector.extract_strided_slice %1 {offsets = [0, 3], sizes = [4, 1], strides = [1, 1]} : vector<4x12xf32> to vector<4x1xf32>
    %56 = vector.broadcast %55 : vector<4x1xf32> to vector<4x128xf32>
    %57 = arith.mulf %56, %54 : vector<4x128xf32>
    %58 = arith.addf %51, %57 : vector<4x128xf32>
    %59 = vector.extract_strided_slice %0 {offsets = [0, 0], sizes = [1, 128], strides = [1, 1]} : vector<8x128xf32> to vector<1x128xf32>
    %60 = vector.shape_cast %59 : vector<1x128xf32> to vector<1x128xf32>
    %61 = vector.broadcast %60 : vector<1x128xf32> to vector<4x128xf32>
    %62 = vector.extract_strided_slice %1 {offsets = [0, 4], sizes = [4, 1], strides = [1, 1]} : vector<4x12xf32> to vector<4x1xf32>
    %63 = vector.broadcast %62 : vector<4x1xf32> to vector<4x128xf32>
    %64 = arith.mulf %63, %61 : vector<4x128xf32>
    %65 = arith.addf %58, %64 : vector<4x128xf32>
    %66 = vector.extract_strided_slice %0 {offsets = [1, 0], sizes = [1, 128], strides = [1, 1]} : vector<8x128xf32> to vector<1x128xf32>
    %67 = vector.shape_cast %66 : vector<1x128xf32> to vector<1x128xf32>
    %68 = vector.broadcast %67 : vector<1x128xf32> to vector<4x128xf32>
    %69 = vector.extract_strided_slice %1 {offsets = [0, 5], sizes = [4, 1], strides = [1, 1]} : vector<4x12xf32> to vector<4x1xf32>
    %70 = vector.broadcast %69 : vector<4x1xf32> to vector<4x128xf32>
    %71 = arith.mulf %70, %68 : vector<4x128xf32>
    %72 = arith.addf %65, %71 : vector<4x128xf32>
    %73 = vector.extract_strided_slice %0 {offsets = [2, 0], sizes = [1, 128], strides = [1, 1]} : vector<8x128xf32> to vector<1x128xf32>
    %74 = vector.shape_cast %73 : vector<1x128xf32> to vector<1x128xf32>
    %75 = vector.broadcast %74 : vector<1x128xf32> to vector<4x128xf32>
    %76 = vector.extract_strided_slice %1 {offsets = [0, 6], sizes = [4, 1], strides = [1, 1]} : vector<4x12xf32> to vector<4x1xf32>
    %77 = vector.broadcast %76 : vector<4x1xf32> to vector<4x128xf32>
    %78 = arith.mulf %77, %75 : vector<4x128xf32>
    %79 = arith.addf %72, %78 : vector<4x128xf32>
    %80 = vector.extract_strided_slice %0 {offsets = [3, 0], sizes = [1, 128], strides = [1, 1]} : vector<8x128xf32> to vector<1x128xf32>
    %81 = vector.shape_cast %80 : vector<1x128xf32> to vector<1x128xf32>
    %82 = vector.broadcast %81 : vector<1x128xf32> to vector<4x128xf32>
    %83 = vector.extract_strided_slice %1 {offsets = [0, 7], sizes = [4, 1], strides = [1, 1]} : vector<4x12xf32> to vector<4x1xf32>
    %84 = vector.broadcast %83 : vector<4x1xf32> to vector<4x128xf32>
    %85 = arith.mulf %84, %82 : vector<4x128xf32>
    %86 = arith.addf %79, %85 : vector<4x128xf32>
    %87 = vector.extract_strided_slice %31 {offsets = [0, 0], sizes = [1, 128], strides = [1, 1]} : vector<8x128xf32> to vector<1x128xf32>
    %88 = vector.shape_cast %87 : vector<1x128xf32> to vector<1x128xf32>
    %89 = vector.broadcast %88 : vector<1x128xf32> to vector<4x128xf32>
    %90 = vector.extract_strided_slice %1 {offsets = [0, 8], sizes = [4, 1], strides = [1, 1]} : vector<4x12xf32> to vector<4x1xf32>
    %91 = vector.broadcast %90 : vector<4x1xf32> to vector<4x128xf32>
    %92 = arith.mulf %91, %89 : vector<4x128xf32>
    %93 = arith.addf %86, %92 : vector<4x128xf32>
    %94 = vector.extract_strided_slice %31 {offsets = [1, 0], sizes = [1, 128], strides = [1, 1]} : vector<8x128xf32> to vector<1x128xf32>
    %95 = vector.shape_cast %94 : vector<1x128xf32> to vector<1x128xf32>
    %96 = vector.broadcast %95 : vector<1x128xf32> to vector<4x128xf32>
    %97 = vector.extract_strided_slice %1 {offsets = [0, 9], sizes = [4, 1], strides = [1, 1]} : vector<4x12xf32> to vector<4x1xf32>
    %98 = vector.broadcast %97 : vector<4x1xf32> to vector<4x128xf32>
    %99 = arith.mulf %98, %96 : vector<4x128xf32>
    %100 = arith.addf %93, %99 : vector<4x128xf32>
    %101 = vector.extract_strided_slice %31 {offsets = [2, 0], sizes = [1, 128], strides = [1, 1]} : vector<8x128xf32> to vector<1x128xf32>
    %102 = vector.shape_cast %101 : vector<1x128xf32> to vector<1x128xf32>
    %103 = vector.broadcast %102 : vector<1x128xf32> to vector<4x128xf32>
    %104 = vector.extract_strided_slice %1 {offsets = [0, 10], sizes = [4, 1], strides = [1, 1]} : vector<4x12xf32> to vector<4x1xf32>
    %105 = vector.broadcast %104 : vector<4x1xf32> to vector<4x128xf32>
    %106 = arith.mulf %105, %103 : vector<4x128xf32>
    %107 = arith.addf %100, %106 : vector<4x128xf32>
    %108 = vector.extract_strided_slice %31 {offsets = [3, 0], sizes = [1, 128], strides = [1, 1]} : vector<8x128xf32> to vector<1x128xf32>
    %109 = vector.shape_cast %108 : vector<1x128xf32> to vector<1x128xf32>
    %110 = vector.broadcast %109 : vector<1x128xf32> to vector<4x128xf32>
    %111 = vector.extract_strided_slice %1 {offsets = [0, 11], sizes = [4, 1], strides = [1, 1]} : vector<4x12xf32> to vector<4x1xf32>
    %112 = vector.broadcast %111 : vector<4x1xf32> to vector<4x128xf32>
    %113 = arith.mulf %112, %110 : vector<4x128xf32>
    %114 = arith.addf %107, %113 : vector<4x128xf32>
    %115 = vector.extract_strided_slice %25 {offsets = [4, 0], sizes = [1, 128], strides = [1, 1]} : vector<8x128xf32> to vector<1x128xf32>
    %116 = vector.shape_cast %115 : vector<1x128xf32> to vector<1x128xf32>
    %117 = vector.broadcast %116 : vector<1x128xf32> to vector<4x128xf32>
    %118 = vector.extract_strided_slice %1 {offsets = [0, 0], sizes = [4, 1], strides = [1, 1]} : vector<4x12xf32> to vector<4x1xf32>
    %119 = vector.broadcast %118 : vector<4x1xf32> to vector<4x128xf32>
    %120 = arith.mulf %119, %117 : vector<4x128xf32>
    %121 = vector.extract_strided_slice %25 {offsets = [5, 0], sizes = [1, 128], strides = [1, 1]} : vector<8x128xf32> to vector<1x128xf32>
    %122 = vector.shape_cast %121 : vector<1x128xf32> to vector<1x128xf32>
    %123 = vector.broadcast %122 : vector<1x128xf32> to vector<4x128xf32>
    %124 = vector.extract_strided_slice %1 {offsets = [0, 1], sizes = [4, 1], strides = [1, 1]} : vector<4x12xf32> to vector<4x1xf32>
    %125 = vector.broadcast %124 : vector<4x1xf32> to vector<4x128xf32>
    %126 = arith.mulf %125, %123 : vector<4x128xf32>
    %127 = arith.addf %120, %126 : vector<4x128xf32>
    %128 = vector.extract_strided_slice %25 {offsets = [6, 0], sizes = [1, 128], strides = [1, 1]} : vector<8x128xf32> to vector<1x128xf32>
    %129 = vector.shape_cast %128 : vector<1x128xf32> to vector<1x128xf32>
    %130 = vector.broadcast %129 : vector<1x128xf32> to vector<4x128xf32>
    %131 = vector.extract_strided_slice %1 {offsets = [0, 2], sizes = [4, 1], strides = [1, 1]} : vector<4x12xf32> to vector<4x1xf32>
    %132 = vector.broadcast %131 : vector<4x1xf32> to vector<4x128xf32>
    %133 = arith.mulf %132, %130 : vector<4x128xf32>
    %134 = arith.addf %127, %133 : vector<4x128xf32>
    %135 = vector.extract_strided_slice %25 {offsets = [7, 0], sizes = [1, 128], strides = [1, 1]} : vector<8x128xf32> to vector<1x128xf32>
    %136 = vector.shape_cast %135 : vector<1x128xf32> to vector<1x128xf32>
    %137 = vector.broadcast %136 : vector<1x128xf32> to vector<4x128xf32>
    %138 = vector.extract_strided_slice %1 {offsets = [0, 3], sizes = [4, 1], strides = [1, 1]} : vector<4x12xf32> to vector<4x1xf32>
    %139 = vector.broadcast %138 : vector<4x1xf32> to vector<4x128xf32>
    %140 = arith.mulf %139, %137 : vector<4x128xf32>
    %141 = arith.addf %134, %140 : vector<4x128xf32>
    %142 = vector.extract_strided_slice %0 {offsets = [4, 0], sizes = [1, 128], strides = [1, 1]} : vector<8x128xf32> to vector<1x128xf32>
    %143 = vector.shape_cast %142 : vector<1x128xf32> to vector<1x128xf32>
    %144 = vector.broadcast %143 : vector<1x128xf32> to vector<4x128xf32>
    %145 = vector.extract_strided_slice %1 {offsets = [0, 4], sizes = [4, 1], strides = [1, 1]} : vector<4x12xf32> to vector<4x1xf32>
    %146 = vector.broadcast %145 : vector<4x1xf32> to vector<4x128xf32>
    %147 = arith.mulf %146, %144 : vector<4x128xf32>
    %148 = arith.addf %141, %147 : vector<4x128xf32>
    %149 = vector.extract_strided_slice %0 {offsets = [5, 0], sizes = [1, 128], strides = [1, 1]} : vector<8x128xf32> to vector<1x128xf32>
    %150 = vector.shape_cast %149 : vector<1x128xf32> to vector<1x128xf32>
    %151 = vector.broadcast %150 : vector<1x128xf32> to vector<4x128xf32>
    %152 = vector.extract_strided_slice %1 {offsets = [0, 5], sizes = [4, 1], strides = [1, 1]} : vector<4x12xf32> to vector<4x1xf32>
    %153 = vector.broadcast %152 : vector<4x1xf32> to vector<4x128xf32>
    %154 = arith.mulf %153, %151 : vector<4x128xf32>
    %155 = arith.addf %148, %154 : vector<4x128xf32>
    %156 = vector.extract_strided_slice %0 {offsets = [6, 0], sizes = [1, 128], strides = [1, 1]} : vector<8x128xf32> to vector<1x128xf32>
    %157 = vector.shape_cast %156 : vector<1x128xf32> to vector<1x128xf32>
    %158 = vector.broadcast %157 : vector<1x128xf32> to vector<4x128xf32>
    %159 = vector.extract_strided_slice %1 {offsets = [0, 6], sizes = [4, 1], strides = [1, 1]} : vector<4x12xf32> to vector<4x1xf32>
    %160 = vector.broadcast %159 : vector<4x1xf32> to vector<4x128xf32>
    %161 = arith.mulf %160, %158 : vector<4x128xf32>
    %162 = arith.addf %155, %161 : vector<4x128xf32>
    %163 = vector.extract_strided_slice %0 {offsets = [7, 0], sizes = [1, 128], strides = [1, 1]} : vector<8x128xf32> to vector<1x128xf32>
    %164 = vector.shape_cast %163 : vector<1x128xf32> to vector<1x128xf32>
    %165 = vector.broadcast %164 : vector<1x128xf32> to vector<4x128xf32>
    %166 = vector.extract_strided_slice %1 {offsets = [0, 7], sizes = [4, 1], strides = [1, 1]} : vector<4x12xf32> to vector<4x1xf32>
    %167 = vector.broadcast %166 : vector<4x1xf32> to vector<4x128xf32>
    %168 = arith.mulf %167, %165 : vector<4x128xf32>
    %169 = arith.addf %162, %168 : vector<4x128xf32>
    %170 = vector.extract_strided_slice %31 {offsets = [4, 0], sizes = [1, 128], strides = [1, 1]} : vector<8x128xf32> to vector<1x128xf32>
    %171 = vector.shape_cast %170 : vector<1x128xf32> to vector<1x128xf32>
    %172 = vector.broadcast %171 : vector<1x128xf32> to vector<4x128xf32>
    %173 = vector.extract_strided_slice %1 {offsets = [0, 8], sizes = [4, 1], strides = [1, 1]} : vector<4x12xf32> to vector<4x1xf32>
    %174 = vector.broadcast %173 : vector<4x1xf32> to vector<4x128xf32>
    %175 = arith.mulf %174, %172 : vector<4x128xf32>
    %176 = arith.addf %169, %175 : vector<4x128xf32>
    %177 = vector.extract_strided_slice %31 {offsets = [5, 0], sizes = [1, 128], strides = [1, 1]} : vector<8x128xf32> to vector<1x128xf32>
    %178 = vector.shape_cast %177 : vector<1x128xf32> to vector<1x128xf32>
    %179 = vector.broadcast %178 : vector<1x128xf32> to vector<4x128xf32>
    %180 = vector.extract_strided_slice %1 {offsets = [0, 9], sizes = [4, 1], strides = [1, 1]} : vector<4x12xf32> to vector<4x1xf32>
    %181 = vector.broadcast %180 : vector<4x1xf32> to vector<4x128xf32>
    %182 = arith.mulf %181, %179 : vector<4x128xf32>
    %183 = arith.addf %176, %182 : vector<4x128xf32>
    %184 = vector.extract_strided_slice %31 {offsets = [6, 0], sizes = [1, 128], strides = [1, 1]} : vector<8x128xf32> to vector<1x128xf32>
    %185 = vector.shape_cast %184 : vector<1x128xf32> to vector<1x128xf32>
    %186 = vector.broadcast %185 : vector<1x128xf32> to vector<4x128xf32>
    %187 = vector.extract_strided_slice %1 {offsets = [0, 10], sizes = [4, 1], strides = [1, 1]} : vector<4x12xf32> to vector<4x1xf32>
    %188 = vector.broadcast %187 : vector<4x1xf32> to vector<4x128xf32>
    %189 = arith.mulf %188, %186 : vector<4x128xf32>
    %190 = arith.addf %183, %189 : vector<4x128xf32>
    %191 = vector.extract_strided_slice %31 {offsets = [7, 0], sizes = [1, 128], strides = [1, 1]} : vector<8x128xf32> to vector<1x128xf32>
    %192 = vector.shape_cast %191 : vector<1x128xf32> to vector<1x128xf32>
    %193 = vector.broadcast %192 : vector<1x128xf32> to vector<4x128xf32>
    %194 = vector.extract_strided_slice %1 {offsets = [0, 11], sizes = [4, 1], strides = [1, 1]} : vector<4x12xf32> to vector<4x1xf32>
    %195 = vector.broadcast %194 : vector<4x1xf32> to vector<4x128xf32>
    %196 = arith.mulf %195, %193 : vector<4x128xf32>
    %197 = arith.addf %190, %196 : vector<4x128xf32>
    %198 = tpu.concatenate %114, %197 in 0 : vector<4x128xf32>, vector<4x128xf32> -> vector<8x128xf32>
    %c0_9 = arith.constant 0 : index
    %c0_10 = arith.constant 0 : index
    %199 = vector.load %arg4[%c0_9, %c0_10] : memref<8x1xf32, #tpu.memory_space<vmem>>, vector<8x1xf32>
    %200 = vector.broadcast %199 : vector<8x1xf32> to vector<8x128xf32>
    %201 = arith.mulf %198, %200 : vector<8x128xf32>
    %c0_11 = arith.constant 0 : index
    %c0_12 = arith.constant 0 : index
    %202 = vector.load %arg5[%c0_11, %c0_12] : memref<8x1xf32, #tpu.memory_space<vmem>>, vector<8x1xf32>
    %203 = vector.broadcast %202 : vector<8x1xf32> to vector<8x128xf32>
    %204 = arith.addf %201, %203 : vector<8x128xf32>
    %cst_13 = arith.constant 0.000000e+00 : f32
    %205 = vector.broadcast %cst_13 : f32 to vector<8x128xf32>
    %206 = arith.maximumf %204, %205 : vector<8x128xf32>
    %c0_14 = arith.constant 0 : index
    %c0_15 = arith.constant 0 : index
    %207 = vector.load %arg6[%c0_14, %c0_15] : memref<4x12xf32, #tpu.memory_space<vmem>>, vector<4x12xf32>
    %208 = tpu.iota {dimensions = array<i32: 1>} : vector<8x128xi32>
    %c16_i32_16 = arith.constant 16 : i32
    %c0_i32_17 = arith.constant 0 : i32
    %209 = arith.cmpi eq, %c16_i32_16, %c0_i32_17 : i32
    %c1_i32_18 = arith.constant 1 : i32
    %210 = arith.select %209, %c1_i32_18, %c16_i32_16 : i32
    %211 = vector.broadcast %210 : i32 to vector<8x128xi32>
    %212 = arith.remsi %208, %211 : vector<8x128xi32>
    %c0_i32_19 = arith.constant 0 : i32
    %213 = vector.broadcast %c0_i32_19 : i32 to vector<8x128xi32>
    %214 = arith.cmpi ne, %212, %213 : vector<8x128xi32>
    %c0_i32_20 = arith.constant 0 : i32
    %215 = vector.broadcast %c0_i32_20 : i32 to vector<8x128xi32>
    %216 = arith.cmpi slt, %212, %215 : vector<8x128xi32>
    %c0_i32_21 = arith.constant 0 : i32
    %217 = arith.cmpi slt, %210, %c0_i32_21 : i32
    %218 = vector.broadcast %217 : i1 to vector<8x128xi1>
    %219 = vector.broadcast %218 : vector<8x128xi1> to vector<8x128xi1>
    %220 = arith.xori %216, %219 : vector<8x128xi1>
    %221 = arith.andi %220, %214 : vector<8x128xi1>
    %222 = vector.broadcast %210 : i32 to vector<8x128xi32>
    %223 = arith.addi %212, %222 : vector<8x128xi32>
    %224 = arith.select %221, %223, %212 : vector<8x128xi1>, vector<8x128xi32>
    %cst_22 = arith.constant 0.000000e+00 : f32
    %225 = vector.broadcast %cst_22 : f32 to vector<8x1xf32>
    %c0_i32_23 = arith.constant 0 : i32
    %226 = vector.broadcast %c0_i32_23 : i32 to vector<8x128xi32>
    %227 = arith.cmpi eq, %224, %226 : vector<8x128xi32>
    %228 = vector.extract_strided_slice %206 {offsets = [0, 0], sizes = [8, 127], strides = [1, 1]} : vector<8x128xf32> to vector<8x127xf32>
    %229 = tpu.concatenate %225, %228 in 1 : vector<8x1xf32>, vector<8x127xf32> -> vector<8x128xf32>
    %cst_24 = arith.constant 0.000000e+00 : f32
    %230 = vector.broadcast %cst_24 : f32 to vector<8x128xf32>
    %231 = arith.select %227, %230, %229 : vector<8x128xi1>, vector<8x128xf32>
    %c15_i32_25 = arith.constant 15 : i32
    %232 = vector.broadcast %c15_i32_25 : i32 to vector<8x128xi32>
    %233 = arith.cmpi eq, %224, %232 : vector<8x128xi32>
    %234 = vector.extract_strided_slice %206 {offsets = [0, 1], sizes = [8, 127], strides = [1, 1]} : vector<8x128xf32> to vector<8x127xf32>
    %235 = tpu.concatenate %234, %225 in 1 : vector<8x127xf32>, vector<8x1xf32> -> vector<8x128xf32>
    %cst_26 = arith.constant 0.000000e+00 : f32
    %236 = vector.broadcast %cst_26 : f32 to vector<8x128xf32>
    %237 = arith.select %233, %236, %235 : vector<8x128xi1>, vector<8x128xf32>
    %238 = vector.extract_strided_slice %231 {offsets = [0, 0], sizes = [1, 128], strides = [1, 1]} : vector<8x128xf32> to vector<1x128xf32>
    %239 = vector.shape_cast %238 : vector<1x128xf32> to vector<1x128xf32>
    %240 = vector.broadcast %239 : vector<1x128xf32> to vector<4x128xf32>
    %241 = vector.extract_strided_slice %207 {offsets = [0, 0], sizes = [4, 1], strides = [1, 1]} : vector<4x12xf32> to vector<4x1xf32>
    %242 = vector.broadcast %241 : vector<4x1xf32> to vector<4x128xf32>
    %243 = arith.mulf %242, %240 : vector<4x128xf32>
    %244 = vector.extract_strided_slice %231 {offsets = [1, 0], sizes = [1, 128], strides = [1, 1]} : vector<8x128xf32> to vector<1x128xf32>
    %245 = vector.shape_cast %244 : vector<1x128xf32> to vector<1x128xf32>
    %246 = vector.broadcast %245 : vector<1x128xf32> to vector<4x128xf32>
    %247 = vector.extract_strided_slice %207 {offsets = [0, 1], sizes = [4, 1], strides = [1, 1]} : vector<4x12xf32> to vector<4x1xf32>
    %248 = vector.broadcast %247 : vector<4x1xf32> to vector<4x128xf32>
    %249 = arith.mulf %248, %246 : vector<4x128xf32>
    %250 = arith.addf %243, %249 : vector<4x128xf32>
    %251 = vector.extract_strided_slice %231 {offsets = [2, 0], sizes = [1, 128], strides = [1, 1]} : vector<8x128xf32> to vector<1x128xf32>
    %252 = vector.shape_cast %251 : vector<1x128xf32> to vector<1x128xf32>
    %253 = vector.broadcast %252 : vector<1x128xf32> to vector<4x128xf32>
    %254 = vector.extract_strided_slice %207 {offsets = [0, 2], sizes = [4, 1], strides = [1, 1]} : vector<4x12xf32> to vector<4x1xf32>
    %255 = vector.broadcast %254 : vector<4x1xf32> to vector<4x128xf32>
    %256 = arith.mulf %255, %253 : vector<4x128xf32>
    %257 = arith.addf %250, %256 : vector<4x128xf32>
    %258 = vector.extract_strided_slice %231 {offsets = [3, 0], sizes = [1, 128], strides = [1, 1]} : vector<8x128xf32> to vector<1x128xf32>
    %259 = vector.shape_cast %258 : vector<1x128xf32> to vector<1x128xf32>
    %260 = vector.broadcast %259 : vector<1x128xf32> to vector<4x128xf32>
    %261 = vector.extract_strided_slice %207 {offsets = [0, 3], sizes = [4, 1], strides = [1, 1]} : vector<4x12xf32> to vector<4x1xf32>
    %262 = vector.broadcast %261 : vector<4x1xf32> to vector<4x128xf32>
    %263 = arith.mulf %262, %260 : vector<4x128xf32>
    %264 = arith.addf %257, %263 : vector<4x128xf32>
    %265 = vector.extract_strided_slice %206 {offsets = [0, 0], sizes = [1, 128], strides = [1, 1]} : vector<8x128xf32> to vector<1x128xf32>
    %266 = vector.shape_cast %265 : vector<1x128xf32> to vector<1x128xf32>
    %267 = vector.broadcast %266 : vector<1x128xf32> to vector<4x128xf32>
    %268 = vector.extract_strided_slice %207 {offsets = [0, 4], sizes = [4, 1], strides = [1, 1]} : vector<4x12xf32> to vector<4x1xf32>
    %269 = vector.broadcast %268 : vector<4x1xf32> to vector<4x128xf32>
    %270 = arith.mulf %269, %267 : vector<4x128xf32>
    %271 = arith.addf %264, %270 : vector<4x128xf32>
    %272 = vector.extract_strided_slice %206 {offsets = [1, 0], sizes = [1, 128], strides = [1, 1]} : vector<8x128xf32> to vector<1x128xf32>
    %273 = vector.shape_cast %272 : vector<1x128xf32> to vector<1x128xf32>
    %274 = vector.broadcast %273 : vector<1x128xf32> to vector<4x128xf32>
    %275 = vector.extract_strided_slice %207 {offsets = [0, 5], sizes = [4, 1], strides = [1, 1]} : vector<4x12xf32> to vector<4x1xf32>
    %276 = vector.broadcast %275 : vector<4x1xf32> to vector<4x128xf32>
    %277 = arith.mulf %276, %274 : vector<4x128xf32>
    %278 = arith.addf %271, %277 : vector<4x128xf32>
    %279 = vector.extract_strided_slice %206 {offsets = [2, 0], sizes = [1, 128], strides = [1, 1]} : vector<8x128xf32> to vector<1x128xf32>
    %280 = vector.shape_cast %279 : vector<1x128xf32> to vector<1x128xf32>
    %281 = vector.broadcast %280 : vector<1x128xf32> to vector<4x128xf32>
    %282 = vector.extract_strided_slice %207 {offsets = [0, 6], sizes = [4, 1], strides = [1, 1]} : vector<4x12xf32> to vector<4x1xf32>
    %283 = vector.broadcast %282 : vector<4x1xf32> to vector<4x128xf32>
    %284 = arith.mulf %283, %281 : vector<4x128xf32>
    %285 = arith.addf %278, %284 : vector<4x128xf32>
    %286 = vector.extract_strided_slice %206 {offsets = [3, 0], sizes = [1, 128], strides = [1, 1]} : vector<8x128xf32> to vector<1x128xf32>
    %287 = vector.shape_cast %286 : vector<1x128xf32> to vector<1x128xf32>
    %288 = vector.broadcast %287 : vector<1x128xf32> to vector<4x128xf32>
    %289 = vector.extract_strided_slice %207 {offsets = [0, 7], sizes = [4, 1], strides = [1, 1]} : vector<4x12xf32> to vector<4x1xf32>
    %290 = vector.broadcast %289 : vector<4x1xf32> to vector<4x128xf32>
    %291 = arith.mulf %290, %288 : vector<4x128xf32>
    %292 = arith.addf %285, %291 : vector<4x128xf32>
    %293 = vector.extract_strided_slice %237 {offsets = [0, 0], sizes = [1, 128], strides = [1, 1]} : vector<8x128xf32> to vector<1x128xf32>
    %294 = vector.shape_cast %293 : vector<1x128xf32> to vector<1x128xf32>
    %295 = vector.broadcast %294 : vector<1x128xf32> to vector<4x128xf32>
    %296 = vector.extract_strided_slice %207 {offsets = [0, 8], sizes = [4, 1], strides = [1, 1]} : vector<4x12xf32> to vector<4x1xf32>
    %297 = vector.broadcast %296 : vector<4x1xf32> to vector<4x128xf32>
    %298 = arith.mulf %297, %295 : vector<4x128xf32>
    %299 = arith.addf %292, %298 : vector<4x128xf32>
    %300 = vector.extract_strided_slice %237 {offsets = [1, 0], sizes = [1, 128], strides = [1, 1]} : vector<8x128xf32> to vector<1x128xf32>
    %301 = vector.shape_cast %300 : vector<1x128xf32> to vector<1x128xf32>
    %302 = vector.broadcast %301 : vector<1x128xf32> to vector<4x128xf32>
    %303 = vector.extract_strided_slice %207 {offsets = [0, 9], sizes = [4, 1], strides = [1, 1]} : vector<4x12xf32> to vector<4x1xf32>
    %304 = vector.broadcast %303 : vector<4x1xf32> to vector<4x128xf32>
    %305 = arith.mulf %304, %302 : vector<4x128xf32>
    %306 = arith.addf %299, %305 : vector<4x128xf32>
    %307 = vector.extract_strided_slice %237 {offsets = [2, 0], sizes = [1, 128], strides = [1, 1]} : vector<8x128xf32> to vector<1x128xf32>
    %308 = vector.shape_cast %307 : vector<1x128xf32> to vector<1x128xf32>
    %309 = vector.broadcast %308 : vector<1x128xf32> to vector<4x128xf32>
    %310 = vector.extract_strided_slice %207 {offsets = [0, 10], sizes = [4, 1], strides = [1, 1]} : vector<4x12xf32> to vector<4x1xf32>
    %311 = vector.broadcast %310 : vector<4x1xf32> to vector<4x128xf32>
    %312 = arith.mulf %311, %309 : vector<4x128xf32>
    %313 = arith.addf %306, %312 : vector<4x128xf32>
    %314 = vector.extract_strided_slice %237 {offsets = [3, 0], sizes = [1, 128], strides = [1, 1]} : vector<8x128xf32> to vector<1x128xf32>
    %315 = vector.shape_cast %314 : vector<1x128xf32> to vector<1x128xf32>
    %316 = vector.broadcast %315 : vector<1x128xf32> to vector<4x128xf32>
    %317 = vector.extract_strided_slice %207 {offsets = [0, 11], sizes = [4, 1], strides = [1, 1]} : vector<4x12xf32> to vector<4x1xf32>
    %318 = vector.broadcast %317 : vector<4x1xf32> to vector<4x128xf32>
    %319 = arith.mulf %318, %316 : vector<4x128xf32>
    %320 = arith.addf %313, %319 : vector<4x128xf32>
    %321 = vector.extract_strided_slice %231 {offsets = [4, 0], sizes = [1, 128], strides = [1, 1]} : vector<8x128xf32> to vector<1x128xf32>
    %322 = vector.shape_cast %321 : vector<1x128xf32> to vector<1x128xf32>
    %323 = vector.broadcast %322 : vector<1x128xf32> to vector<4x128xf32>
    %324 = vector.extract_strided_slice %207 {offsets = [0, 0], sizes = [4, 1], strides = [1, 1]} : vector<4x12xf32> to vector<4x1xf32>
    %325 = vector.broadcast %324 : vector<4x1xf32> to vector<4x128xf32>
    %326 = arith.mulf %325, %323 : vector<4x128xf32>
    %327 = vector.extract_strided_slice %231 {offsets = [5, 0], sizes = [1, 128], strides = [1, 1]} : vector<8x128xf32> to vector<1x128xf32>
    %328 = vector.shape_cast %327 : vector<1x128xf32> to vector<1x128xf32>
    %329 = vector.broadcast %328 : vector<1x128xf32> to vector<4x128xf32>
    %330 = vector.extract_strided_slice %207 {offsets = [0, 1], sizes = [4, 1], strides = [1, 1]} : vector<4x12xf32> to vector<4x1xf32>
    %331 = vector.broadcast %330 : vector<4x1xf32> to vector<4x128xf32>
    %332 = arith.mulf %331, %329 : vector<4x128xf32>
    %333 = arith.addf %326, %332 : vector<4x128xf32>
    %334 = vector.extract_strided_slice %231 {offsets = [6, 0], sizes = [1, 128], strides = [1, 1]} : vector<8x128xf32> to vector<1x128xf32>
    %335 = vector.shape_cast %334 : vector<1x128xf32> to vector<1x128xf32>
    %336 = vector.broadcast %335 : vector<1x128xf32> to vector<4x128xf32>
    %337 = vector.extract_strided_slice %207 {offsets = [0, 2], sizes = [4, 1], strides = [1, 1]} : vector<4x12xf32> to vector<4x1xf32>
    %338 = vector.broadcast %337 : vector<4x1xf32> to vector<4x128xf32>
    %339 = arith.mulf %338, %336 : vector<4x128xf32>
    %340 = arith.addf %333, %339 : vector<4x128xf32>
    %341 = vector.extract_strided_slice %231 {offsets = [7, 0], sizes = [1, 128], strides = [1, 1]} : vector<8x128xf32> to vector<1x128xf32>
    %342 = vector.shape_cast %341 : vector<1x128xf32> to vector<1x128xf32>
    %343 = vector.broadcast %342 : vector<1x128xf32> to vector<4x128xf32>
    %344 = vector.extract_strided_slice %207 {offsets = [0, 3], sizes = [4, 1], strides = [1, 1]} : vector<4x12xf32> to vector<4x1xf32>
    %345 = vector.broadcast %344 : vector<4x1xf32> to vector<4x128xf32>
    %346 = arith.mulf %345, %343 : vector<4x128xf32>
    %347 = arith.addf %340, %346 : vector<4x128xf32>
    %348 = vector.extract_strided_slice %206 {offsets = [4, 0], sizes = [1, 128], strides = [1, 1]} : vector<8x128xf32> to vector<1x128xf32>
    %349 = vector.shape_cast %348 : vector<1x128xf32> to vector<1x128xf32>
    %350 = vector.broadcast %349 : vector<1x128xf32> to vector<4x128xf32>
    %351 = vector.extract_strided_slice %207 {offsets = [0, 4], sizes = [4, 1], strides = [1, 1]} : vector<4x12xf32> to vector<4x1xf32>
    %352 = vector.broadcast %351 : vector<4x1xf32> to vector<4x128xf32>
    %353 = arith.mulf %352, %350 : vector<4x128xf32>
    %354 = arith.addf %347, %353 : vector<4x128xf32>
    %355 = vector.extract_strided_slice %206 {offsets = [5, 0], sizes = [1, 128], strides = [1, 1]} : vector<8x128xf32> to vector<1x128xf32>
    %356 = vector.shape_cast %355 : vector<1x128xf32> to vector<1x128xf32>
    %357 = vector.broadcast %356 : vector<1x128xf32> to vector<4x128xf32>
    %358 = vector.extract_strided_slice %207 {offsets = [0, 5], sizes = [4, 1], strides = [1, 1]} : vector<4x12xf32> to vector<4x1xf32>
    %359 = vector.broadcast %358 : vector<4x1xf32> to vector<4x128xf32>
    %360 = arith.mulf %359, %357 : vector<4x128xf32>
    %361 = arith.addf %354, %360 : vector<4x128xf32>
    %362 = vector.extract_strided_slice %206 {offsets = [6, 0], sizes = [1, 128], strides = [1, 1]} : vector<8x128xf32> to vector<1x128xf32>
    %363 = vector.shape_cast %362 : vector<1x128xf32> to vector<1x128xf32>
    %364 = vector.broadcast %363 : vector<1x128xf32> to vector<4x128xf32>
    %365 = vector.extract_strided_slice %207 {offsets = [0, 6], sizes = [4, 1], strides = [1, 1]} : vector<4x12xf32> to vector<4x1xf32>
    %366 = vector.broadcast %365 : vector<4x1xf32> to vector<4x128xf32>
    %367 = arith.mulf %366, %364 : vector<4x128xf32>
    %368 = arith.addf %361, %367 : vector<4x128xf32>
    %369 = vector.extract_strided_slice %206 {offsets = [7, 0], sizes = [1, 128], strides = [1, 1]} : vector<8x128xf32> to vector<1x128xf32>
    %370 = vector.shape_cast %369 : vector<1x128xf32> to vector<1x128xf32>
    %371 = vector.broadcast %370 : vector<1x128xf32> to vector<4x128xf32>
    %372 = vector.extract_strided_slice %207 {offsets = [0, 7], sizes = [4, 1], strides = [1, 1]} : vector<4x12xf32> to vector<4x1xf32>
    %373 = vector.broadcast %372 : vector<4x1xf32> to vector<4x128xf32>
    %374 = arith.mulf %373, %371 : vector<4x128xf32>
    %375 = arith.addf %368, %374 : vector<4x128xf32>
    %376 = vector.extract_strided_slice %237 {offsets = [4, 0], sizes = [1, 128], strides = [1, 1]} : vector<8x128xf32> to vector<1x128xf32>
    %377 = vector.shape_cast %376 : vector<1x128xf32> to vector<1x128xf32>
    %378 = vector.broadcast %377 : vector<1x128xf32> to vector<4x128xf32>
    %379 = vector.extract_strided_slice %207 {offsets = [0, 8], sizes = [4, 1], strides = [1, 1]} : vector<4x12xf32> to vector<4x1xf32>
    %380 = vector.broadcast %379 : vector<4x1xf32> to vector<4x128xf32>
    %381 = arith.mulf %380, %378 : vector<4x128xf32>
    %382 = arith.addf %375, %381 : vector<4x128xf32>
    %383 = vector.extract_strided_slice %237 {offsets = [5, 0], sizes = [1, 128], strides = [1, 1]} : vector<8x128xf32> to vector<1x128xf32>
    %384 = vector.shape_cast %383 : vector<1x128xf32> to vector<1x128xf32>
    %385 = vector.broadcast %384 : vector<1x128xf32> to vector<4x128xf32>
    %386 = vector.extract_strided_slice %207 {offsets = [0, 9], sizes = [4, 1], strides = [1, 1]} : vector<4x12xf32> to vector<4x1xf32>
    %387 = vector.broadcast %386 : vector<4x1xf32> to vector<4x128xf32>
    %388 = arith.mulf %387, %385 : vector<4x128xf32>
    %389 = arith.addf %382, %388 : vector<4x128xf32>
    %390 = vector.extract_strided_slice %237 {offsets = [6, 0], sizes = [1, 128], strides = [1, 1]} : vector<8x128xf32> to vector<1x128xf32>
    %391 = vector.shape_cast %390 : vector<1x128xf32> to vector<1x128xf32>
    %392 = vector.broadcast %391 : vector<1x128xf32> to vector<4x128xf32>
    %393 = vector.extract_strided_slice %207 {offsets = [0, 10], sizes = [4, 1], strides = [1, 1]} : vector<4x12xf32> to vector<4x1xf32>
    %394 = vector.broadcast %393 : vector<4x1xf32> to vector<4x128xf32>
    %395 = arith.mulf %394, %392 : vector<4x128xf32>
    %396 = arith.addf %389, %395 : vector<4x128xf32>
    %397 = vector.extract_strided_slice %237 {offsets = [7, 0], sizes = [1, 128], strides = [1, 1]} : vector<8x128xf32> to vector<1x128xf32>
    %398 = vector.shape_cast %397 : vector<1x128xf32> to vector<1x128xf32>
    %399 = vector.broadcast %398 : vector<1x128xf32> to vector<4x128xf32>
    %400 = vector.extract_strided_slice %207 {offsets = [0, 11], sizes = [4, 1], strides = [1, 1]} : vector<4x12xf32> to vector<4x1xf32>
    %401 = vector.broadcast %400 : vector<4x1xf32> to vector<4x128xf32>
    %402 = arith.mulf %401, %399 : vector<4x128xf32>
    %403 = arith.addf %396, %402 : vector<4x128xf32>
    %404 = tpu.concatenate %320, %403 in 0 : vector<4x128xf32>, vector<4x128xf32> -> vector<8x128xf32>
    %c0_i32_27 = arith.constant 0 : i32
    %405 = arith.cmpi eq, %arg1, %c0_i32_27 : i32
    %406 = arith.extui %405 : i1 to i32
    %c0_i32_28 = arith.constant 0 : i32
    %407 = arith.cmpi ne, %406, %c0_i32_28 : i32
    scf.if %407 {
      %cst_39 = arith.constant 0.000000e+00 : f32
      %419 = vector.broadcast %cst_39 : f32 to vector<8x1xf32>
      %c0_40 = arith.constant 0 : index
      %c0_41 = arith.constant 0 : index
      %420 = vector.load %arg7[%c0_40, %c0_41] : memref<8x1xf32, #tpu.memory_space<vmem>>, vector<8x1xf32>
      tpu.vector_store %arg7[%c0_40, %c0_41], %419 {strides = array<i32>} : memref<8x1xf32, #tpu.memory_space<vmem>>, vector<8x1xf32>,
      %cst_42 = arith.constant 0.000000e+00 : f32
      %421 = vector.broadcast %cst_42 : f32 to vector<8x1xf32>
      %c0_43 = arith.constant 0 : index
      %c0_44 = arith.constant 0 : index
      %422 = vector.load %arg8[%c0_43, %c0_44] : memref<8x1xf32, #tpu.memory_space<vmem>>, vector<8x1xf32>
      tpu.vector_store %arg8[%c0_43, %c0_44], %421 {strides = array<i32>} : memref<8x1xf32, #tpu.memory_space<vmem>>, vector<8x1xf32>,
    } else {
    }
    %c0_29 = arith.constant 0 : index
    %c0_30 = arith.constant 0 : index
    %408 = vector.load %arg7[%c0_29, %c0_30] : memref<8x1xf32, #tpu.memory_space<vmem>>, vector<8x1xf32>
    %cst_31 = arith.constant dense<0.000000e+00> : vector<8xf32>
    %409 = vector.multi_reduction <add>, %404, %cst_31 [1] : vector<8x128xf32> to vector<8xf32>
    %410 = vector.shape_cast %409 : vector<8xf32> to vector<8x1xf32>
    %411 = arith.addf %408, %410 : vector<8x1xf32>
    %c0_32 = arith.constant 0 : index
    %c0_33 = arith.constant 0 : index
    %412 = vector.load %arg7[%c0_32, %c0_33] : memref<8x1xf32, #tpu.memory_space<vmem>>, vector<8x1xf32>
    tpu.vector_store %arg7[%c0_32, %c0_33], %411 {strides = array<i32>} : memref<8x1xf32, #tpu.memory_space<vmem>>, vector<8x1xf32>,
    %c0_34 = arith.constant 0 : index
    %c0_35 = arith.constant 0 : index
    %413 = vector.load %arg8[%c0_34, %c0_35] : memref<8x1xf32, #tpu.memory_space<vmem>>, vector<8x1xf32>
    %414 = arith.mulf %404, %404 : vector<8x128xf32>
    %cst_36 = arith.constant dense<0.000000e+00> : vector<8xf32>
    %415 = vector.multi_reduction <add>, %414, %cst_36 [1] : vector<8x128xf32> to vector<8xf32>
    %416 = vector.shape_cast %415 : vector<8xf32> to vector<8x1xf32>
    %417 = arith.addf %413, %416 : vector<8x1xf32>
    %c0_37 = arith.constant 0 : index
    %c0_38 = arith.constant 0 : index
    %418 = vector.load %arg8[%c0_37, %c0_38] : memref<8x1xf32, #tpu.memory_space<vmem>>, vector<8x1xf32>
    tpu.vector_store %arg8[%c0_37, %c0_38], %417 {strides = array<i32>} : memref<8x1xf32, #tpu.memory_space<vmem>>, vector<8x1xf32>,
    return
  }
  func.func @transform_0(%arg0: i32, %arg1: i32) -> (i32, i32) {
    %c0_i32 = arith.constant 0 : i32
    return %arg0, %arg1 : i32, i32
  }
  func.func @transform_1(%arg0: i32, %arg1: i32) -> (i32, i32) {
    %c0_i32 = arith.constant 0 : i32
    %c0_i32_0 = arith.constant 0 : i32
    %c0_i32_1 = arith.constant 0 : i32
    return %c0_i32, %c0_i32_0 : i32, i32
  }
  func.func @transform_2(%arg0: i32, %arg1: i32) -> (i32, i32) {
    %c0_i32 = arith.constant 0 : i32
    %c0_i32_0 = arith.constant 0 : i32
    return %arg0, %c0_i32 : i32, i32
  }
  func.func @transform_3(%arg0: i32, %arg1: i32) -> (i32, i32) {
    %c0_i32 = arith.constant 0 : i32
    %c0_i32_0 = arith.constant 0 : i32
    return %arg0, %c0_i32 : i32, i32
  }
  func.func @transform_4(%arg0: i32, %arg1: i32) -> (i32, i32) {
    %c0_i32 = arith.constant 0 : i32
    %c0_i32_0 = arith.constant 0 : i32
    %c0_i32_1 = arith.constant 0 : i32
    return %c0_i32, %c0_i32_0 : i32, i32
  }
  func.func @transform_5(%arg0: i32, %arg1: i32) -> (i32, i32) {
    %c0_i32 = arith.constant 0 : i32
    %c0_i32_0 = arith.constant 0 : i32
    return %arg0, %c0_i32 : i32, i32
  }
  func.func @transform_6(%arg0: i32, %arg1: i32) -> (i32, i32) {
    %c0_i32 = arith.constant 0 : i32
    %c0_i32_0 = arith.constant 0 : i32
    return %arg0, %c0_i32 : i32, i32
  }
}

module attributes {stable_mosaic.version = 11 : i64} {
  func.func @_output_kernel(%arg0: i32, %arg1: i32, %arg2: memref<8x128xf32, #tpu.memory_space<vmem>>, %arg3: memref<4x12xf32, #tpu.memory_space<vmem>>, %arg4: memref<8x1xf32, #tpu.memory_space<vmem>>, %arg5: memref<8x1xf32, #tpu.memory_space<vmem>>, %arg6: memref<4x12xf32, #tpu.memory_space<vmem>>, %arg7: memref<8x1xf32, #tpu.memory_space<vmem>>, %arg8: memref<8x1xf32, #tpu.memory_space<vmem>>, %arg9: memref<8x128xf32, #tpu.memory_space<vmem>>) attributes {dimension_semantics = [#tpu.dimension_semantics<parallel>, #tpu.dimension_semantics<parallel>], iteration_bounds = array<i64: 2, 2>, scalar_prefetch = 0 : i64, scratch_operands = 0 : i64, tpu.core_type = #tpu.core_type<tc>, window_params = [{transform_indices = @transform_0, window_bounds = array<i64: 8, 128>}, {pipeline_mode = #tpu.pipeline_mode<synchronous>, transform_indices = @transform_1, window_bounds = array<i64: 4, 12>}, {transform_indices = @transform_2, window_bounds = array<i64: 8, 1>}, {transform_indices = @transform_3, window_bounds = array<i64: 8, 1>}, {pipeline_mode = #tpu.pipeline_mode<synchronous>, transform_indices = @transform_4, window_bounds = array<i64: 4, 12>}, {transform_indices = @transform_5, window_bounds = array<i64: 8, 1>}, {transform_indices = @transform_6, window_bounds = array<i64: 8, 1>}, {transform_indices = @transform_7, window_bounds = array<i64: 8, 128>}]} {
    %c0 = arith.constant 0 : index
    %c0_0 = arith.constant 0 : index
    %0 = vector.load %arg2[%c0, %c0_0] : memref<8x128xf32, #tpu.memory_space<vmem>>, vector<8x128xf32>
    %c0_1 = arith.constant 0 : index
    %c0_2 = arith.constant 0 : index
    %1 = vector.load %arg3[%c0_1, %c0_2] : memref<4x12xf32, #tpu.memory_space<vmem>>, vector<4x12xf32>
    %2 = tpu.iota {dimensions = array<i32: 1>} : vector<8x128xi32>
    %c16_i32 = arith.constant 16 : i32
    %c0_i32 = arith.constant 0 : i32
    %3 = arith.cmpi eq, %c16_i32, %c0_i32 : i32
    %c1_i32 = arith.constant 1 : i32
    %4 = arith.select %3, %c1_i32, %c16_i32 : i32
    %5 = vector.broadcast %4 : i32 to vector<8x128xi32>
    %6 = arith.remsi %2, %5 : vector<8x128xi32>
    %c0_i32_3 = arith.constant 0 : i32
    %7 = vector.broadcast %c0_i32_3 : i32 to vector<8x128xi32>
    %8 = arith.cmpi ne, %6, %7 : vector<8x128xi32>
    %c0_i32_4 = arith.constant 0 : i32
    %9 = vector.broadcast %c0_i32_4 : i32 to vector<8x128xi32>
    %10 = arith.cmpi slt, %6, %9 : vector<8x128xi32>
    %c0_i32_5 = arith.constant 0 : i32
    %11 = arith.cmpi slt, %4, %c0_i32_5 : i32
    %12 = vector.broadcast %11 : i1 to vector<8x128xi1>
    %13 = vector.broadcast %12 : vector<8x128xi1> to vector<8x128xi1>
    %14 = arith.xori %10, %13 : vector<8x128xi1>
    %15 = arith.andi %14, %8 : vector<8x128xi1>
    %16 = vector.broadcast %4 : i32 to vector<8x128xi32>
    %17 = arith.addi %6, %16 : vector<8x128xi32>
    %18 = arith.select %15, %17, %6 : vector<8x128xi1>, vector<8x128xi32>
    %cst = arith.constant 0.000000e+00 : f32
    %19 = vector.broadcast %cst : f32 to vector<8x1xf32>
    %c0_i32_6 = arith.constant 0 : i32
    %20 = vector.broadcast %c0_i32_6 : i32 to vector<8x128xi32>
    %21 = arith.cmpi eq, %18, %20 : vector<8x128xi32>
    %22 = vector.extract_strided_slice %0 {offsets = [0, 0], sizes = [8, 127], strides = [1, 1]} : vector<8x128xf32> to vector<8x127xf32>
    %23 = tpu.concatenate %19, %22 in 1 : vector<8x1xf32>, vector<8x127xf32> -> vector<8x128xf32>
    %cst_7 = arith.constant 0.000000e+00 : f32
    %24 = vector.broadcast %cst_7 : f32 to vector<8x128xf32>
    %25 = arith.select %21, %24, %23 : vector<8x128xi1>, vector<8x128xf32>
    %c15_i32 = arith.constant 15 : i32
    %26 = vector.broadcast %c15_i32 : i32 to vector<8x128xi32>
    %27 = arith.cmpi eq, %18, %26 : vector<8x128xi32>
    %28 = vector.extract_strided_slice %0 {offsets = [0, 1], sizes = [8, 127], strides = [1, 1]} : vector<8x128xf32> to vector<8x127xf32>
    %29 = tpu.concatenate %28, %19 in 1 : vector<8x127xf32>, vector<8x1xf32> -> vector<8x128xf32>
    %cst_8 = arith.constant 0.000000e+00 : f32
    %30 = vector.broadcast %cst_8 : f32 to vector<8x128xf32>
    %31 = arith.select %27, %30, %29 : vector<8x128xi1>, vector<8x128xf32>
    %32 = vector.extract_strided_slice %25 {offsets = [0, 0], sizes = [1, 128], strides = [1, 1]} : vector<8x128xf32> to vector<1x128xf32>
    %33 = vector.shape_cast %32 : vector<1x128xf32> to vector<1x128xf32>
    %34 = vector.broadcast %33 : vector<1x128xf32> to vector<4x128xf32>
    %35 = vector.extract_strided_slice %1 {offsets = [0, 0], sizes = [4, 1], strides = [1, 1]} : vector<4x12xf32> to vector<4x1xf32>
    %36 = vector.broadcast %35 : vector<4x1xf32> to vector<4x128xf32>
    %37 = arith.mulf %36, %34 : vector<4x128xf32>
    %38 = vector.extract_strided_slice %25 {offsets = [1, 0], sizes = [1, 128], strides = [1, 1]} : vector<8x128xf32> to vector<1x128xf32>
    %39 = vector.shape_cast %38 : vector<1x128xf32> to vector<1x128xf32>
    %40 = vector.broadcast %39 : vector<1x128xf32> to vector<4x128xf32>
    %41 = vector.extract_strided_slice %1 {offsets = [0, 1], sizes = [4, 1], strides = [1, 1]} : vector<4x12xf32> to vector<4x1xf32>
    %42 = vector.broadcast %41 : vector<4x1xf32> to vector<4x128xf32>
    %43 = arith.mulf %42, %40 : vector<4x128xf32>
    %44 = arith.addf %37, %43 : vector<4x128xf32>
    %45 = vector.extract_strided_slice %25 {offsets = [2, 0], sizes = [1, 128], strides = [1, 1]} : vector<8x128xf32> to vector<1x128xf32>
    %46 = vector.shape_cast %45 : vector<1x128xf32> to vector<1x128xf32>
    %47 = vector.broadcast %46 : vector<1x128xf32> to vector<4x128xf32>
    %48 = vector.extract_strided_slice %1 {offsets = [0, 2], sizes = [4, 1], strides = [1, 1]} : vector<4x12xf32> to vector<4x1xf32>
    %49 = vector.broadcast %48 : vector<4x1xf32> to vector<4x128xf32>
    %50 = arith.mulf %49, %47 : vector<4x128xf32>
    %51 = arith.addf %44, %50 : vector<4x128xf32>
    %52 = vector.extract_strided_slice %25 {offsets = [3, 0], sizes = [1, 128], strides = [1, 1]} : vector<8x128xf32> to vector<1x128xf32>
    %53 = vector.shape_cast %52 : vector<1x128xf32> to vector<1x128xf32>
    %54 = vector.broadcast %53 : vector<1x128xf32> to vector<4x128xf32>
    %55 = vector.extract_strided_slice %1 {offsets = [0, 3], sizes = [4, 1], strides = [1, 1]} : vector<4x12xf32> to vector<4x1xf32>
    %56 = vector.broadcast %55 : vector<4x1xf32> to vector<4x128xf32>
    %57 = arith.mulf %56, %54 : vector<4x128xf32>
    %58 = arith.addf %51, %57 : vector<4x128xf32>
    %59 = vector.extract_strided_slice %0 {offsets = [0, 0], sizes = [1, 128], strides = [1, 1]} : vector<8x128xf32> to vector<1x128xf32>
    %60 = vector.shape_cast %59 : vector<1x128xf32> to vector<1x128xf32>
    %61 = vector.broadcast %60 : vector<1x128xf32> to vector<4x128xf32>
    %62 = vector.extract_strided_slice %1 {offsets = [0, 4], sizes = [4, 1], strides = [1, 1]} : vector<4x12xf32> to vector<4x1xf32>
    %63 = vector.broadcast %62 : vector<4x1xf32> to vector<4x128xf32>
    %64 = arith.mulf %63, %61 : vector<4x128xf32>
    %65 = arith.addf %58, %64 : vector<4x128xf32>
    %66 = vector.extract_strided_slice %0 {offsets = [1, 0], sizes = [1, 128], strides = [1, 1]} : vector<8x128xf32> to vector<1x128xf32>
    %67 = vector.shape_cast %66 : vector<1x128xf32> to vector<1x128xf32>
    %68 = vector.broadcast %67 : vector<1x128xf32> to vector<4x128xf32>
    %69 = vector.extract_strided_slice %1 {offsets = [0, 5], sizes = [4, 1], strides = [1, 1]} : vector<4x12xf32> to vector<4x1xf32>
    %70 = vector.broadcast %69 : vector<4x1xf32> to vector<4x128xf32>
    %71 = arith.mulf %70, %68 : vector<4x128xf32>
    %72 = arith.addf %65, %71 : vector<4x128xf32>
    %73 = vector.extract_strided_slice %0 {offsets = [2, 0], sizes = [1, 128], strides = [1, 1]} : vector<8x128xf32> to vector<1x128xf32>
    %74 = vector.shape_cast %73 : vector<1x128xf32> to vector<1x128xf32>
    %75 = vector.broadcast %74 : vector<1x128xf32> to vector<4x128xf32>
    %76 = vector.extract_strided_slice %1 {offsets = [0, 6], sizes = [4, 1], strides = [1, 1]} : vector<4x12xf32> to vector<4x1xf32>
    %77 = vector.broadcast %76 : vector<4x1xf32> to vector<4x128xf32>
    %78 = arith.mulf %77, %75 : vector<4x128xf32>
    %79 = arith.addf %72, %78 : vector<4x128xf32>
    %80 = vector.extract_strided_slice %0 {offsets = [3, 0], sizes = [1, 128], strides = [1, 1]} : vector<8x128xf32> to vector<1x128xf32>
    %81 = vector.shape_cast %80 : vector<1x128xf32> to vector<1x128xf32>
    %82 = vector.broadcast %81 : vector<1x128xf32> to vector<4x128xf32>
    %83 = vector.extract_strided_slice %1 {offsets = [0, 7], sizes = [4, 1], strides = [1, 1]} : vector<4x12xf32> to vector<4x1xf32>
    %84 = vector.broadcast %83 : vector<4x1xf32> to vector<4x128xf32>
    %85 = arith.mulf %84, %82 : vector<4x128xf32>
    %86 = arith.addf %79, %85 : vector<4x128xf32>
    %87 = vector.extract_strided_slice %31 {offsets = [0, 0], sizes = [1, 128], strides = [1, 1]} : vector<8x128xf32> to vector<1x128xf32>
    %88 = vector.shape_cast %87 : vector<1x128xf32> to vector<1x128xf32>
    %89 = vector.broadcast %88 : vector<1x128xf32> to vector<4x128xf32>
    %90 = vector.extract_strided_slice %1 {offsets = [0, 8], sizes = [4, 1], strides = [1, 1]} : vector<4x12xf32> to vector<4x1xf32>
    %91 = vector.broadcast %90 : vector<4x1xf32> to vector<4x128xf32>
    %92 = arith.mulf %91, %89 : vector<4x128xf32>
    %93 = arith.addf %86, %92 : vector<4x128xf32>
    %94 = vector.extract_strided_slice %31 {offsets = [1, 0], sizes = [1, 128], strides = [1, 1]} : vector<8x128xf32> to vector<1x128xf32>
    %95 = vector.shape_cast %94 : vector<1x128xf32> to vector<1x128xf32>
    %96 = vector.broadcast %95 : vector<1x128xf32> to vector<4x128xf32>
    %97 = vector.extract_strided_slice %1 {offsets = [0, 9], sizes = [4, 1], strides = [1, 1]} : vector<4x12xf32> to vector<4x1xf32>
    %98 = vector.broadcast %97 : vector<4x1xf32> to vector<4x128xf32>
    %99 = arith.mulf %98, %96 : vector<4x128xf32>
    %100 = arith.addf %93, %99 : vector<4x128xf32>
    %101 = vector.extract_strided_slice %31 {offsets = [2, 0], sizes = [1, 128], strides = [1, 1]} : vector<8x128xf32> to vector<1x128xf32>
    %102 = vector.shape_cast %101 : vector<1x128xf32> to vector<1x128xf32>
    %103 = vector.broadcast %102 : vector<1x128xf32> to vector<4x128xf32>
    %104 = vector.extract_strided_slice %1 {offsets = [0, 10], sizes = [4, 1], strides = [1, 1]} : vector<4x12xf32> to vector<4x1xf32>
    %105 = vector.broadcast %104 : vector<4x1xf32> to vector<4x128xf32>
    %106 = arith.mulf %105, %103 : vector<4x128xf32>
    %107 = arith.addf %100, %106 : vector<4x128xf32>
    %108 = vector.extract_strided_slice %31 {offsets = [3, 0], sizes = [1, 128], strides = [1, 1]} : vector<8x128xf32> to vector<1x128xf32>
    %109 = vector.shape_cast %108 : vector<1x128xf32> to vector<1x128xf32>
    %110 = vector.broadcast %109 : vector<1x128xf32> to vector<4x128xf32>
    %111 = vector.extract_strided_slice %1 {offsets = [0, 11], sizes = [4, 1], strides = [1, 1]} : vector<4x12xf32> to vector<4x1xf32>
    %112 = vector.broadcast %111 : vector<4x1xf32> to vector<4x128xf32>
    %113 = arith.mulf %112, %110 : vector<4x128xf32>
    %114 = arith.addf %107, %113 : vector<4x128xf32>
    %115 = vector.extract_strided_slice %25 {offsets = [4, 0], sizes = [1, 128], strides = [1, 1]} : vector<8x128xf32> to vector<1x128xf32>
    %116 = vector.shape_cast %115 : vector<1x128xf32> to vector<1x128xf32>
    %117 = vector.broadcast %116 : vector<1x128xf32> to vector<4x128xf32>
    %118 = vector.extract_strided_slice %1 {offsets = [0, 0], sizes = [4, 1], strides = [1, 1]} : vector<4x12xf32> to vector<4x1xf32>
    %119 = vector.broadcast %118 : vector<4x1xf32> to vector<4x128xf32>
    %120 = arith.mulf %119, %117 : vector<4x128xf32>
    %121 = vector.extract_strided_slice %25 {offsets = [5, 0], sizes = [1, 128], strides = [1, 1]} : vector<8x128xf32> to vector<1x128xf32>
    %122 = vector.shape_cast %121 : vector<1x128xf32> to vector<1x128xf32>
    %123 = vector.broadcast %122 : vector<1x128xf32> to vector<4x128xf32>
    %124 = vector.extract_strided_slice %1 {offsets = [0, 1], sizes = [4, 1], strides = [1, 1]} : vector<4x12xf32> to vector<4x1xf32>
    %125 = vector.broadcast %124 : vector<4x1xf32> to vector<4x128xf32>
    %126 = arith.mulf %125, %123 : vector<4x128xf32>
    %127 = arith.addf %120, %126 : vector<4x128xf32>
    %128 = vector.extract_strided_slice %25 {offsets = [6, 0], sizes = [1, 128], strides = [1, 1]} : vector<8x128xf32> to vector<1x128xf32>
    %129 = vector.shape_cast %128 : vector<1x128xf32> to vector<1x128xf32>
    %130 = vector.broadcast %129 : vector<1x128xf32> to vector<4x128xf32>
    %131 = vector.extract_strided_slice %1 {offsets = [0, 2], sizes = [4, 1], strides = [1, 1]} : vector<4x12xf32> to vector<4x1xf32>
    %132 = vector.broadcast %131 : vector<4x1xf32> to vector<4x128xf32>
    %133 = arith.mulf %132, %130 : vector<4x128xf32>
    %134 = arith.addf %127, %133 : vector<4x128xf32>
    %135 = vector.extract_strided_slice %25 {offsets = [7, 0], sizes = [1, 128], strides = [1, 1]} : vector<8x128xf32> to vector<1x128xf32>
    %136 = vector.shape_cast %135 : vector<1x128xf32> to vector<1x128xf32>
    %137 = vector.broadcast %136 : vector<1x128xf32> to vector<4x128xf32>
    %138 = vector.extract_strided_slice %1 {offsets = [0, 3], sizes = [4, 1], strides = [1, 1]} : vector<4x12xf32> to vector<4x1xf32>
    %139 = vector.broadcast %138 : vector<4x1xf32> to vector<4x128xf32>
    %140 = arith.mulf %139, %137 : vector<4x128xf32>
    %141 = arith.addf %134, %140 : vector<4x128xf32>
    %142 = vector.extract_strided_slice %0 {offsets = [4, 0], sizes = [1, 128], strides = [1, 1]} : vector<8x128xf32> to vector<1x128xf32>
    %143 = vector.shape_cast %142 : vector<1x128xf32> to vector<1x128xf32>
    %144 = vector.broadcast %143 : vector<1x128xf32> to vector<4x128xf32>
    %145 = vector.extract_strided_slice %1 {offsets = [0, 4], sizes = [4, 1], strides = [1, 1]} : vector<4x12xf32> to vector<4x1xf32>
    %146 = vector.broadcast %145 : vector<4x1xf32> to vector<4x128xf32>
    %147 = arith.mulf %146, %144 : vector<4x128xf32>
    %148 = arith.addf %141, %147 : vector<4x128xf32>
    %149 = vector.extract_strided_slice %0 {offsets = [5, 0], sizes = [1, 128], strides = [1, 1]} : vector<8x128xf32> to vector<1x128xf32>
    %150 = vector.shape_cast %149 : vector<1x128xf32> to vector<1x128xf32>
    %151 = vector.broadcast %150 : vector<1x128xf32> to vector<4x128xf32>
    %152 = vector.extract_strided_slice %1 {offsets = [0, 5], sizes = [4, 1], strides = [1, 1]} : vector<4x12xf32> to vector<4x1xf32>
    %153 = vector.broadcast %152 : vector<4x1xf32> to vector<4x128xf32>
    %154 = arith.mulf %153, %151 : vector<4x128xf32>
    %155 = arith.addf %148, %154 : vector<4x128xf32>
    %156 = vector.extract_strided_slice %0 {offsets = [6, 0], sizes = [1, 128], strides = [1, 1]} : vector<8x128xf32> to vector<1x128xf32>
    %157 = vector.shape_cast %156 : vector<1x128xf32> to vector<1x128xf32>
    %158 = vector.broadcast %157 : vector<1x128xf32> to vector<4x128xf32>
    %159 = vector.extract_strided_slice %1 {offsets = [0, 6], sizes = [4, 1], strides = [1, 1]} : vector<4x12xf32> to vector<4x1xf32>
    %160 = vector.broadcast %159 : vector<4x1xf32> to vector<4x128xf32>
    %161 = arith.mulf %160, %158 : vector<4x128xf32>
    %162 = arith.addf %155, %161 : vector<4x128xf32>
    %163 = vector.extract_strided_slice %0 {offsets = [7, 0], sizes = [1, 128], strides = [1, 1]} : vector<8x128xf32> to vector<1x128xf32>
    %164 = vector.shape_cast %163 : vector<1x128xf32> to vector<1x128xf32>
    %165 = vector.broadcast %164 : vector<1x128xf32> to vector<4x128xf32>
    %166 = vector.extract_strided_slice %1 {offsets = [0, 7], sizes = [4, 1], strides = [1, 1]} : vector<4x12xf32> to vector<4x1xf32>
    %167 = vector.broadcast %166 : vector<4x1xf32> to vector<4x128xf32>
    %168 = arith.mulf %167, %165 : vector<4x128xf32>
    %169 = arith.addf %162, %168 : vector<4x128xf32>
    %170 = vector.extract_strided_slice %31 {offsets = [4, 0], sizes = [1, 128], strides = [1, 1]} : vector<8x128xf32> to vector<1x128xf32>
    %171 = vector.shape_cast %170 : vector<1x128xf32> to vector<1x128xf32>
    %172 = vector.broadcast %171 : vector<1x128xf32> to vector<4x128xf32>
    %173 = vector.extract_strided_slice %1 {offsets = [0, 8], sizes = [4, 1], strides = [1, 1]} : vector<4x12xf32> to vector<4x1xf32>
    %174 = vector.broadcast %173 : vector<4x1xf32> to vector<4x128xf32>
    %175 = arith.mulf %174, %172 : vector<4x128xf32>
    %176 = arith.addf %169, %175 : vector<4x128xf32>
    %177 = vector.extract_strided_slice %31 {offsets = [5, 0], sizes = [1, 128], strides = [1, 1]} : vector<8x128xf32> to vector<1x128xf32>
    %178 = vector.shape_cast %177 : vector<1x128xf32> to vector<1x128xf32>
    %179 = vector.broadcast %178 : vector<1x128xf32> to vector<4x128xf32>
    %180 = vector.extract_strided_slice %1 {offsets = [0, 9], sizes = [4, 1], strides = [1, 1]} : vector<4x12xf32> to vector<4x1xf32>
    %181 = vector.broadcast %180 : vector<4x1xf32> to vector<4x128xf32>
    %182 = arith.mulf %181, %179 : vector<4x128xf32>
    %183 = arith.addf %176, %182 : vector<4x128xf32>
    %184 = vector.extract_strided_slice %31 {offsets = [6, 0], sizes = [1, 128], strides = [1, 1]} : vector<8x128xf32> to vector<1x128xf32>
    %185 = vector.shape_cast %184 : vector<1x128xf32> to vector<1x128xf32>
    %186 = vector.broadcast %185 : vector<1x128xf32> to vector<4x128xf32>
    %187 = vector.extract_strided_slice %1 {offsets = [0, 10], sizes = [4, 1], strides = [1, 1]} : vector<4x12xf32> to vector<4x1xf32>
    %188 = vector.broadcast %187 : vector<4x1xf32> to vector<4x128xf32>
    %189 = arith.mulf %188, %186 : vector<4x128xf32>
    %190 = arith.addf %183, %189 : vector<4x128xf32>
    %191 = vector.extract_strided_slice %31 {offsets = [7, 0], sizes = [1, 128], strides = [1, 1]} : vector<8x128xf32> to vector<1x128xf32>
    %192 = vector.shape_cast %191 : vector<1x128xf32> to vector<1x128xf32>
    %193 = vector.broadcast %192 : vector<1x128xf32> to vector<4x128xf32>
    %194 = vector.extract_strided_slice %1 {offsets = [0, 11], sizes = [4, 1], strides = [1, 1]} : vector<4x12xf32> to vector<4x1xf32>
    %195 = vector.broadcast %194 : vector<4x1xf32> to vector<4x128xf32>
    %196 = arith.mulf %195, %193 : vector<4x128xf32>
    %197 = arith.addf %190, %196 : vector<4x128xf32>
    %198 = tpu.concatenate %114, %197 in 0 : vector<4x128xf32>, vector<4x128xf32> -> vector<8x128xf32>
    %c0_9 = arith.constant 0 : index
    %c0_10 = arith.constant 0 : index
    %199 = vector.load %arg4[%c0_9, %c0_10] : memref<8x1xf32, #tpu.memory_space<vmem>>, vector<8x1xf32>
    %200 = vector.broadcast %199 : vector<8x1xf32> to vector<8x128xf32>
    %201 = arith.mulf %198, %200 : vector<8x128xf32>
    %c0_11 = arith.constant 0 : index
    %c0_12 = arith.constant 0 : index
    %202 = vector.load %arg5[%c0_11, %c0_12] : memref<8x1xf32, #tpu.memory_space<vmem>>, vector<8x1xf32>
    %203 = vector.broadcast %202 : vector<8x1xf32> to vector<8x128xf32>
    %204 = arith.addf %201, %203 : vector<8x128xf32>
    %cst_13 = arith.constant 0.000000e+00 : f32
    %205 = vector.broadcast %cst_13 : f32 to vector<8x128xf32>
    %206 = arith.maximumf %204, %205 : vector<8x128xf32>
    %c0_14 = arith.constant 0 : index
    %c0_15 = arith.constant 0 : index
    %207 = vector.load %arg6[%c0_14, %c0_15] : memref<4x12xf32, #tpu.memory_space<vmem>>, vector<4x12xf32>
    %208 = tpu.iota {dimensions = array<i32: 1>} : vector<8x128xi32>
    %c16_i32_16 = arith.constant 16 : i32
    %c0_i32_17 = arith.constant 0 : i32
    %209 = arith.cmpi eq, %c16_i32_16, %c0_i32_17 : i32
    %c1_i32_18 = arith.constant 1 : i32
    %210 = arith.select %209, %c1_i32_18, %c16_i32_16 : i32
    %211 = vector.broadcast %210 : i32 to vector<8x128xi32>
    %212 = arith.remsi %208, %211 : vector<8x128xi32>
    %c0_i32_19 = arith.constant 0 : i32
    %213 = vector.broadcast %c0_i32_19 : i32 to vector<8x128xi32>
    %214 = arith.cmpi ne, %212, %213 : vector<8x128xi32>
    %c0_i32_20 = arith.constant 0 : i32
    %215 = vector.broadcast %c0_i32_20 : i32 to vector<8x128xi32>
    %216 = arith.cmpi slt, %212, %215 : vector<8x128xi32>
    %c0_i32_21 = arith.constant 0 : i32
    %217 = arith.cmpi slt, %210, %c0_i32_21 : i32
    %218 = vector.broadcast %217 : i1 to vector<8x128xi1>
    %219 = vector.broadcast %218 : vector<8x128xi1> to vector<8x128xi1>
    %220 = arith.xori %216, %219 : vector<8x128xi1>
    %221 = arith.andi %220, %214 : vector<8x128xi1>
    %222 = vector.broadcast %210 : i32 to vector<8x128xi32>
    %223 = arith.addi %212, %222 : vector<8x128xi32>
    %224 = arith.select %221, %223, %212 : vector<8x128xi1>, vector<8x128xi32>
    %cst_22 = arith.constant 0.000000e+00 : f32
    %225 = vector.broadcast %cst_22 : f32 to vector<8x1xf32>
    %c0_i32_23 = arith.constant 0 : i32
    %226 = vector.broadcast %c0_i32_23 : i32 to vector<8x128xi32>
    %227 = arith.cmpi eq, %224, %226 : vector<8x128xi32>
    %228 = vector.extract_strided_slice %206 {offsets = [0, 0], sizes = [8, 127], strides = [1, 1]} : vector<8x128xf32> to vector<8x127xf32>
    %229 = tpu.concatenate %225, %228 in 1 : vector<8x1xf32>, vector<8x127xf32> -> vector<8x128xf32>
    %cst_24 = arith.constant 0.000000e+00 : f32
    %230 = vector.broadcast %cst_24 : f32 to vector<8x128xf32>
    %231 = arith.select %227, %230, %229 : vector<8x128xi1>, vector<8x128xf32>
    %c15_i32_25 = arith.constant 15 : i32
    %232 = vector.broadcast %c15_i32_25 : i32 to vector<8x128xi32>
    %233 = arith.cmpi eq, %224, %232 : vector<8x128xi32>
    %234 = vector.extract_strided_slice %206 {offsets = [0, 1], sizes = [8, 127], strides = [1, 1]} : vector<8x128xf32> to vector<8x127xf32>
    %235 = tpu.concatenate %234, %225 in 1 : vector<8x127xf32>, vector<8x1xf32> -> vector<8x128xf32>
    %cst_26 = arith.constant 0.000000e+00 : f32
    %236 = vector.broadcast %cst_26 : f32 to vector<8x128xf32>
    %237 = arith.select %233, %236, %235 : vector<8x128xi1>, vector<8x128xf32>
    %238 = vector.extract_strided_slice %231 {offsets = [0, 0], sizes = [1, 128], strides = [1, 1]} : vector<8x128xf32> to vector<1x128xf32>
    %239 = vector.shape_cast %238 : vector<1x128xf32> to vector<1x128xf32>
    %240 = vector.broadcast %239 : vector<1x128xf32> to vector<4x128xf32>
    %241 = vector.extract_strided_slice %207 {offsets = [0, 0], sizes = [4, 1], strides = [1, 1]} : vector<4x12xf32> to vector<4x1xf32>
    %242 = vector.broadcast %241 : vector<4x1xf32> to vector<4x128xf32>
    %243 = arith.mulf %242, %240 : vector<4x128xf32>
    %244 = vector.extract_strided_slice %231 {offsets = [1, 0], sizes = [1, 128], strides = [1, 1]} : vector<8x128xf32> to vector<1x128xf32>
    %245 = vector.shape_cast %244 : vector<1x128xf32> to vector<1x128xf32>
    %246 = vector.broadcast %245 : vector<1x128xf32> to vector<4x128xf32>
    %247 = vector.extract_strided_slice %207 {offsets = [0, 1], sizes = [4, 1], strides = [1, 1]} : vector<4x12xf32> to vector<4x1xf32>
    %248 = vector.broadcast %247 : vector<4x1xf32> to vector<4x128xf32>
    %249 = arith.mulf %248, %246 : vector<4x128xf32>
    %250 = arith.addf %243, %249 : vector<4x128xf32>
    %251 = vector.extract_strided_slice %231 {offsets = [2, 0], sizes = [1, 128], strides = [1, 1]} : vector<8x128xf32> to vector<1x128xf32>
    %252 = vector.shape_cast %251 : vector<1x128xf32> to vector<1x128xf32>
    %253 = vector.broadcast %252 : vector<1x128xf32> to vector<4x128xf32>
    %254 = vector.extract_strided_slice %207 {offsets = [0, 2], sizes = [4, 1], strides = [1, 1]} : vector<4x12xf32> to vector<4x1xf32>
    %255 = vector.broadcast %254 : vector<4x1xf32> to vector<4x128xf32>
    %256 = arith.mulf %255, %253 : vector<4x128xf32>
    %257 = arith.addf %250, %256 : vector<4x128xf32>
    %258 = vector.extract_strided_slice %231 {offsets = [3, 0], sizes = [1, 128], strides = [1, 1]} : vector<8x128xf32> to vector<1x128xf32>
    %259 = vector.shape_cast %258 : vector<1x128xf32> to vector<1x128xf32>
    %260 = vector.broadcast %259 : vector<1x128xf32> to vector<4x128xf32>
    %261 = vector.extract_strided_slice %207 {offsets = [0, 3], sizes = [4, 1], strides = [1, 1]} : vector<4x12xf32> to vector<4x1xf32>
    %262 = vector.broadcast %261 : vector<4x1xf32> to vector<4x128xf32>
    %263 = arith.mulf %262, %260 : vector<4x128xf32>
    %264 = arith.addf %257, %263 : vector<4x128xf32>
    %265 = vector.extract_strided_slice %206 {offsets = [0, 0], sizes = [1, 128], strides = [1, 1]} : vector<8x128xf32> to vector<1x128xf32>
    %266 = vector.shape_cast %265 : vector<1x128xf32> to vector<1x128xf32>
    %267 = vector.broadcast %266 : vector<1x128xf32> to vector<4x128xf32>
    %268 = vector.extract_strided_slice %207 {offsets = [0, 4], sizes = [4, 1], strides = [1, 1]} : vector<4x12xf32> to vector<4x1xf32>
    %269 = vector.broadcast %268 : vector<4x1xf32> to vector<4x128xf32>
    %270 = arith.mulf %269, %267 : vector<4x128xf32>
    %271 = arith.addf %264, %270 : vector<4x128xf32>
    %272 = vector.extract_strided_slice %206 {offsets = [1, 0], sizes = [1, 128], strides = [1, 1]} : vector<8x128xf32> to vector<1x128xf32>
    %273 = vector.shape_cast %272 : vector<1x128xf32> to vector<1x128xf32>
    %274 = vector.broadcast %273 : vector<1x128xf32> to vector<4x128xf32>
    %275 = vector.extract_strided_slice %207 {offsets = [0, 5], sizes = [4, 1], strides = [1, 1]} : vector<4x12xf32> to vector<4x1xf32>
    %276 = vector.broadcast %275 : vector<4x1xf32> to vector<4x128xf32>
    %277 = arith.mulf %276, %274 : vector<4x128xf32>
    %278 = arith.addf %271, %277 : vector<4x128xf32>
    %279 = vector.extract_strided_slice %206 {offsets = [2, 0], sizes = [1, 128], strides = [1, 1]} : vector<8x128xf32> to vector<1x128xf32>
    %280 = vector.shape_cast %279 : vector<1x128xf32> to vector<1x128xf32>
    %281 = vector.broadcast %280 : vector<1x128xf32> to vector<4x128xf32>
    %282 = vector.extract_strided_slice %207 {offsets = [0, 6], sizes = [4, 1], strides = [1, 1]} : vector<4x12xf32> to vector<4x1xf32>
    %283 = vector.broadcast %282 : vector<4x1xf32> to vector<4x128xf32>
    %284 = arith.mulf %283, %281 : vector<4x128xf32>
    %285 = arith.addf %278, %284 : vector<4x128xf32>
    %286 = vector.extract_strided_slice %206 {offsets = [3, 0], sizes = [1, 128], strides = [1, 1]} : vector<8x128xf32> to vector<1x128xf32>
    %287 = vector.shape_cast %286 : vector<1x128xf32> to vector<1x128xf32>
    %288 = vector.broadcast %287 : vector<1x128xf32> to vector<4x128xf32>
    %289 = vector.extract_strided_slice %207 {offsets = [0, 7], sizes = [4, 1], strides = [1, 1]} : vector<4x12xf32> to vector<4x1xf32>
    %290 = vector.broadcast %289 : vector<4x1xf32> to vector<4x128xf32>
    %291 = arith.mulf %290, %288 : vector<4x128xf32>
    %292 = arith.addf %285, %291 : vector<4x128xf32>
    %293 = vector.extract_strided_slice %237 {offsets = [0, 0], sizes = [1, 128], strides = [1, 1]} : vector<8x128xf32> to vector<1x128xf32>
    %294 = vector.shape_cast %293 : vector<1x128xf32> to vector<1x128xf32>
    %295 = vector.broadcast %294 : vector<1x128xf32> to vector<4x128xf32>
    %296 = vector.extract_strided_slice %207 {offsets = [0, 8], sizes = [4, 1], strides = [1, 1]} : vector<4x12xf32> to vector<4x1xf32>
    %297 = vector.broadcast %296 : vector<4x1xf32> to vector<4x128xf32>
    %298 = arith.mulf %297, %295 : vector<4x128xf32>
    %299 = arith.addf %292, %298 : vector<4x128xf32>
    %300 = vector.extract_strided_slice %237 {offsets = [1, 0], sizes = [1, 128], strides = [1, 1]} : vector<8x128xf32> to vector<1x128xf32>
    %301 = vector.shape_cast %300 : vector<1x128xf32> to vector<1x128xf32>
    %302 = vector.broadcast %301 : vector<1x128xf32> to vector<4x128xf32>
    %303 = vector.extract_strided_slice %207 {offsets = [0, 9], sizes = [4, 1], strides = [1, 1]} : vector<4x12xf32> to vector<4x1xf32>
    %304 = vector.broadcast %303 : vector<4x1xf32> to vector<4x128xf32>
    %305 = arith.mulf %304, %302 : vector<4x128xf32>
    %306 = arith.addf %299, %305 : vector<4x128xf32>
    %307 = vector.extract_strided_slice %237 {offsets = [2, 0], sizes = [1, 128], strides = [1, 1]} : vector<8x128xf32> to vector<1x128xf32>
    %308 = vector.shape_cast %307 : vector<1x128xf32> to vector<1x128xf32>
    %309 = vector.broadcast %308 : vector<1x128xf32> to vector<4x128xf32>
    %310 = vector.extract_strided_slice %207 {offsets = [0, 10], sizes = [4, 1], strides = [1, 1]} : vector<4x12xf32> to vector<4x1xf32>
    %311 = vector.broadcast %310 : vector<4x1xf32> to vector<4x128xf32>
    %312 = arith.mulf %311, %309 : vector<4x128xf32>
    %313 = arith.addf %306, %312 : vector<4x128xf32>
    %314 = vector.extract_strided_slice %237 {offsets = [3, 0], sizes = [1, 128], strides = [1, 1]} : vector<8x128xf32> to vector<1x128xf32>
    %315 = vector.shape_cast %314 : vector<1x128xf32> to vector<1x128xf32>
    %316 = vector.broadcast %315 : vector<1x128xf32> to vector<4x128xf32>
    %317 = vector.extract_strided_slice %207 {offsets = [0, 11], sizes = [4, 1], strides = [1, 1]} : vector<4x12xf32> to vector<4x1xf32>
    %318 = vector.broadcast %317 : vector<4x1xf32> to vector<4x128xf32>
    %319 = arith.mulf %318, %316 : vector<4x128xf32>
    %320 = arith.addf %313, %319 : vector<4x128xf32>
    %321 = vector.extract_strided_slice %231 {offsets = [4, 0], sizes = [1, 128], strides = [1, 1]} : vector<8x128xf32> to vector<1x128xf32>
    %322 = vector.shape_cast %321 : vector<1x128xf32> to vector<1x128xf32>
    %323 = vector.broadcast %322 : vector<1x128xf32> to vector<4x128xf32>
    %324 = vector.extract_strided_slice %207 {offsets = [0, 0], sizes = [4, 1], strides = [1, 1]} : vector<4x12xf32> to vector<4x1xf32>
    %325 = vector.broadcast %324 : vector<4x1xf32> to vector<4x128xf32>
    %326 = arith.mulf %325, %323 : vector<4x128xf32>
    %327 = vector.extract_strided_slice %231 {offsets = [5, 0], sizes = [1, 128], strides = [1, 1]} : vector<8x128xf32> to vector<1x128xf32>
    %328 = vector.shape_cast %327 : vector<1x128xf32> to vector<1x128xf32>
    %329 = vector.broadcast %328 : vector<1x128xf32> to vector<4x128xf32>
    %330 = vector.extract_strided_slice %207 {offsets = [0, 1], sizes = [4, 1], strides = [1, 1]} : vector<4x12xf32> to vector<4x1xf32>
    %331 = vector.broadcast %330 : vector<4x1xf32> to vector<4x128xf32>
    %332 = arith.mulf %331, %329 : vector<4x128xf32>
    %333 = arith.addf %326, %332 : vector<4x128xf32>
    %334 = vector.extract_strided_slice %231 {offsets = [6, 0], sizes = [1, 128], strides = [1, 1]} : vector<8x128xf32> to vector<1x128xf32>
    %335 = vector.shape_cast %334 : vector<1x128xf32> to vector<1x128xf32>
    %336 = vector.broadcast %335 : vector<1x128xf32> to vector<4x128xf32>
    %337 = vector.extract_strided_slice %207 {offsets = [0, 2], sizes = [4, 1], strides = [1, 1]} : vector<4x12xf32> to vector<4x1xf32>
    %338 = vector.broadcast %337 : vector<4x1xf32> to vector<4x128xf32>
    %339 = arith.mulf %338, %336 : vector<4x128xf32>
    %340 = arith.addf %333, %339 : vector<4x128xf32>
    %341 = vector.extract_strided_slice %231 {offsets = [7, 0], sizes = [1, 128], strides = [1, 1]} : vector<8x128xf32> to vector<1x128xf32>
    %342 = vector.shape_cast %341 : vector<1x128xf32> to vector<1x128xf32>
    %343 = vector.broadcast %342 : vector<1x128xf32> to vector<4x128xf32>
    %344 = vector.extract_strided_slice %207 {offsets = [0, 3], sizes = [4, 1], strides = [1, 1]} : vector<4x12xf32> to vector<4x1xf32>
    %345 = vector.broadcast %344 : vector<4x1xf32> to vector<4x128xf32>
    %346 = arith.mulf %345, %343 : vector<4x128xf32>
    %347 = arith.addf %340, %346 : vector<4x128xf32>
    %348 = vector.extract_strided_slice %206 {offsets = [4, 0], sizes = [1, 128], strides = [1, 1]} : vector<8x128xf32> to vector<1x128xf32>
    %349 = vector.shape_cast %348 : vector<1x128xf32> to vector<1x128xf32>
    %350 = vector.broadcast %349 : vector<1x128xf32> to vector<4x128xf32>
    %351 = vector.extract_strided_slice %207 {offsets = [0, 4], sizes = [4, 1], strides = [1, 1]} : vector<4x12xf32> to vector<4x1xf32>
    %352 = vector.broadcast %351 : vector<4x1xf32> to vector<4x128xf32>
    %353 = arith.mulf %352, %350 : vector<4x128xf32>
    %354 = arith.addf %347, %353 : vector<4x128xf32>
    %355 = vector.extract_strided_slice %206 {offsets = [5, 0], sizes = [1, 128], strides = [1, 1]} : vector<8x128xf32> to vector<1x128xf32>
    %356 = vector.shape_cast %355 : vector<1x128xf32> to vector<1x128xf32>
    %357 = vector.broadcast %356 : vector<1x128xf32> to vector<4x128xf32>
    %358 = vector.extract_strided_slice %207 {offsets = [0, 5], sizes = [4, 1], strides = [1, 1]} : vector<4x12xf32> to vector<4x1xf32>
    %359 = vector.broadcast %358 : vector<4x1xf32> to vector<4x128xf32>
    %360 = arith.mulf %359, %357 : vector<4x128xf32>
    %361 = arith.addf %354, %360 : vector<4x128xf32>
    %362 = vector.extract_strided_slice %206 {offsets = [6, 0], sizes = [1, 128], strides = [1, 1]} : vector<8x128xf32> to vector<1x128xf32>
    %363 = vector.shape_cast %362 : vector<1x128xf32> to vector<1x128xf32>
    %364 = vector.broadcast %363 : vector<1x128xf32> to vector<4x128xf32>
    %365 = vector.extract_strided_slice %207 {offsets = [0, 6], sizes = [4, 1], strides = [1, 1]} : vector<4x12xf32> to vector<4x1xf32>
    %366 = vector.broadcast %365 : vector<4x1xf32> to vector<4x128xf32>
    %367 = arith.mulf %366, %364 : vector<4x128xf32>
    %368 = arith.addf %361, %367 : vector<4x128xf32>
    %369 = vector.extract_strided_slice %206 {offsets = [7, 0], sizes = [1, 128], strides = [1, 1]} : vector<8x128xf32> to vector<1x128xf32>
    %370 = vector.shape_cast %369 : vector<1x128xf32> to vector<1x128xf32>
    %371 = vector.broadcast %370 : vector<1x128xf32> to vector<4x128xf32>
    %372 = vector.extract_strided_slice %207 {offsets = [0, 7], sizes = [4, 1], strides = [1, 1]} : vector<4x12xf32> to vector<4x1xf32>
    %373 = vector.broadcast %372 : vector<4x1xf32> to vector<4x128xf32>
    %374 = arith.mulf %373, %371 : vector<4x128xf32>
    %375 = arith.addf %368, %374 : vector<4x128xf32>
    %376 = vector.extract_strided_slice %237 {offsets = [4, 0], sizes = [1, 128], strides = [1, 1]} : vector<8x128xf32> to vector<1x128xf32>
    %377 = vector.shape_cast %376 : vector<1x128xf32> to vector<1x128xf32>
    %378 = vector.broadcast %377 : vector<1x128xf32> to vector<4x128xf32>
    %379 = vector.extract_strided_slice %207 {offsets = [0, 8], sizes = [4, 1], strides = [1, 1]} : vector<4x12xf32> to vector<4x1xf32>
    %380 = vector.broadcast %379 : vector<4x1xf32> to vector<4x128xf32>
    %381 = arith.mulf %380, %378 : vector<4x128xf32>
    %382 = arith.addf %375, %381 : vector<4x128xf32>
    %383 = vector.extract_strided_slice %237 {offsets = [5, 0], sizes = [1, 128], strides = [1, 1]} : vector<8x128xf32> to vector<1x128xf32>
    %384 = vector.shape_cast %383 : vector<1x128xf32> to vector<1x128xf32>
    %385 = vector.broadcast %384 : vector<1x128xf32> to vector<4x128xf32>
    %386 = vector.extract_strided_slice %207 {offsets = [0, 9], sizes = [4, 1], strides = [1, 1]} : vector<4x12xf32> to vector<4x1xf32>
    %387 = vector.broadcast %386 : vector<4x1xf32> to vector<4x128xf32>
    %388 = arith.mulf %387, %385 : vector<4x128xf32>
    %389 = arith.addf %382, %388 : vector<4x128xf32>
    %390 = vector.extract_strided_slice %237 {offsets = [6, 0], sizes = [1, 128], strides = [1, 1]} : vector<8x128xf32> to vector<1x128xf32>
    %391 = vector.shape_cast %390 : vector<1x128xf32> to vector<1x128xf32>
    %392 = vector.broadcast %391 : vector<1x128xf32> to vector<4x128xf32>
    %393 = vector.extract_strided_slice %207 {offsets = [0, 10], sizes = [4, 1], strides = [1, 1]} : vector<4x12xf32> to vector<4x1xf32>
    %394 = vector.broadcast %393 : vector<4x1xf32> to vector<4x128xf32>
    %395 = arith.mulf %394, %392 : vector<4x128xf32>
    %396 = arith.addf %389, %395 : vector<4x128xf32>
    %397 = vector.extract_strided_slice %237 {offsets = [7, 0], sizes = [1, 128], strides = [1, 1]} : vector<8x128xf32> to vector<1x128xf32>
    %398 = vector.shape_cast %397 : vector<1x128xf32> to vector<1x128xf32>
    %399 = vector.broadcast %398 : vector<1x128xf32> to vector<4x128xf32>
    %400 = vector.extract_strided_slice %207 {offsets = [0, 11], sizes = [4, 1], strides = [1, 1]} : vector<4x12xf32> to vector<4x1xf32>
    %401 = vector.broadcast %400 : vector<4x1xf32> to vector<4x128xf32>
    %402 = arith.mulf %401, %399 : vector<4x128xf32>
    %403 = arith.addf %396, %402 : vector<4x128xf32>
    %404 = tpu.concatenate %320, %403 in 0 : vector<4x128xf32>, vector<4x128xf32> -> vector<8x128xf32>
    %c0_27 = arith.constant 0 : index
    %c0_28 = arith.constant 0 : index
    %405 = vector.load %arg7[%c0_27, %c0_28] : memref<8x1xf32, #tpu.memory_space<vmem>>, vector<8x1xf32>
    %406 = vector.broadcast %405 : vector<8x1xf32> to vector<8x128xf32>
    %407 = arith.mulf %404, %406 : vector<8x128xf32>
    %c0_29 = arith.constant 0 : index
    %c0_30 = arith.constant 0 : index
    %408 = vector.load %arg8[%c0_29, %c0_30] : memref<8x1xf32, #tpu.memory_space<vmem>>, vector<8x1xf32>
    %409 = vector.broadcast %408 : vector<8x1xf32> to vector<8x128xf32>
    %410 = arith.addf %407, %409 : vector<8x128xf32>
    %411 = arith.addf %410, %0 : vector<8x128xf32>
    %cst_31 = arith.constant 0.000000e+00 : f32
    %412 = vector.broadcast %cst_31 : f32 to vector<8x128xf32>
    %413 = arith.maximumf %411, %412 : vector<8x128xf32>
    %c0_32 = arith.constant 0 : index
    %c0_33 = arith.constant 0 : index
    %414 = vector.load %arg9[%c0_32, %c0_33] : memref<8x128xf32, #tpu.memory_space<vmem>>, vector<8x128xf32>
    tpu.vector_store %arg9[%c0_32, %c0_33], %413 {strides = array<i32>} : memref<8x128xf32, #tpu.memory_space<vmem>>, vector<8x128xf32>,
    return
  }
  func.func @transform_0(%arg0: i32, %arg1: i32) -> (i32, i32) {
    %c0_i32 = arith.constant 0 : i32
    return %arg0, %arg1 : i32, i32
  }
  func.func @transform_1(%arg0: i32, %arg1: i32) -> (i32, i32) {
    %c0_i32 = arith.constant 0 : i32
    %c0_i32_0 = arith.constant 0 : i32
    %c0_i32_1 = arith.constant 0 : i32
    return %c0_i32, %c0_i32_0 : i32, i32
  }
  func.func @transform_2(%arg0: i32, %arg1: i32) -> (i32, i32) {
    %c0_i32 = arith.constant 0 : i32
    %c0_i32_0 = arith.constant 0 : i32
    return %arg0, %c0_i32 : i32, i32
  }
  func.func @transform_3(%arg0: i32, %arg1: i32) -> (i32, i32) {
    %c0_i32 = arith.constant 0 : i32
    %c0_i32_0 = arith.constant 0 : i32
    return %arg0, %c0_i32 : i32, i32
  }
  func.func @transform_4(%arg0: i32, %arg1: i32) -> (i32, i32) {
    %c0_i32 = arith.constant 0 : i32
    %c0_i32_0 = arith.constant 0 : i32
    %c0_i32_1 = arith.constant 0 : i32
    return %c0_i32, %c0_i32_0 : i32, i32
  }
  func.func @transform_5(%arg0: i32, %arg1: i32) -> (i32, i32) {
    %c0_i32 = arith.constant 0 : i32
    %c0_i32_0 = arith.constant 0 : i32
    return %arg0, %c0_i32 : i32, i32
  }
  func.func @transform_6(%arg0: i32, %arg1: i32) -> (i32, i32) {
    %c0_i32 = arith.constant 0 : i32
    %c0_i32_0 = arith.constant 0 : i32
    return %arg0, %c0_i32 : i32, i32
  }
  func.func @transform_7(%arg0: i32, %arg1: i32) -> (i32, i32) {
    %c0_i32 = arith.constant 0 : i32
    return %arg0, %arg1 : i32, i32
  }
}

</mosaic_0001>

<bundles_post_ra>
// kernel: tile.28
= control target key start
LH: loop header
LB: loop body
LE: loop exit
PB: predicated region body
PF: predicated region fallthrough
CT: control target
= control target key end

     0   :  { %s22_s0 = inlined_call_operand.vmem [shape: f32[4], index: 0, kind: input, shape index: {}]   ;;  %s23_s1 = inlined_call_operand.vmem [shape: f32[4,4], index: 1, kind: output, shape index: {}]  }
   0x1   :  { %v4_v0 = vld [vmem:[%s22_s0] ss:$0 sm:$0xff] }
   0x2   :  { %5 = vst [vmem:[%s23_s1] sm:$0xf] %v4_v0 }

// kernel: tile.0
= control target key start
LH: loop header
LB: loop body
LE: loop exit
PB: predicated region body
PF: predicated region fallthrough
CT: control target
= control target key end

     0   :  { %s34_s8 = smov 125   ;;  %vm7_vm0 = vcmask 7168   ;;  %s35_s11 = smov 126   ;;  %s61_s0 = inlined_call_operand.vmem [shape: f32[4,4], index: 0, kind: input, shape index: {}]   ;;  %s62_s1 = inlined_call_operand.vmem [shape: f32[16,1], index: 1, kind: output, shape index: {}]  }
   0x1   :  { %v4_v0 = vld [vmem:[%s61_s0] sm:$0xf]  ;;  %s33_s0 = smov 127  }
   0x2   :  { %5 = vst [vmem:[#allocation0] sm:$0xf] %v4_v0 }
   0x9   :  { %v9_v1 = vld [vmem:[#allocation0] sm:$0xf]  }
   0xa   :  { %v21_v2 = vld [vmem:[#allocation0] sm:$0xf]   ;;  %10 = vrot.lane.b32.xlu0 %v9_v1, %s33_s0 }
   0xb   :  { %22 = vrot.lane.b32.xlu1 %v21_v2, %s34_s8  ;;  %v6_v3 = vld [vmem:[#allocation0] sm:$0xf]  }
   0xc   :  { %v15_v4 = vld [vmem:[#allocation0] sm:$0xf]   ;;  %8 = vst.msk [vmem:[%s62_s1] ss:$4 sm:$0xf] %vm7_vm0, %v6_v3  }
   0xe   :  { %16 = vrot.lane.b32.xlu0 %v15_v4, %s35_s11 }
  0x7c   :  { %v11_v5 = vpop.permute.xlu0 %10  }
  0x7d   :  { %v23_v6 = vpop.permute.xlu1 %22   ;;  %27 = vst.msk [vmem:[%s62_s1 + $0x1] ss:$4 sm:$0xf] %vm7_vm0, %v11_v5  }
  0x7e   :  { %29 = vst.msk [vmem:[%s62_s1 + $0x3] ss:$4 sm:$0xf] %vm7_vm0, %v23_v6  }
  0x80   :  { %v17_v7 = vpop.permute.xlu0 %16  }
  0x81   :  { %28 = vst.msk [vmem:[%s62_s1 + $0x2] ss:$4 sm:$0xf] %vm7_vm0, %v17_v7  }

// kernel: residual_block_pallas.3
= control target key start
LH: loop header
LB: loop body
LE: loop exit
PB: predicated region body
PF: predicated region fallthrough
CT: control target
= control target key end

     0   :  { %s702_s12 = smov 0   ;;  %s704_s13 = smov 0   ;;  %s831_s0 = inlined_call_operand.vmem [shape: f32[16,256], index: 0, kind: input, shape index: {}]   ;;  %s832_s1 = inlined_call_operand.vmem [shape: f32[4,12], index: 1, kind: input, shape index: {}]   ;;  %s833_s2 = inlined_call_operand.vmem [shape: f32[16,1], index: 2, kind: output, shape index: {0}]   ;;  %s834_s3 = inlined_call_operand.vmem [shape: f32[16,1], index: 3, kind: output, shape index: {1}]  }
   0x1   :  { %s706_s14 = smov 0   ;;  %s708_s15 = smov 0  }
   0x2   :  { %s710_s16 = smov 0  }
   0x3 LB: > { %s23_s17 = sadd.s32 1, %s657_s14  ;;  %s26_s18 = sadd.s32 1, %s661_s15  ;;  %s665_s16 = sphi %s710_s16, %s14_s16   ;;  %s661_s15 = sphi %s708_s15, %s838_s15   ;;  %s657_s14 = sphi %s706_s14, %s837_s14   ;;  %s653_s13 = sphi %s704_s13, %s836_s13   ;;  %s649_s12 = sphi %s702_s12, %s835_s12  }
   0x4   : > { %p24_p0 = scmp.ge.s32.totalorder %s23_s17, 2  ;;  %p552_p1 = scmp.ge.s32.totalorder %s665_s16, 1 }
   0x5   : > { %p157_p2 = scmp.lt.s32.totalorder %s665_s16, 5 }
   0x6   : > { %s840_s17 = smov (%p24_p0, %s23_s17), 0  ;;  %s842_s18 = smov (!%p24_p0, %s26_s18), %s661_s15 }
   0x7   : > { %p158_p3 = pnand %p552_p1, %p157_p2  ;;  %p28_p4 = scmp.ge.s32.totalorder %s842_s18, 2 }
   0x8   : > { %v204_v0 = vld [vmem:[%s832_s1] sm:$0xf] (!%p158_p3)  ;;  %v667_v1 = vmov (!%p158_p3), 2   ;;  %v668_v2 = vmov (!%p158_p3), 0   ;;  %p187_p5 = scmp.lt.s32.totalorder (!%p158_p3), %s653_s13, 1  ;;  %p189_p6 = scmp.lt.s32.totalorder (!%p158_p3), %s649_s12, 1  ;;  %v205_v14 = vlaneseq (!%p158_p3) }
   0x9   : > { %s844_s18 = smov (%p28_p4, %s842_s18), 0  ;;  %161 = sbr.rel (%p158_p3) target bundleno = 333 (0x14d), region = 28 }
   0xa   : > { %617 = vset.pattern.permute.xlu1 (!%p158_p3), %v667_v1  ;;  %615 = vset.pattern.permute.xlu0 (!%p158_p3), %v668_v2  ;;  %v669_v3 = vmov (!%p158_p3), 3   ;;  %v670_v4 = vmov (!%p158_p3), 1   ;;  %v671_v6 = vmov (!%p158_p3), 4   ;;  %s672_s8 = smov (!%p158_p3), 1   ;;  %v673_v7 = vmov (!%p158_p3), 5   ;;  %s676_s9 = smov (!%p158_p3), 127  }
   0xb   : > { %259 = vperm.xlu1 (!%p158_p3), %617, %v204_v0   ;;  %240 = vperm.xlu0 (!%p158_p3), %615, %v204_v0   ;;  %v674_v8 = vmov (!%p158_p3), 7   ;;  %v675_v9 = vmov (!%p158_p3), 6   ;;  %v677_v10 = vmov (!%p158_p3), 11   ;;  %v678_v11 = vmov (!%p158_p3), 8   ;;  %p557_p7 = scmp.ne.s32.totalorder (!%p158_p3), %s649_s12, 0 }
   0xc   : > { %v679_v12 = vmov (!%p158_p3), 9   ;;  %v680_v13 = vmov (!%p158_p3), 10   ;;  %v206_v17 = vand.u32 (!%p158_p3), 127, %v205_v14  ;;  %v235_v19 = vshrl.u32 (!%p158_p3), %v205_v14, 7 }
   0xd   : > { %vm224_vm0 = vcmask (!%p158_p3), 7168   ;;  %vm231_vm2 = vcmask (!%p158_p3), 1039360   ;;  %vm428_vm4 = vcmask (!%p158_p3), 1043456  }
   0xe   : > { %v211_v18 = vand.u32 (!%p158_p3), 15, %v206_v17  ;;  %v756_v22 = vsub.s32 (!%p158_p3), 0, %v235_v19  ;;  %v758_v23 = vsub.s32 (!%p158_p3), 1, %v235_v19  ;;  %v760_v24 = vsub.s32 (!%p158_p3), 2, %v235_v19 }
   0xf   : > { %618 = vset.pattern.permute.xlu1 (!%p158_p3), %v669_v3  ;;  %616 = vset.pattern.permute.xlu0 (!%p158_p3), %v670_v4  ;;  %v762_v26 = vsub.s32 (!%p158_p3), 4, %v235_v19  ;;  %v764_v27 = vsub.s32 (!%p158_p3), 5, %v235_v19  ;;  %v766_v28 = vsub.s32 (!%p158_p3), 6, %v235_v19  ;;  %v769_v30 = vsub.s32 (!%p158_p3), 3, %v235_v19 }
  0x10   : > { %s846_s13 = smov (!%p187_p5, %s653_s13), 1  ;;  %269 = vperm.xlu1 %618, %v204_v0   ;;  %249 = vperm.xlu0 %616, %v204_v0   ;;  %vm219_vm1 = vcmp.eq.s32.totalorder %v211_v18, 0  ;;  %v771_v33 = vsub.s32 7, %v235_v19  ;;  %vm227_vm3 = vcmp.eq.s32.totalorder %v211_v18, 15 }
  0x11   : > { %s190_s21 = scalar_select %p189_p6, %s649_s12, 1 }
  0x12   : > { %s553_s22 = sshll.u32 %s846_s13, 1  ;;  %s555_s23 = sshll.u32 %s846_s13, 3 }
  0x13   : > { %s192_s24 = sadd.s32 %s553_s22, %s190_s21  ;;  %s742_s27 = scalar_lea.vmem %s833_s2, %s555_s23 }
  0x14   : > { %s554_s28 = sshll.u32 %s192_s24, 3  ;;  %s747_s4 = scalar_lea.vmem %s834_s3, %s555_s23  ;;  %619 = vset.pattern.permute.xlu0 %v671_v6  ;;  %620 = vset.pattern.permute.xlu1 %v673_v7 }
  0x15   : > { %s194_s7 = scalar_lea.vmem %s831_s0, %s554_s28  ;;  %279 = vperm.xlu0 %619, %v204_v0  }
  0x16   : > { %v752_v5 = vld [vmem:[%s194_s7] sm:$0xff] }
  0x17   : > { %221 = vrot.lane.b32.xlu1 %v752_v5, %s672_s8  ;;  %v277_v50 = vrot.slane %v752_v5, %v756_v22  ;;  %v380_v53 = vrot.slane %v752_v5, %v762_v26  ;;  %v287_v56 = vrot.slane %v752_v5, %v758_v23  ;;  %v386_v60 = vrot.slane %v752_v5, %v764_v27 }
  0x18   : > { %v392_v4 = vrot.slane %v752_v5, %v766_v28 }
  0x19   : > { %622 = vset.pattern.permute.xlu0 %v674_v8 }
  0x1a   : > { %309 = vperm.xlu0 %622, %v204_v0  }
  0x1b   : > { %289 = vperm.xlu1 %620, %v204_v0  }
  0x1e   : > { %228 = vrot.lane.b32.xlu0 %v752_v5, %s676_s9 }
  0x1f   : > { %621 = vset.pattern.permute.xlu1 %v675_v9  ;;  %626 = vset.pattern.permute.xlu0 %v677_v10  ;;  %v307_v9 = vrot.slane %v752_v5, %v769_v30 }
  0x20   : > { %299 = vperm.xlu1 %621, %v204_v0  }
  0x22   : > { %349 = vperm.xlu0 %626, %v204_v0  }
  0x24   : > { %623 = vset.pattern.permute.xlu1 %v678_v11 }
  0x25   : > { %319 = vperm.xlu1 %623, %v204_v0  }
  0x29   : > { %624 = vset.pattern.permute.xlu1 %v679_v12  ;;  %v398_v12 = vrot.slane %v752_v5, %v771_v33 }
  0x2a   : > { %329 = vperm.xlu1 %624, %v204_v0  }
  0x2e   : > { %625 = vset.pattern.permute.xlu1 %v680_v13 }
  0x2f   : > { %339 = vperm.xlu1 %625, %v204_v0   ;;  %v297_v0 = vrot.slane %v752_v5, %v760_v24 }
  0x8a   : > { %v260_v15 = vpop.permute.xlu1 %259  ;;  %v241_v16 = vpop.permute.xlu0 %240 }
  0x8f   : > { %v270_v20 = vpop.permute.xlu1 %269  ;;  %v250_v21 = vpop.permute.xlu0 %249 }
  0x93   : > { %v222_v25 = vpop.permute.xlu1 %221 }
  0x94   : > { %v225_v29 = vsel %vm224_vm0, 0.0, %v222_v25  ;;  %v280_v31 = vpop.permute.xlu0 %279 }
  0x95   : > { %v226_v32 = vsel %vm219_vm1, 0.0, %v225_v29  ;;  %v282_v63 = vmul.f32 %v280_v31, %v277_v50  ;;  %v381_v3 = vmul.f32 %v380_v53, %v280_v31 }
  0x96   : > { %v237_v34 = vrot.slane %v226_v32, %v756_v22  ;;  %v247_v35 = vrot.slane %v226_v32, %v758_v23  ;;  %v257_v36 = vrot.slane %v226_v32, %v760_v24  ;;  %v357_v37 = vrot.slane %v226_v32, %v762_v26 }
  0x97   : > { %v362_v38 = vrot.slane %v226_v32, %v764_v27  ;;  %v368_v39 = vrot.slane %v226_v32, %v766_v28  ;;  %v267_v43 = vrot.slane %v226_v32, %v769_v30  ;;  %v374_v46 = vrot.slane %v226_v32, %v771_v33 }
  0x98   : > { %v243_v41 = vmul.f32 %v241_v16, %v237_v34  ;;  %v252_v42 = vmul.f32 %v250_v21, %v247_v35  ;;  %v358_v44 = vmul.f32 %v357_v37, %v241_v16  ;;  %v262_v49 = vmul.f32 %v260_v15, %v257_v36 }
  0x99   : > { %v363_v45 = vmul.f32 %v362_v38, %v250_v21  ;;  %v310_v47 = vpop.permute.xlu0 %309  ;;  %v369_v52 = vmul.f32 %v368_v39, %v260_v15  ;;  %v272_v55 = vmul.f32 %v270_v20, %v267_v43  ;;  %v375_v59 = vmul.f32 %v374_v46, %v270_v20 }
  0x9a   : > { %v290_v40 = vpop.permute.xlu1 %289  ;;  %v253_v48 = vadd.f32 %v252_v42, %v243_v41  ;;  %v312_v20 = vmul.f32 %v310_v47, %v307_v9  ;;  %v399_v25 = vmul.f32 %v398_v12, %v310_v47 }
  0x9b   : > { %v364_v51 = vadd.f32 %v363_v45, %v358_v44  ;;  %v292_v8 = vmul.f32 %v290_v40, %v287_v56  ;;  %v387_v11 = vmul.f32 %v386_v60, %v290_v40 }
  0x9c   : > { %v263_v54 = vadd.f32 %v262_v49, %v253_v48 }
  0x9d   : > { %v370_v58 = vadd.f32 %v369_v52, %v364_v51  ;;  %v229_v61 = vpop.permute.xlu0 %228 }
  0x9e   : > { %v273_v62 = vadd.f32 %v272_v55, %v263_v54  ;;  %v232_v1 = vsel %vm231_vm2, %v229_v61, 0.0 }
  0x9f   : > { %v300_v57 = vpop.permute.xlu1 %299  ;;  %v376_v2 = vadd.f32 %v375_v59, %v370_v58  ;;  %v233_v6 = vsel %vm227_vm3, 0.0, %v232_v1 }
  0xa0   : > { %v283_v7 = vadd.f32 %v282_v63, %v273_v62  ;;  %v302_v15 = vmul.f32 %v300_v57, %v297_v0  ;;  %v317_v16 = vrot.slane %v233_v6, %v756_v22  ;;  %v393_v18 = vmul.f32 %v392_v4, %v300_v57 }
  0xa1   : > { %v382_v10 = vadd.f32 %v381_v3, %v376_v2  ;;  %v404_v19 = vrot.slane %v233_v6, %v762_v26  ;;  %v327_v34 = vrot.slane %v233_v6, %v758_v23  ;;  %v410_v35 = vrot.slane %v233_v6, %v764_v27  ;;  %v350_v44 = vpop.permute.xlu0 %349 }
  0xa2   : > { %v293_v14 = vadd.f32 %v292_v8, %v283_v7  ;;  %v422_v41 = vrot.slane %v233_v6, %v771_v33  ;;  %v337_v26 = vrot.slane %v233_v6, %v760_v24  ;;  %v416_v42 = vrot.slane %v233_v6, %v766_v28 }
  0xa3   : > { %v388_v17 = vadd.f32 %v387_v11, %v382_v10  ;;  %v347_v43 = vrot.slane %v233_v6, %v769_v30  ;;  %v681_v24 = vmov (!%p557_p7), 0.0  }
  0xa4   : > { %v320_v13 = vpop.permute.xlu1 %319  ;;  %v303_v21 = vadd.f32 %v302_v15, %v293_v14  ;;  %v423_v48 = vmul.f32 %v422_v41, %v350_v44  ;;  %434 = vst.msk [vmem:[%s742_s27] sm:$0xff] (!%p557_p7), %vm224_vm0, %v681_v24  ;;  %435 = vst.msk [vmem:[%s747_s4] sm:$0xff] (!%p557_p7), %vm224_vm0, %v681_v24 }
  0xa5   : > { %v394_v29 = vadd.f32 %v393_v18, %v388_v17  ;;  %v322_v32 = vmul.f32 %v320_v13, %v317_v16  ;;  %v405_v37 = vmul.f32 %v404_v19, %v320_v13  ;;  %v352_v51 = vmul.f32 %v350_v44, %v347_v43 }
  0xa6   : > { %v313_v31 = vadd.f32 %v312_v20, %v303_v21 }
  0xa7   : > { %v400_v36 = vadd.f32 %v399_v25, %v394_v29 }
  0xa8   : > { %v323_v38 = vadd.f32 %v322_v32, %v313_v31 }
  0xa9   : > { %v330_v5 = vpop.permute.xlu1 %329  ;;  %v406_v40 = vadd.f32 %v405_v37, %v400_v36 }
  0xaa   : > { %v332_v39 = vmul.f32 %v330_v5, %v327_v34  ;;  %v411_v22 = vmul.f32 %v410_v35, %v330_v5 }
  0xac   : > { %v333_v23 = vadd.f32 %v332_v39, %v323_v38  ;;  %v412_v46 = vadd.f32 %v411_v22, %v406_v40 }
  0xae   : > { %v340_v45 = vpop.permute.xlu1 %339 }
  0xaf   : > { %v342_v27 = vmul.f32 %v340_v45, %v337_v26  ;;  %v417_v47 = vmul.f32 %v416_v42, %v340_v45 }
  0xb1   : > { %v343_v49 = vadd.f32 %v342_v27, %v333_v23  ;;  %v418_v50 = vadd.f32 %v417_v47, %v412_v46  ;;  %433 = sbr.rel (%p557_p7) target bundleno = 184 (0xb8), region = 32 }
  0xb3   : > { %v424_v52 = vadd.f32 %v423_v48, %v418_v50  ;;  %v353_v53 = vadd.f32 %v352_v51, %v343_v49 }
  0xb5   : > { %v426_v33 = vrot.slane %v424_v52, 4 }
  0xb7   : > { %v429_v54 = vsel %vm428_vm4, %v353_v53, %v426_v33 }
  0xb8 PF: > { %437 = vadd.xlane.f32.xlu0 %v429_v54  ;;  %v442_v28 = vmul.f32 %v429_v54, %v429_v54  ;;  %v436_v30 = vld [vmem:[%s742_s27] sm:$0xff] }
  0xb9   : > { %v441_v57 = vld [vmem:[%s747_s4] sm:$0xff] }
  0xbc   : > { %443 = vadd.xlane.f32.xlu0 %v442_v28 }
 0x145   : > { %v438_v55 = vpop.xlane.xlu0 %437 }
 0x146   : > { %v439_v56 = vadd.f32 %v438_v55, %v436_v30 }
 0x148   : > { %440 = vst.msk [vmem:[%s742_s27] sm:$0xff] %vm224_vm0, %v439_v56 }
 0x149   : > { %v444_v58 = vpop.xlane.xlu0 %443 }
 0x14a   : > { %v445_v59 = vadd.f32 %v444_v58, %v441_v57 }
 0x14c   : > { %446 = vst.msk [vmem:[%s747_s4] sm:$0xff] %vm224_vm0, %v445_v59 }
 0x14d PF: > { %s14_s16 = sadd.s32 1, %s665_s16   ;;  %s835_s12 = smov %s657_s14 }
 0x14e   : > { %p11_p8 = scmp.ge.s32.totalorder %s14_s16, 6   ;;  %s836_s13 = smov %s661_s15 }
 0x14f   : > { %s837_s14 = smov %s840_s17  ;;  %s838_s15 = smov %s844_s18 }
 0x150   :  { %13 = sbr.rel (!%p11_p8) target bundleno = 3 (0x3), region = 74 }

// kernel: residual_block_pallas.4
= control target key start
LH: loop header
LB: loop body
LE: loop exit
PB: predicated region body
PF: predicated region fallthrough
CT: control target
= control target key end

     0   :  { %s1093_s21 = smov 0   ;;  %s1095_s22 = smov 0   ;;  %s1318_s0 = inlined_call_operand.vmem [shape: f32[16,256], index: 0, kind: input, shape index: {}]   ;;  %s1319_s1 = inlined_call_operand.vmem [shape: f32[4,12], index: 1, kind: input, shape index: {}]   ;;  %s1320_s2 = inlined_call_operand.vmem [shape: f32[16,1], index: 2, kind: input, shape index: {}]   ;;  %s1321_s3 = inlined_call_operand.vmem [shape: f32[16,1], index: 3, kind: input, shape index: {}]   ;;  %s1322_s4 = inlined_call_operand.vmem [shape: f32[4,12], index: 4, kind: input, shape index: {}]   ;;  %s1323_s5 = inlined_call_operand.vmem [shape: f32[16,1], index: 5, kind: output, shape index: {0}]   ;;  %s1324_s6 = inlined_call_operand.vmem [shape: f32[16,1], index: 6, kind: output, shape index: {1}]  }
   0x1   :  { %s1097_s23 = smov 0   ;;  %s1099_s24 = smov 0  }
   0x2   :  { %s1101_s25 = smov 0  }
   0x3 LB: > { %s26_s26 = sadd.s32 1, %s1033_s23  ;;  %s29_s27 = sadd.s32 1, %s1037_s24  ;;  %s1041_s25 = sphi %s1101_s25, %s17_s25   ;;  %s1037_s24 = sphi %s1099_s24, %s1332_s24   ;;  %s1033_s23 = sphi %s1097_s23, %s1331_s23   ;;  %s1029_s22 = sphi %s1095_s22, %s1330_s22   ;;  %s1025_s21 = sphi %s1093_s21, %s1329_s21  }
   0x4   : > { %p27_p0 = scmp.ge.s32.totalorder %s26_s26, 2  ;;  %p913_p1 = scmp.ge.s32.totalorder %s1041_s25, 1 }
   0x5   : > { %p250_p2 = scmp.lt.s32.totalorder %s1041_s25, 5 }
   0x6   : > { %s1334_s26 = smov (%p27_p0, %s26_s26), 0  ;;  %s1336_s27 = smov (!%p27_p0, %s29_s27), %s1037_s24 }
   0x7   : > { %p251_p3 = pnand %p913_p1, %p250_p2  ;;  %p31_p4 = scmp.ge.s32.totalorder %s1336_s27, 2 }
   0x8   : > { %v319_v0 = vld [vmem:[%s1319_s1] sm:$0xf] (!%p251_p3)  ;;  %v1043_v1 = vmov (!%p251_p3), 2   ;;  %v1044_v2 = vmov (!%p251_p3), 0   ;;  %p294_p5 = scmp.lt.s32.totalorder (!%p251_p3), %s1029_s22, 1  ;;  %p296_p6 = scmp.lt.s32.totalorder (!%p251_p3), %s1025_s21, 1  ;;  %v320_v17 = vlaneseq (!%p251_p3) }
   0x9   : > { %s1338_s27 = smov (%p31_p4, %s1336_s27), 0  ;;  %254 = sbr.rel (%p251_p3) target bundleno = 497 (0x1f1), region = 40 }
   0xa   : > { %980 = vset.pattern.permute.xlu1 (!%p251_p3), %v1043_v1  ;;  %978 = vset.pattern.permute.xlu0 (!%p251_p3), %v1044_v2  ;;  %v1045_v3 = vmov (!%p251_p3), 3   ;;  %v1046_v4 = vmov (!%p251_p3), 1   ;;  %v1047_v6 = vmov (!%p251_p3), 4   ;;  %s1048_s20 = smov (!%p251_p3), 1   ;;  %v1049_v7 = vmov (!%p251_p3), 5   ;;  %p920_p7 = scmp.ne.s32.totalorder (!%p251_p3), %s1025_s21, 0 }
   0xb   : > { %374 = vperm.xlu1 (!%p251_p3), %980, %v319_v0   ;;  %355 = vperm.xlu0 (!%p251_p3), %978, %v319_v0   ;;  %v1050_v8 = vmov (!%p251_p3), 7   ;;  %v1051_v9 = vmov (!%p251_p3), 6   ;;  %v1053_v10 = vmov (!%p251_p3), 11   ;;  %v1054_v11 = vmov (!%p251_p3), 8   ;;  %v1159_v13 = vld [vmem:[%s1322_s4] sm:$0xf] (!%p251_p3) }
   0xc   : > { %v1055_v12 = vmov (!%p251_p3), 9   ;;  %v1056_v14 = vmov (!%p251_p3), 10   ;;  %v321_v20 = vand.u32 (!%p251_p3), 127, %v320_v17  ;;  %v350_v22 = vshrl.u32 (!%p251_p3), %v320_v17, 7 }
   0xd   : > { %vm339_vm0 = vcmask (!%p251_p3), 7168   ;;  %vm346_vm2 = vcmask (!%p251_p3), 1039360   ;;  %vm543_vm4 = vcmask (!%p251_p3), 1043456  }
   0xe   : > { %v326_v21 = vand.u32 (!%p251_p3), 15, %v321_v20  ;;  %v1183_v26 = vsub.s32 (!%p251_p3), 0, %v350_v22  ;;  %v1185_v27 = vsub.s32 (!%p251_p3), 1, %v350_v22  ;;  %v1187_v28 = vsub.s32 (!%p251_p3), 2, %v350_v22 }
   0xf   : > { %981 = vset.pattern.permute.xlu1 (!%p251_p3), %v1045_v3  ;;  %979 = vset.pattern.permute.xlu0 (!%p251_p3), %v1046_v4  ;;  %v1189_v30 = vsub.s32 (!%p251_p3), 4, %v350_v22  ;;  %v1191_v31 = vsub.s32 (!%p251_p3), 5, %v350_v22  ;;  %v1193_v32 = vsub.s32 (!%p251_p3), 6, %v350_v22  ;;  %v1196_v34 = vsub.s32 (!%p251_p3), 3, %v350_v22 }
  0x10   : > { %s1340_s22 = smov (!%p294_p5, %s1029_s22), 1  ;;  %384 = vperm.xlu1 %981, %v319_v0   ;;  %364 = vperm.xlu0 %979, %v319_v0   ;;  %vm1179_vm1 = vcmp.eq.s32.totalorder %v326_v21, 0  ;;  %v1200_v37 = vsub.s32 7, %v350_v22  ;;  %vm1216_vm3 = vcmp.eq.s32.totalorder %v326_v21, 15 }
  0x11   : > { %s297_s30 = scalar_select %p296_p6, %s1025_s21, 1 }
  0x12   : > { %s914_s7 = sshll.u32 %s1340_s22, 1  ;;  %s1131_s9 = sshll.u32 %s1340_s22, 3 }
  0x13   : > { %s299_s8 = sadd.s32 %s914_s7, %s297_s30  ;;  %s1137_s13 = scalar_lea.vmem %s1323_s5, %s1131_s9 }
  0x14   : > { %s915_s10 = sshll.u32 %s299_s8, 3  ;;  %s1146_s19 = scalar_lea.vmem %s1324_s6, %s1131_s9  ;;  %982 = vset.pattern.permute.xlu0 %v1047_v6  ;;  %983 = vset.pattern.permute.xlu1 %v1049_v7 }
  0x15   : > { %s301_s16 = scalar_lea.vmem %s1318_s0, %s915_s10  ;;  %394 = vperm.xlu0 %982, %v319_v0   ;;  %s1052_s22 = smov 127  }
  0x16   : > { %v1148_v5 = vld [vmem:[%s301_s16] sm:$0xff]  ;;  %s305_s8 = scalar_lea.vmem %s1320_s2, %s1131_s9  ;;  %s309_s12 = scalar_lea.vmem %s1321_s3, %s1131_s9 }
  0x17   : > { %336 = vrot.lane.b32.xlu1 %v1148_v5, %s1048_s20  ;;  %v545_v15 = vld [vmem:[%s305_s8] sm:$0xff]  ;;  %v392_v54 = vrot.slane %v1148_v5, %v1183_v26  ;;  %v495_v57 = vrot.slane %v1148_v5, %v1189_v30  ;;  %v402_v60 = vrot.slane %v1148_v5, %v1185_v27  ;;  %v422_v17 = vrot.slane %v1148_v5, %v1196_v34 }
  0x18   : > { %v552_v16 = vld [vmem:[%s309_s12] sm:$0xff]  ;;  %v513_v20 = vrot.slane %v1148_v5, %v1200_v37 }
  0x19   : > { %985 = vset.pattern.permute.xlu0 %v1050_v8 }
  0x1a   : > { %424 = vperm.xlu0 %985, %v319_v0  }
  0x1b   : > { %404 = vperm.xlu1 %983, %v319_v0  }
  0x1e   : > { %343 = vrot.lane.b32.xlu0 %v1148_v5, %s1052_s22 }
  0x1f   : > { %984 = vset.pattern.permute.xlu1 %v1051_v9  ;;  %989 = vset.pattern.permute.xlu0 %v1053_v10 }
  0x20   : > { %414 = vperm.xlu1 %984, %v319_v0  }
  0x22   : > { %464 = vperm.xlu0 %989, %v319_v0  }
  0x24   : > { %986 = vset.pattern.permute.xlu1 %v1054_v11 }
  0x25   : > { %434 = vperm.xlu1 %986, %v319_v0  }
  0x26   : > { %991 = vset.pattern.permute.xlu0 %v1044_v2 }
  0x27   : > { %578 = vperm.xlu0 %991, %v1159_v13  }
  0x29   : > { %987 = vset.pattern.permute.xlu1 %v1055_v12 }
  0x2a   : > { %444 = vperm.xlu1 %987, %v319_v0  }
  0x2b   : > { %995 = vset.pattern.permute.xlu0 %v1047_v6  ;;  %v412_v6 = vrot.slane %v1148_v5, %v1187_v28 }
  0x2e   : > { %988 = vset.pattern.permute.xlu1 %v1056_v14 }
  0x2f   : > { %454 = vperm.xlu1 %988, %v319_v0  }
  0x33   : > { %990 = vset.pattern.permute.xlu1 %v1044_v2 }
  0x34   : > { %548 = vperm.xlu1 %990, %v545_v15  }
  0x38   : > { %555 = vperm.xlu1 %990, %v552_v16  }
  0x3c   : > { %992 = vset.pattern.permute.xlu1 %v1046_v4 }
  0x3d   : > { %587 = vperm.xlu1 %992, %v1159_v13  }
  0x41   : > { %993 = vset.pattern.permute.xlu1 %v1043_v1  ;;  %v501_v1 = vrot.slane %v1148_v5, %v1191_v31 }
  0x42   : > { %597 = vperm.xlu1 %993, %v1159_v13  }
  0x46   : > { %994 = vset.pattern.permute.xlu1 %v1045_v3 }
  0x47   : > { %607 = vperm.xlu1 %994, %v1159_v13  }
  0x4b   : > { %996 = vset.pattern.permute.xlu1 %v1049_v7 }
  0x4c   : > { %627 = vperm.xlu1 %996, %v1159_v13  }
  0x50   : > { %997 = vset.pattern.permute.xlu1 %v1051_v9 }
  0x51   : > { %637 = vperm.xlu1 %997, %v1159_v13  }
  0x55   : > { %999 = vset.pattern.permute.xlu1 %v1054_v11 }
  0x56   : > { %657 = vperm.xlu1 %999, %v1159_v13  }
  0x5a   : > { %1000 = vset.pattern.permute.xlu1 %v1055_v12  ;;  %v507_v12 = vrot.slane %v1148_v5, %v1193_v32 }
  0x5b   : > { %667 = vperm.xlu1 %1000, %v1159_v13  }
  0x5f   : > { %1001 = vset.pattern.permute.xlu1 %v1056_v14 }
  0x60   : > { %677 = vperm.xlu1 %1001, %v1159_v13  }
  0x8a   : > { %v375_v18 = vpop.permute.xlu1 %374  ;;  %v356_v19 = vpop.permute.xlu0 %355 }
  0x8f   : > { %v385_v23 = vpop.permute.xlu1 %384  ;;  %v365_v24 = vpop.permute.xlu0 %364 }
  0x93   : > { %v337_v29 = vpop.permute.xlu1 %336 }
  0x94   : > { %v340_v33 = vsel %vm339_vm0, 0.0, %v337_v29  ;;  %v395_v35 = vpop.permute.xlu0 %394 }
  0x95   : > { %v341_v36 = vsel %vm1179_vm1, 0.0, %v340_v33  ;;  %v397_v4 = vmul.f32 %v395_v35, %v392_v54  ;;  %v496_v11 = vmul.f32 %v495_v57, %v395_v35 }
  0x96   : > { %v352_v38 = vrot.slane %v341_v36, %v1183_v26  ;;  %v362_v39 = vrot.slane %v341_v36, %v1185_v27  ;;  %v372_v40 = vrot.slane %v341_v36, %v1187_v28  ;;  %v472_v41 = vrot.slane %v341_v36, %v1189_v30 }
  0x97   : > { %v477_v42 = vrot.slane %v341_v36, %v1191_v31  ;;  %v483_v43 = vrot.slane %v341_v36, %v1193_v32  ;;  %v382_v47 = vrot.slane %v341_v36, %v1196_v34  ;;  %v489_v50 = vrot.slane %v341_v36, %v1200_v37 }
  0x98   : > { %v358_v45 = vmul.f32 %v356_v19, %v352_v38  ;;  %v367_v46 = vmul.f32 %v365_v24, %v362_v39  ;;  %v473_v48 = vmul.f32 %v472_v41, %v356_v19  ;;  %v377_v53 = vmul.f32 %v375_v18, %v372_v40 }
  0x99   : > { %v478_v49 = vmul.f32 %v477_v42, %v365_v24  ;;  %v425_v51 = vpop.permute.xlu0 %424  ;;  %v484_v56 = vmul.f32 %v483_v43, %v375_v18  ;;  %v387_v59 = vmul.f32 %v385_v23, %v382_v47  ;;  %v490_v0 = vmul.f32 %v489_v50, %v385_v23 }
  0x9a   : > { %v405_v44 = vpop.permute.xlu1 %404  ;;  %v368_v52 = vadd.f32 %v367_v46, %v358_v45  ;;  %v427_v36 = vmul.f32 %v425_v51, %v422_v17  ;;  %v514_v39 = vmul.f32 %v513_v20, %v425_v51 }
  0x9b   : > { %v479_v55 = vadd.f32 %v478_v49, %v473_v48  ;;  %v407_v16 = vmul.f32 %v405_v44, %v402_v60  ;;  %v502_v19 = vmul.f32 %v501_v1, %v405_v44 }
  0x9c   : > { %v378_v58 = vadd.f32 %v377_v53, %v368_v52 }
  0x9d   : > { %v485_v63 = vadd.f32 %v484_v56, %v479_v55  ;;  %v344_v2 = vpop.permute.xlu0 %343 }
  0x9e   : > { %v388_v3 = vadd.f32 %v387_v59, %v378_v58  ;;  %v347_v7 = vsel %vm346_vm2, %v344_v2, 0.0 }
  0x9f   : > { %v415_v61 = vpop.permute.xlu1 %414  ;;  %v491_v9 = vadd.f32 %v490_v0, %v485_v63  ;;  %v348_v14 = vsel %vm1216_vm3, 0.0, %v347_v7 }
  0xa0   : > { %v398_v15 = vadd.f32 %v397_v4, %v388_v3  ;;  %v417_v23 = vmul.f32 %v415_v61, %v412_v6  ;;  %v432_v24 = vrot.slane %v348_v14, %v1183_v26  ;;  %v508_v33 = vmul.f32 %v507_v12, %v415_v61 }
  0xa1   : > { %v497_v18 = vadd.f32 %v496_v11, %v491_v9  ;;  %v519_v35 = vrot.slane %v348_v14, %v1189_v30  ;;  %v442_v43 = vrot.slane %v348_v14, %v1185_v27  ;;  %v525_v44 = vrot.slane %v348_v14, %v1191_v31  ;;  %v465_v55 = vpop.permute.xlu0 %464 }
  0xa2   : > { %v408_v22 = vadd.f32 %v407_v16, %v398_v15  ;;  %v537_v52 = vrot.slane %v348_v14, %v1200_v37  ;;  %v452_v53 = vrot.slane %v348_v14, %v1187_v28  ;;  %v531_v51 = vrot.slane %v348_v14, %v1193_v32 }
  0xa3   : > { %v503_v29 = vadd.f32 %v502_v19, %v497_v18  ;;  %v462_v54 = vrot.slane %v348_v14, %v1196_v34 }
  0xa4   : > { %v435_v21 = vpop.permute.xlu1 %434  ;;  %v418_v38 = vadd.f32 %v417_v23, %v408_v22  ;;  %v538_v61 = vmul.f32 %v537_v52, %v465_v55 }
  0xa5   : > { %v509_v40 = vadd.f32 %v508_v33, %v503_v29  ;;  %v437_v42 = vmul.f32 %v435_v21, %v432_v24  ;;  %v520_v46 = vmul.f32 %v519_v35, %v435_v21  ;;  %v467_v1 = vmul.f32 %v465_v55, %v462_v54 }
  0xa6   : > { %v428_v41 = vadd.f32 %v427_v36, %v418_v38  ;;  %v579_v16 = vpop.permute.xlu0 %578 }
  0xa7   : > { %v515_v45 = vadd.f32 %v514_v39, %v509_v40 }
  0xa8   : > { %v438_v47 = vadd.f32 %v437_v42, %v428_v41 }
  0xa9   : > { %v445_v5 = vpop.permute.xlu1 %444  ;;  %v521_v50 = vadd.f32 %v520_v46, %v515_v45 }
  0xaa   : > { %v447_v48 = vmul.f32 %v445_v5, %v442_v43  ;;  %v526_v49 = vmul.f32 %v525_v44, %v445_v5 }
  0xac   : > { %v448_v57 = vadd.f32 %v447_v48, %v438_v47  ;;  %v527_v58 = vadd.f32 %v526_v49, %v521_v50 }
  0xae   : > { %v455_v56 = vpop.permute.xlu1 %454 }
  0xaf   : > { %v457_v59 = vmul.f32 %v455_v56, %v452_v53  ;;  %v532_v60 = vmul.f32 %v531_v51, %v455_v56 }
  0xb1   : > { %v458_v63 = vadd.f32 %v457_v59, %v448_v57  ;;  %v533_v0 = vadd.f32 %v532_v60, %v527_v58 }
  0xb3   : > { %v539_v2 = vadd.f32 %v538_v61, %v533_v0  ;;  %v549_v3 = vpop.permute.xlu1 %548  ;;  %v468_v4 = vadd.f32 %v467_v1, %v458_v63 }
  0xb5   : > { %v541_v6 = vrot.slane %v539_v2, 4 }
  0xb7   : > { %v544_v7 = vsel %vm543_vm4, %v468_v4, %v541_v6  ;;  %v556_v11 = vpop.permute.xlu1 %555 }
  0xb8   : > { %v551_v9 = vmul.f32 %v549_v3, %v544_v7 }
  0xba   : > { %v558_v12 = vadd.f32 %v556_v11, %v551_v9 }
  0xbc   : > { %v1242_v14 = vmax.f32 %v558_v12, 0.0  ;;  %v588_v15 = vpop.permute.xlu1 %587 }
  0xbe   : > { %562 = vrot.lane.b32.xlu0 %v1242_v14, %s1048_s20  ;;  %v615_v48 = vrot.slane %v1242_v14, %v1183_v26  ;;  %v718_v49 = vrot.slane %v1242_v14, %v1189_v30  ;;  %v625_v50 = vrot.slane %v1242_v14, %v1185_v27  ;;  %v724_v52 = vrot.slane %v1242_v14, %v1191_v31 }
  0xbf   : > { %v635_v63 = vrot.slane %v1242_v14, %v1187_v28  ;;  %v730_v0 = vrot.slane %v1242_v14, %v1193_v32  ;;  %v645_v7 = vrot.slane %v1242_v14, %v1196_v34  ;;  %v736_v9 = vrot.slane %v1242_v14, %v1200_v37 }
  0xc1   : > { %v598_v17 = vpop.permute.xlu1 %597 }
  0xc2   : > { %617 = vperm.xlu0 %995, %v1159_v13  }
  0xc6   : > { %998 = vset.pattern.permute.xlu0 %v1050_v8  ;;  %v608_v22 = vpop.permute.xlu1 %607 }
  0xc7   : > { %647 = vperm.xlu0 %998, %v1159_v13  }
  0xcb   : > { %567 = vrot.lane.b32.xlu0 %v1242_v14, %s1052_s22  ;;  %v628_v38 = vpop.permute.xlu1 %627 }
  0xcc   : > { %1002 = vset.pattern.permute.xlu0 %v1053_v10  ;;  %v630_v57 = vmul.f32 %v628_v38, %v625_v50  ;;  %v725_v58 = vmul.f32 %v724_v52, %v628_v38 }
  0xcf   : > { %687 = vperm.xlu0 %1002, %v1159_v13  }
  0xd0   : > { %v638_v45 = vpop.permute.xlu1 %637 }
  0xd1   : > { %v640_v4 = vmul.f32 %v638_v45, %v635_v63  ;;  %v731_v6 = vmul.f32 %v730_v0, %v638_v45 }
  0xd5   : > { %v658_v61 = vpop.permute.xlu1 %657 }
 0x130   : > { %v563_v18 = vpop.permute.xlu0 %562 }
 0x131   : > { %v565_v19 = vsel %vm339_vm0, 0.0, %v563_v18 }
 0x132   : > { %v566_v20 = vsel %vm1179_vm1, 0.0, %v565_v19 }
 0x133   : > { %v575_v8 = vrot.slane %v566_v20, %v1183_v26  ;;  %v585_v21 = vrot.slane %v566_v20, %v1185_v27  ;;  %v695_v23 = vrot.slane %v566_v20, %v1189_v30  ;;  %v700_v10 = vrot.slane %v566_v20, %v1191_v31 }
 0x134   : > { %v595_v35 = vrot.slane %v566_v20, %v1187_v28  ;;  %v706_v36 = vrot.slane %v566_v20, %v1193_v32  ;;  %v605_v41 = vrot.slane %v566_v20, %v1196_v34  ;;  %v712_v43 = vrot.slane %v566_v20, %v1200_v37 }
 0x135   : > { %v581_v24 = vmul.f32 %v579_v16, %v575_v8  ;;  %v590_v13 = vmul.f32 %v588_v15, %v585_v21  ;;  %v696_v29 = vmul.f32 %v695_v23, %v579_v16  ;;  %v701_v33 = vmul.f32 %v700_v10, %v588_v15 }
 0x136   : > { %v600_v40 = vmul.f32 %v598_v17, %v595_v35  ;;  %v707_v42 = vmul.f32 %v706_v36, %v598_v17  ;;  %v610_v46 = vmul.f32 %v608_v22, %v605_v41  ;;  %v713_v47 = vmul.f32 %v712_v43, %v608_v22  ;;  %v668_v17 = vpop.permute.xlu1 %667 }
 0x137   : > { %v591_v25 = vadd.f32 %v590_v13, %v581_v24  ;;  %v702_v39 = vadd.f32 %v701_v33, %v696_v29 }
 0x139   : > { %v601_v44 = vadd.f32 %v600_v40, %v591_v25  ;;  %v708_v5 = vadd.f32 %v707_v42, %v702_v39 }
 0x13a   : > { %v678_v35 = vpop.permute.xlu1 %677 }
 0x13b   : > { %v611_v51 = vadd.f32 %v610_v46, %v601_v44  ;;  %v714_v54 = vadd.f32 %v713_v47, %v708_v5  ;;  %v1057_v46 = vmov (!%p920_p7), 0.0  }
 0x13c   : > { %771 = vst.msk [vmem:[%s1137_s13] sm:$0xff] (!%p920_p7), %vm339_vm0, %v1057_v46  ;;  %772 = vst.msk [vmem:[%s1146_s19] sm:$0xff] (!%p920_p7), %vm339_vm0, %v1057_v46 }
 0x141   : > { %v618_v53 = vpop.permute.xlu0 %617 }
 0x142   : > { %v620_v55 = vmul.f32 %v618_v53, %v615_v48  ;;  %v719_v56 = vmul.f32 %v718_v49, %v618_v53 }
 0x144   : > { %v621_v59 = vadd.f32 %v620_v55, %v611_v51  ;;  %v720_v60 = vadd.f32 %v719_v56, %v714_v54 }
 0x146   : > { %v631_v1 = vadd.f32 %v630_v57, %v621_v59  ;;  %v726_v2 = vadd.f32 %v725_v58, %v720_v60  ;;  %v648_v3 = vpop.permute.xlu0 %647 }
 0x147   : > { %v650_v12 = vmul.f32 %v648_v3, %v645_v7  ;;  %v737_v16 = vmul.f32 %v736_v9, %v648_v3 }
 0x148   : > { %v641_v11 = vadd.f32 %v640_v4, %v631_v1  ;;  %v732_v15 = vadd.f32 %v731_v6, %v726_v2 }
 0x14a   : > { %v568_v18 = vpop.permute.xlu0 %567  ;;  %v651_v23 = vadd.f32 %v650_v12, %v641_v11  ;;  %v738_v10 = vadd.f32 %v737_v16, %v732_v15 }
 0x14b   : > { %v570_v19 = vsel %vm346_vm2, %v568_v18, 0.0 }
 0x14c   : > { %v571_v20 = vsel %vm1216_vm3, 0.0, %v570_v19 }
 0x14d   : > { %v655_v8 = vrot.slane %v571_v20, %v1183_v26  ;;  %v665_v21 = vrot.slane %v571_v20, %v1185_v27  ;;  %v742_v22 = vrot.slane %v571_v20, %v1189_v30  ;;  %v748_v14 = vrot.slane %v571_v20, %v1191_v31 }
 0x14e   : > { %v675_v13 = vrot.slane %v571_v20, %v1187_v28  ;;  %v754_v33 = vrot.slane %v571_v20, %v1193_v32  ;;  %v760_v62 = vrot.slane %v571_v20, %v1200_v37  ;;  %v685_v27 = vrot.slane %v571_v20, %v1196_v34  ;;  %v688_v30 = vpop.permute.xlu0 %687 }
 0x14f   : > { %v660_v24 = vmul.f32 %v658_v61, %v655_v8  ;;  %v743_v29 = vmul.f32 %v742_v22, %v658_v61  ;;  %v670_v38 = vmul.f32 %v668_v17, %v665_v21  ;;  %v749_v25 = vmul.f32 %v748_v14, %v668_v17 }
 0x150   : > { %v680_v40 = vmul.f32 %v678_v35, %v675_v13  ;;  %v755_v31 = vmul.f32 %v754_v33, %v678_v35  ;;  %v761_v28 = vmul.f32 %v760_v62, %v688_v30  ;;  %v690_v44 = vmul.f32 %v688_v30, %v685_v27 }
 0x151   : > { %v661_v36 = vadd.f32 %v660_v24, %v651_v23  ;;  %v744_v26 = vadd.f32 %v743_v29, %v738_v10 }
 0x153   : > { %v671_v39 = vadd.f32 %v670_v38, %v661_v36  ;;  %v750_v41 = vadd.f32 %v749_v25, %v744_v26 }
 0x155   : > { %v681_v42 = vadd.f32 %v680_v40, %v671_v39  ;;  %v756_v43 = vadd.f32 %v755_v31, %v750_v41  ;;  %770 = sbr.rel (%p920_p7) target bundleno = 348 (0x15c), region = 44 }
 0x157   : > { %v762_v5 = vadd.f32 %v761_v28, %v756_v43  ;;  %v691_v32 = vadd.f32 %v690_v44, %v681_v42 }
 0x159   : > { %v764_v45 = vrot.slane %v762_v5, 4 }
 0x15b   : > { %v766_v37 = vsel %vm543_vm4, %v691_v32, %v764_v45 }
 0x15c PF: > { %774 = vadd.xlane.f32.xlu0 %v766_v37  ;;  %v779_v34 = vmul.f32 %v766_v37, %v766_v37  ;;  %v773_v47 = vld [vmem:[%s1137_s13] sm:$0xff] }
 0x15d   : > { %v778_v50 = vld [vmem:[%s1146_s19] sm:$0xff] }
 0x160   : > { %780 = vadd.xlane.f32.xlu0 %v779_v34 }
 0x1e9   : > { %v775_v48 = vpop.xlane.xlu0 %774 }
 0x1ea   : > { %v776_v49 = vadd.f32 %v775_v48, %v773_v47 }
 0x1ec   : > { %777 = vst.msk [vmem:[%s1137_s13] sm:$0xff] %vm339_vm0, %v776_v49 }
 0x1ed   : > { %v781_v52 = vpop.xlane.xlu0 %780 }
 0x1ee   : > { %v782_v53 = vadd.f32 %v781_v52, %v778_v50 }
 0x1f0   : > { %783 = vst.msk [vmem:[%s1146_s19] sm:$0xff] %vm339_vm0, %v782_v53 }
 0x1f1 PF: > { %s17_s25 = sadd.s32 1, %s1041_s25   ;;  %s1329_s21 = smov %s1033_s23 }
 0x1f2   : > { %p14_p8 = scmp.ge.s32.totalorder %s17_s25, 6   ;;  %s1330_s22 = smov %s1037_s24 }
 0x1f3   : > { %s1331_s23 = smov %s1334_s26  ;;  %s1332_s24 = smov %s1338_s27 }
 0x1f4   :  { %16 = sbr.rel (!%p14_p8) target bundleno = 3 (0x3), region = 92 }

// kernel: residual_block_pallas.5
= control target key start
LH: loop header
LB: loop body
LE: loop exit
PB: predicated region body
PF: predicated region fallthrough
CT: control target
= control target key end

     0   :  { %s1168_s24 = smov 0   ;;  %s1170_s25 = smov 0   ;;  %s1392_s0 = inlined_call_operand.vmem [shape: f32[16,256], index: 0, kind: input, shape index: {}]   ;;  %s1393_s1 = inlined_call_operand.vmem [shape: f32[4,12], index: 1, kind: input, shape index: {}]   ;;  %s1394_s2 = inlined_call_operand.vmem [shape: f32[16,1], index: 2, kind: input, shape index: {}]   ;;  %s1395_s3 = inlined_call_operand.vmem [shape: f32[16,1], index: 3, kind: input, shape index: {}]   ;;  %s1396_s4 = inlined_call_operand.vmem [shape: f32[4,12], index: 4, kind: input, shape index: {}]   ;;  %s1397_s5 = inlined_call_operand.vmem [shape: f32[16,1], index: 5, kind: input, shape index: {}]   ;;  %s1398_s6 = inlined_call_operand.vmem [shape: f32[16,1], index: 6, kind: input, shape index: {}]   ;;  %s1399_s7 = inlined_call_operand.vmem [shape: f32[16,256], index: 7, kind: output, shape index: {}]  }
   0x1   :  { %s1172_s26 = smov 0   ;;  %s1174_s27 = smov 0  }
   0x2   :  { %s1176_s28 = smov 0  }
   0x3 LB: > { %s26_s29 = sadd.s32 1, %s1104_s26  ;;  %s29_s30 = sadd.s32 1, %s1108_s27  ;;  %s1112_s28 = sphi %s1176_s28, %s17_s28   ;;  %s1108_s27 = sphi %s1174_s27, %s1407_s27   ;;  %s1104_s26 = sphi %s1172_s26, %s1406_s26   ;;  %s1100_s25 = sphi %s1170_s25, %s1405_s25   ;;  %s1096_s24 = sphi %s1168_s24, %s1404_s24  }
   0x4   : > { %p27_p0 = scmp.ge.s32.totalorder %s26_s29, 2  ;;  %p982_p1 = scmp.ge.s32.totalorder %s1112_s28, 1 }
   0x5   : > { %p292_p2 = scmp.lt.s32.totalorder %s1112_s28, 5 }
   0x6   : > { %s1409_s29 = smov (%p27_p0, %s26_s29), 0  ;;  %s1411_s30 = smov (!%p27_p0, %s29_s30), %s1108_s27 }
   0x7   : > { %p293_p3 = pnand %p982_p1, %p292_p2  ;;  %p31_p4 = scmp.ge.s32.totalorder %s1411_s30, 2 }
   0x8   : > { %v379_v0 = vld [vmem:[%s1393_s1] sm:$0xf] (!%p293_p3)  ;;  %v1114_v1 = vmov (!%p293_p3), 2   ;;  %v1115_v2 = vmov (!%p293_p3), 0   ;;  %p346_p5 = scmp.lt.s32.totalorder (!%p293_p3), %s1100_s25, 1  ;;  %p348_p6 = scmp.lt.s32.totalorder (!%p293_p3), %s1096_s24, 1  ;;  %v380_v19 = vlaneseq (!%p293_p3) }
   0x9   : > { %s1413_s30 = smov (%p31_p4, %s1411_s30), 0  ;;  %296 = sbr.rel (%p293_p3) target bundleno = 356 (0x164), region = 48 }
   0xa   : > { %1049 = vset.pattern.permute.xlu1 (!%p293_p3), %v1114_v1  ;;  %1047 = vset.pattern.permute.xlu0 (!%p293_p3), %v1115_v2  ;;  %v1116_v3 = vmov (!%p293_p3), 3   ;;  %v1117_v4 = vmov (!%p293_p3), 1   ;;  %v1118_v6 = vmov (!%p293_p3), 4   ;;  %s1119_s16 = smov (!%p293_p3), 1   ;;  %v1120_v7 = vmov (!%p293_p3), 5   ;;  %s1123_s17 = smov (!%p293_p3), 127  }
   0xb   : > { %434 = vperm.xlu1 (!%p293_p3), %1049, %v379_v0   ;;  %415 = vperm.xlu0 (!%p293_p3), %1047, %v379_v0   ;;  %v1121_v8 = vmov (!%p293_p3), 7   ;;  %v1122_v9 = vmov (!%p293_p3), 6   ;;  %v1124_v10 = vmov (!%p293_p3), 11   ;;  %v1125_v11 = vmov (!%p293_p3), 8   ;;  %v1224_v13 = vld [vmem:[%s1396_s4] sm:$0xf] (!%p293_p3) }
   0xc   : > { %v1126_v12 = vmov (!%p293_p3), 9   ;;  %v1127_v14 = vmov (!%p293_p3), 10   ;;  %v381_v22 = vand.u32 (!%p293_p3), 127, %v380_v19  ;;  %v410_v24 = vshrl.u32 (!%p293_p3), %v380_v19, 7 }
   0xd   : > { %vm399_vm0 = vcmask (!%p293_p3), 7168   ;;  %vm406_vm2 = vcmask (!%p293_p3), 1039360   ;;  %vm603_vm4 = vcmask (!%p293_p3), 1043456  }
   0xe   : > { %v386_v23 = vand.u32 (!%p293_p3), 15, %v381_v22  ;;  %v1261_v28 = vsub.s32 (!%p293_p3), 0, %v410_v24  ;;  %v1263_v29 = vsub.s32 (!%p293_p3), 1, %v410_v24  ;;  %v1265_v30 = vsub.s32 (!%p293_p3), 2, %v410_v24 }
   0xf   : > { %1050 = vset.pattern.permute.xlu1 (!%p293_p3), %v1116_v3  ;;  %1048 = vset.pattern.permute.xlu0 (!%p293_p3), %v1117_v4  ;;  %v1267_v32 = vsub.s32 (!%p293_p3), 4, %v410_v24  ;;  %v1269_v33 = vsub.s32 (!%p293_p3), 5, %v410_v24  ;;  %v1271_v34 = vsub.s32 (!%p293_p3), 6, %v410_v24  ;;  %v1274_v36 = vsub.s32 (!%p293_p3), 3, %v410_v24 }
  0x10   : > { %s1415_s25 = smov (!%p346_p5, %s1100_s25), 1  ;;  %s1417_s24 = smov (!%p348_p6, %s1096_s24), 1  ;;  %444 = vperm.xlu1 %1050, %v379_v0   ;;  %424 = vperm.xlu0 %1048, %v379_v0   ;;  %vm1257_vm1 = vcmp.eq.s32.totalorder %v386_v23, 0  ;;  %v1278_v39 = vsub.s32 7, %v410_v24  ;;  %vm1294_vm3 = vcmp.eq.s32.totalorder %v386_v23, 15 }
  0x11   : > { %s983_s10 = sshll.u32 %s1415_s25, 1  ;;  %s1229_s20 = sshll.u32 %s1415_s25, 3 }
  0x12   : > { %s1205_s11 = sadd.s32 %s983_s10, %s1417_s24  ;;  %s357_s23 = scalar_lea.vmem %s1394_s2, %s1229_s20 }
  0x13   : > { %s984_s12 = sshll.u32 %s1205_s11, 3  ;;  %v605_v15 = vld [vmem:[%s357_s23] sm:$0xff]  ;;  %s361_s9 = scalar_lea.vmem %s1395_s3, %s1229_s20 }
  0x14   : > { %s353_s15 = scalar_lea.vmem %s1392_s0, %s984_s12  ;;  %1051 = vset.pattern.permute.xlu0 %v1118_v6  ;;  %1052 = vset.pattern.permute.xlu1 %v1120_v7  ;;  %v612_v16 = vld [vmem:[%s361_s9] sm:$0xff]  ;;  %s365_s13 = scalar_lea.vmem %s1397_s5, %s1229_s20 }
  0x15   : > { %v1213_v5 = vld [vmem:[%s353_s15] sm:$0xff]  ;;  %454 = vperm.xlu0 %1051, %v379_v0   ;;  %s369_s18 = scalar_lea.vmem %s1398_s6, %s1229_s20  ;;  %s377_s19 = scalar_lea.vmem %s1399_s7, %s984_s12 }
  0x16   : > { %396 = vrot.lane.b32.xlu1 %v1213_v5, %s1119_s16  ;;  %v827_v17 = vld [vmem:[%s365_s13] sm:$0xff]  ;;  %v452_v56 = vrot.slane %v1213_v5, %v1261_v28  ;;  %v555_v59 = vrot.slane %v1213_v5, %v1267_v32  ;;  %v462_v62 = vrot.slane %v1213_v5, %v1263_v29  ;;  %v573_v23 = vrot.slane %v1213_v5, %v1278_v39 }
  0x17   : > { %v834_v18 = vld [vmem:[%s369_s18] sm:$0xff] }
  0x19   : > { %1054 = vset.pattern.permute.xlu0 %v1121_v8 }
  0x1a   : > { %464 = vperm.xlu1 %1052, %v379_v0   ;;  %484 = vperm.xlu0 %1054, %v379_v0  }
  0x1e   : > { %1053 = vset.pattern.permute.xlu1 %v1122_v9  ;;  %403 = vrot.lane.b32.xlu0 %v1213_v5, %s1123_s17 }
  0x1f   : > { %474 = vperm.xlu1 %1053, %v379_v0   ;;  %1058 = vset.pattern.permute.xlu0 %v1124_v10 }
  0x22   : > { %524 = vperm.xlu0 %1058, %v379_v0  }
  0x23   : > { %1055 = vset.pattern.permute.xlu1 %v1125_v11 }
  0x24   : > { %494 = vperm.xlu1 %1055, %v379_v0  }
  0x26   : > { %1060 = vset.pattern.permute.xlu0 %v1115_v2 }
  0x27   : > { %638 = vperm.xlu0 %1060, %v1224_v13  }
  0x28   : > { %1056 = vset.pattern.permute.xlu1 %v1126_v12 }
  0x29   : > { %504 = vperm.xlu1 %1056, %v379_v0  }
  0x2b   : > { %1064 = vset.pattern.permute.xlu0 %v1118_v6 }
  0x2d   : > { %1057 = vset.pattern.permute.xlu1 %v1127_v14 }
  0x2e   : > { %514 = vperm.xlu1 %1057, %v379_v0  }
  0x32   : > { %1059 = vset.pattern.permute.xlu1 %v1115_v2 }
  0x33   : > { %608 = vperm.xlu1 %1059, %v605_v15  }
  0x37   : > { %615 = vperm.xlu1 %1059, %v612_v16   ;;  %v567_v16 = vrot.slane %v1213_v5, %v1271_v34 }
  0x3b   : > { %1061 = vset.pattern.permute.xlu1 %v1117_v4  ;;  %v561_v4 = vrot.slane %v1213_v5, %v1269_v33 }
  0x3c   : > { %647 = vperm.xlu1 %1061, %v1224_v13  }
  0x40   : > { %1062 = vset.pattern.permute.xlu1 %v1114_v1 }
  0x41   : > { %657 = vperm.xlu1 %1062, %v1224_v13  }
  0x45   : > { %1063 = vset.pattern.permute.xlu1 %v1116_v3 }
  0x46   : > { %667 = vperm.xlu1 %1063, %v1224_v13  }
  0x4a   : > { %1065 = vset.pattern.permute.xlu1 %v1120_v7 }
  0x4b   : > { %687 = vperm.xlu1 %1065, %v1224_v13  }
  0x4f   : > { %1066 = vset.pattern.permute.xlu1 %v1122_v9 }
  0x50   : > { %697 = vperm.xlu1 %1066, %v1224_v13  }
  0x54   : > { %1068 = vset.pattern.permute.xlu1 %v1125_v11  ;;  %v472_v11 = vrot.slane %v1213_v5, %v1265_v30 }
  0x55   : > { %717 = vperm.xlu1 %1068, %v1224_v13  }
  0x59   : > { %1069 = vset.pattern.permute.xlu1 %v1126_v12 }
  0x5a   : > { %727 = vperm.xlu1 %1069, %v1224_v13  }
  0x5e   : > { %1070 = vset.pattern.permute.xlu1 %v1127_v14 }
  0x5f   : > { %737 = vperm.xlu1 %1070, %v1224_v13  }
  0x63   : > { %1072 = vset.pattern.permute.xlu1 %v1115_v2 }
  0x64   : > { %830 = vperm.xlu1 %1072, %v827_v17  }
  0x68   : > { %837 = vperm.xlu1 %1072, %v834_v18  }
  0x8a   : > { %v435_v20 = vpop.permute.xlu1 %434  ;;  %v416_v21 = vpop.permute.xlu0 %415 }
  0x8f   : > { %v445_v25 = vpop.permute.xlu1 %444  ;;  %v425_v26 = vpop.permute.xlu0 %424 }
  0x93   : > { %v397_v31 = vpop.permute.xlu1 %396 }
  0x94   : > { %v400_v35 = vsel %vm399_vm0, 0.0, %v397_v31  ;;  %v455_v37 = vpop.permute.xlu0 %454 }
  0x95   : > { %v401_v38 = vsel %vm1257_vm1, 0.0, %v400_v35  ;;  %v457_v9 = vmul.f32 %v455_v37, %v452_v56  ;;  %v556_v15 = vmul.f32 %v555_v59, %v455_v37 }
  0x96   : > { %v412_v40 = vrot.slane %v401_v38, %v1261_v28  ;;  %v422_v41 = vrot.slane %v401_v38, %v1263_v29  ;;  %v432_v42 = vrot.slane %v401_v38, %v1265_v30  ;;  %v532_v43 = vrot.slane %v401_v38, %v1267_v32 }
  0x97   : > { %v537_v44 = vrot.slane %v401_v38, %v1269_v33  ;;  %v543_v45 = vrot.slane %v401_v38, %v1271_v34  ;;  %v442_v49 = vrot.slane %v401_v38, %v1274_v36  ;;  %v549_v52 = vrot.slane %v401_v38, %v1278_v39 }
  0x98   : > { %v418_v47 = vmul.f32 %v416_v21, %v412_v40  ;;  %v427_v48 = vmul.f32 %v425_v26, %v422_v41  ;;  %v533_v50 = vmul.f32 %v532_v43, %v416_v21  ;;  %v437_v55 = vmul.f32 %v435_v20, %v432_v42 }
  0x99   : > { %v465_v46 = vpop.permute.xlu1 %464  ;;  %v538_v51 = vmul.f32 %v537_v44, %v425_v26  ;;  %v485_v53 = vpop.permute.xlu0 %484  ;;  %v544_v58 = vmul.f32 %v543_v45, %v435_v20  ;;  %v447_v61 = vmul.f32 %v445_v25, %v442_v49  ;;  %v550_v3 = vmul.f32 %v549_v52, %v445_v25 }
  0x9a   : > { %v428_v54 = vadd.f32 %v427_v48, %v418_v47  ;;  %v467_v19 = vmul.f32 %v465_v46, %v462_v62  ;;  %v482_v20 = vrot.slane %v1213_v5, %v1274_v36  ;;  %v562_v22 = vmul.f32 %v561_v4, %v465_v46 }
  0x9b   : > { %v539_v57 = vadd.f32 %v538_v51, %v533_v50  ;;  %v574_v42 = vmul.f32 %v573_v23, %v485_v53 }
  0x9c   : > { %v438_v60 = vadd.f32 %v437_v55, %v428_v54  ;;  %v487_v40 = vmul.f32 %v485_v53, %v482_v20 }
  0x9d   : > { %v545_v1 = vadd.f32 %v544_v58, %v539_v57  ;;  %v404_v6 = vpop.permute.xlu0 %403 }
  0x9e   : > { %v475_v63 = vpop.permute.xlu1 %474  ;;  %v448_v7 = vadd.f32 %v447_v61, %v438_v60  ;;  %v407_v12 = vsel %vm406_vm2, %v404_v6, 0.0 }
  0x9f   : > { %v551_v14 = vadd.f32 %v550_v3, %v545_v1  ;;  %v408_v17 = vsel %vm1294_vm3, 0.0, %v407_v12  ;;  %v477_v26 = vmul.f32 %v475_v63, %v472_v11  ;;  %v568_v37 = vmul.f32 %v567_v16, %v475_v63 }
  0xa0   : > { %v458_v18 = vadd.f32 %v457_v9, %v448_v7  ;;  %v492_v31 = vrot.slane %v408_v17, %v1261_v28  ;;  %v579_v38 = vrot.slane %v408_v17, %v1267_v32  ;;  %v502_v46 = vrot.slane %v408_v17, %v1263_v29 }
  0xa1   : > { %v557_v21 = vadd.f32 %v556_v15, %v551_v14  ;;  %v585_v47 = vrot.slane %v408_v17, %v1269_v33  ;;  %v597_v56 = vrot.slane %v408_v17, %v1278_v39  ;;  %v512_v57 = vrot.slane %v408_v17, %v1265_v30  ;;  %v525_v59 = vpop.permute.xlu0 %524 }
  0xa2   : > { %v468_v25 = vadd.f32 %v467_v19, %v458_v18  ;;  %v591_v53 = vrot.slane %v408_v17, %v1271_v34  ;;  %v522_v58 = vrot.slane %v408_v17, %v1274_v36 }
  0xa3   : > { %v495_v24 = vpop.permute.xlu1 %494  ;;  %v563_v35 = vadd.f32 %v562_v22, %v557_v21  ;;  %v598_v3 = vmul.f32 %v597_v56, %v525_v59 }
  0xa4   : > { %v478_v41 = vadd.f32 %v477_v26, %v468_v25  ;;  %v497_v45 = vmul.f32 %v495_v24, %v492_v31  ;;  %v580_v50 = vmul.f32 %v579_v38, %v495_v24  ;;  %v527_v7 = vmul.f32 %v525_v59, %v522_v58 }
  0xa5   : > { %v569_v43 = vadd.f32 %v568_v37, %v563_v35 }
  0xa6   : > { %v488_v44 = vadd.f32 %v487_v40, %v478_v41  ;;  %v639_v21 = vpop.permute.xlu0 %638 }
  0xa7   : > { %v575_v49 = vadd.f32 %v574_v42, %v569_v43 }
  0xa8   : > { %v505_v48 = vpop.permute.xlu1 %504  ;;  %v498_v51 = vadd.f32 %v497_v45, %v488_v44 }
  0xa9   : > { %v507_v52 = vmul.f32 %v505_v48, %v502_v46  ;;  %v586_v54 = vmul.f32 %v585_v47, %v505_v48  ;;  %v581_v55 = vadd.f32 %v580_v50, %v575_v49 }
  0xab   : > { %v508_v61 = vadd.f32 %v507_v52, %v498_v51  ;;  %v587_v62 = vadd.f32 %v586_v54, %v581_v55 }
  0xad   : > { %v515_v60 = vpop.permute.xlu1 %514 }
  0xae   : > { %v517_v63 = vmul.f32 %v515_v60, %v512_v57  ;;  %v592_v1 = vmul.f32 %v591_v53, %v515_v60 }
  0xb0   : > { %v518_v4 = vadd.f32 %v517_v63, %v508_v61  ;;  %v593_v6 = vadd.f32 %v592_v1, %v587_v62 }
  0xb2   : > { %v599_v9 = vadd.f32 %v598_v3, %v593_v6  ;;  %v609_v11 = vpop.permute.xlu1 %608  ;;  %v528_v12 = vadd.f32 %v527_v7, %v518_v4 }
  0xb4   : > { %v601_v14 = vrot.slane %v599_v9, 4 }
  0xb6   : > { %v604_v15 = vsel %vm603_vm4, %v528_v12, %v601_v14  ;;  %v616_v18 = vpop.permute.xlu1 %615 }
  0xb7   : > { %v611_v16 = vmul.f32 %v609_v11, %v604_v15 }
  0xb9   : > { %v618_v17 = vadd.f32 %v616_v18, %v611_v16 }
  0xbb   : > { %v1320_v19 = vmax.f32 %v618_v17, 0.0  ;;  %v648_v20 = vpop.permute.xlu1 %647 }
  0xbd   : > { %622 = vrot.lane.b32.xlu0 %v1320_v19, %s1119_s16  ;;  %v675_v54 = vrot.slane %v1320_v19, %v1261_v28  ;;  %v778_v55 = vrot.slane %v1320_v19, %v1267_v32  ;;  %v685_v56 = vrot.slane %v1320_v19, %v1263_v29  ;;  %v784_v57 = vrot.slane %v1320_v19, %v1269_v33 }
  0xbe   : > { %v695_v6 = vrot.slane %v1320_v19, %v1265_v30  ;;  %v790_v7 = vrot.slane %v1320_v19, %v1271_v34  ;;  %v705_v16 = vrot.slane %v1320_v19, %v1274_v36  ;;  %v796_v18 = vrot.slane %v1320_v19, %v1278_v39 }
  0xc0   : > { %v658_v22 = vpop.permute.xlu1 %657 }
  0xc1   : > { %677 = vperm.xlu0 %1064, %v1224_v13  }
  0xc5   : > { %1067 = vset.pattern.permute.xlu0 %v1121_v8  ;;  %v668_v31 = vpop.permute.xlu1 %667 }
  0xc6   : > { %707 = vperm.xlu0 %1067, %v1224_v13  }
  0xca   : > { %627 = vrot.lane.b32.xlu0 %v1320_v19, %s1123_s17  ;;  %v688_v42 = vpop.permute.xlu1 %687 }
  0xcb   : > { %1071 = vset.pattern.permute.xlu0 %v1124_v10  ;;  %v690_v62 = vmul.f32 %v688_v42, %v685_v56  ;;  %v785_v63 = vmul.f32 %v784_v57, %v688_v42 }
  0xce   : > { %747 = vperm.xlu0 %1071, %v1224_v13  }
  0xcf   : > { %v698_v50 = vpop.permute.xlu1 %697 }
  0xd0   : > { %v700_v14 = vmul.f32 %v698_v50, %v695_v6  ;;  %v791_v15 = vmul.f32 %v790_v7, %v698_v50 }
  0xd2   : > { %1073 = vset.pattern.permute.xlu0 %v1115_v2 }
  0xd4   : > { %v718_v4 = vpop.permute.xlu1 %717 }
 0x12f   : > { %v623_v23 = vpop.permute.xlu0 %622 }
 0x130   : > { %v625_v24 = vsel %vm399_vm0, 0.0, %v623_v23  ;;  %v728_v23 = vpop.permute.xlu1 %727 }
 0x131   : > { %v626_v8 = vsel %vm1257_vm1, 0.0, %v625_v24 }
 0x132   : > { %v635_v25 = vrot.slane %v626_v8, %v1261_v28  ;;  %v645_v26 = vrot.slane %v626_v8, %v1263_v29  ;;  %v755_v10 = vrot.slane %v626_v8, %v1267_v32  ;;  %v760_v13 = vrot.slane %v626_v8, %v1269_v33 }
 0x133   : > { %v655_v40 = vrot.slane %v626_v8, %v1265_v30  ;;  %v766_v41 = vrot.slane %v626_v8, %v1271_v34  ;;  %v665_v45 = vrot.slane %v626_v8, %v1274_v36  ;;  %v772_v47 = vrot.slane %v626_v8, %v1278_v39 }
 0x134   : > { %v641_v35 = vmul.f32 %v639_v21, %v635_v25  ;;  %v650_v2 = vmul.f32 %v648_v20, %v645_v26  ;;  %v756_v37 = vmul.f32 %v755_v10, %v639_v21  ;;  %v761_v38 = vmul.f32 %v760_v13, %v648_v20 }
 0x135   : > { %v660_v44 = vmul.f32 %v658_v22, %v655_v40  ;;  %v767_v46 = vmul.f32 %v766_v41, %v658_v22  ;;  %v670_v51 = vmul.f32 %v668_v31, %v665_v45  ;;  %v773_v52 = vmul.f32 %v772_v47, %v668_v31  ;;  %v738_v41 = vpop.permute.xlu1 %737 }
 0x136   : > { %v651_v27 = vadd.f32 %v650_v2, %v641_v35  ;;  %v762_v43 = vadd.f32 %v761_v38, %v756_v37 }
 0x138   : > { %v661_v48 = vadd.f32 %v660_v44, %v651_v27  ;;  %v768_v49 = vadd.f32 %v767_v46, %v762_v43 }
 0x139   : > { %v831_v50 = vpop.permute.xlu1 %830 }
 0x13a   : > { %v671_v58 = vadd.f32 %v670_v51, %v661_v48  ;;  %v774_v59 = vadd.f32 %v773_v52, %v768_v49 }
 0x140   : > { %v678_v53 = vpop.permute.xlu0 %677 }
 0x141   : > { %v680_v60 = vmul.f32 %v678_v53, %v675_v54  ;;  %v779_v61 = vmul.f32 %v778_v55, %v678_v53  ;;  %v838_v55 = vpop.permute.xlu1 %837 }
 0x143   : > { %v681_v1 = vadd.f32 %v680_v60, %v671_v58  ;;  %v780_v3 = vadd.f32 %v779_v61, %v774_v59 }
 0x145   : > { %v691_v9 = vadd.f32 %v690_v62, %v681_v1  ;;  %v786_v11 = vadd.f32 %v785_v63, %v780_v3  ;;  %v708_v12 = vpop.permute.xlu0 %707 }
 0x146   : > { %v710_v20 = vmul.f32 %v708_v12, %v705_v16  ;;  %v797_v22 = vmul.f32 %v796_v18, %v708_v12 }
 0x147   : > { %v701_v17 = vadd.f32 %v700_v14, %v691_v9  ;;  %v792_v21 = vadd.f32 %v791_v15, %v786_v11 }
 0x149   : > { %v628_v24 = vpop.permute.xlu0 %627  ;;  %v711_v13 = vadd.f32 %v710_v20, %v701_v17  ;;  %v798_v35 = vadd.f32 %v797_v22, %v792_v21 }
 0x14a   : > { %v630_v8 = vsel %vm406_vm2, %v628_v24, 0.0 }
 0x14b   : > { %v631_v25 = vsel %vm1294_vm3, 0.0, %v630_v8 }
 0x14c   : > { %v715_v26 = vrot.slane %v631_v25, %v1261_v28  ;;  %v725_v31 = vrot.slane %v631_v25, %v1263_v29  ;;  %v802_v10 = vrot.slane %v631_v25, %v1267_v32  ;;  %v808_v19 = vrot.slane %v631_v25, %v1269_v33 }
 0x14d   : > { %v735_v37 = vrot.slane %v631_v25, %v1265_v30  ;;  %v814_v40 = vrot.slane %v631_v25, %v1271_v34  ;;  %v820_v0 = vrot.slane %v631_v25, %v1278_v39  ;;  %v745_v29 = vrot.slane %v631_v25, %v1274_v36  ;;  %v748_v32 = vpop.permute.xlu0 %747 }
 0x14e   : > { %v720_v2 = vmul.f32 %v718_v4, %v715_v26  ;;  %v803_v38 = vmul.f32 %v802_v10, %v718_v4  ;;  %v730_v27 = vmul.f32 %v728_v23, %v725_v31  ;;  %v809_v43 = vmul.f32 %v808_v19, %v728_v23 }
 0x14f   : > { %v740_v45 = vmul.f32 %v738_v41, %v735_v37  ;;  %v815_v46 = vmul.f32 %v814_v40, %v738_v41  ;;  %v821_v48 = vmul.f32 %v820_v0, %v748_v32  ;;  %v750_v49 = vmul.f32 %v748_v32, %v745_v29 }
 0x150   : > { %v721_v42 = vadd.f32 %v720_v2, %v711_v13  ;;  %v804_v28 = vadd.f32 %v803_v38, %v798_v35 }
 0x152   : > { %v731_v44 = vadd.f32 %v730_v27, %v721_v42  ;;  %v810_v33 = vadd.f32 %v809_v43, %v804_v28 }
 0x154   : > { %v741_v47 = vadd.f32 %v740_v45, %v731_v44  ;;  %v816_v30 = vadd.f32 %v815_v46, %v810_v33 }
 0x156   : > { %v822_v34 = vadd.f32 %v821_v48, %v816_v30  ;;  %v751_v51 = vadd.f32 %v750_v49, %v741_v47 }
 0x158   : > { %v824_v39 = vrot.slane %v822_v34, 4 }
 0x15a   : > { %v826_v52 = vsel %vm603_vm4, %v751_v51, %v824_v39 }
 0x15b   : > { %v833_v54 = vmul.f32 %v831_v50, %v826_v52 }
 0x15d   : > { %v840_v56 = vadd.f32 %v838_v55, %v833_v54 }
 0x15f   : > { %v841_v36 = vadd.f32 %v840_v56, %v1213_v5 }
 0x161   : > { %v842_v57 = vmax.f32 %v841_v36, 0.0 }
 0x163   : > { %843 = vst [vmem:[%s377_s19] sm:$0xff] %v842_v57 }
 0x164 PF: > { %s17_s28 = sadd.s32 1, %s1112_s28   ;;  %s1404_s24 = smov %s1104_s26 }
 0x165   : > { %p14_p7 = scmp.ge.s32.totalorder %s17_s28, 6   ;;  %s1405_s25 = smov %s1108_s27 }
 0x166   : > { %s1406_s26 = smov %s1409_s29  ;;  %s1407_s27 = smov %s1413_s30 }
 0x167   :  { %16 = sbr.rel (!%p14_p7) target bundleno = 3 (0x3), region = 90 }

</bundles_post_ra>
